<compile_context>
chip_gen: v6e
topology: v6e:2x2x1
jax: 0.10.0
libtpu: 0.0.40
codegen_flags: <defaults>
</compile_context>

<pallas_src>
import math
import functools

import jax
import jax.numpy as jnp
from jax.experimental import pallas as pl
from jax.experimental.pallas import tpu as pltpu

EPS = 1e-6        # LayerNormalization eps (added to std, as in the module)
NEG_INF = -1e9    # masked_fill value used by the module


# ----------------------------------------------------------------------------
# In-kernel helpers
# ----------------------------------------------------------------------------
def _layernorm(x, alpha, beta):
    # mean over last dim, *unbiased* std (N-1), divide by (std + eps).
    d = x.shape[-1]
    mean = jnp.mean(x, axis=-1, keepdims=True)
    var = jnp.sum((x - mean) ** 2, axis=-1, keepdims=True) * (1.0 / (d - 1))
    std = jnp.sqrt(var)
    return alpha * (x - mean) / (std + EPS) + beta


def _bmm(a, b, contract_a, contract_b):
    """Leading-batch matmul: batch dim 0 on both operands."""
    return jax.lax.dot_general(
        a, b,
        (((contract_a,), (contract_b,)), ((0,), (0,))),
        preferred_element_type=jnp.float32,
    )


def _mha(q_in, kv_in, bias, wq_h, wk_h, wv_h, wo_h, *, scale):
    """Multi-head attention on (S, D) tiles with head-split weights.

    q_in : (S, D)      kv_in : (S_kv, D)     bias : (S, S_kv) additive (0/-1e9)
    wq_h/wk_h/wv_h : (h, D, d_k)             wo_h : (h, d_k, D)
    returns (S, D).
    """
    h = wq_h.shape[0]
    S, D = q_in.shape
    S_kv = kv_in.shape[0]

    q_b = jnp.broadcast_to(q_in[None], (h, S, D))
    kv_b = jnp.broadcast_to(kv_in[None], (h, S_kv, D))

    # Per-head projections as a single batched MXU contraction each.
    q = _bmm(q_b, wq_h, 2, 1) * scale          # (h, S, d_k), scale folded in
    k = _bmm(kv_b, wk_h, 2, 1)                 # (h, S_kv, d_k)
    v = _bmm(kv_b, wv_h, 2, 1)                 # (h, S_kv, d_k)

    scores = _bmm(q, k, 2, 2)                  # (h, S, S_kv)
    scores = scores + bias[None]               # mask bias, precomputed once
    scores = scores - jnp.max(scores, axis=-1, keepdims=True)
    p = jnp.exp(scores)
    inv_denom = pl.reciprocal(jnp.sum(p, axis=-1, keepdims=True), approx=True)
    p = p * inv_denom                          # softmax, divide on EUP

    ctx = _bmm(p, v, 2, 1)                     # (h, S, d_k)
    out_h = _bmm(ctx, wo_h, 2, 1)              # (h, S, D) per-head partials
    return jnp.sum(out_h, axis=0)              # (S, D) == concat(heads) @ W_o


# ----------------------------------------------------------------------------
# Fused decoder-block kernel (one grid step = one batch element)
# ----------------------------------------------------------------------------
def _decoder_block_kernel(
    x_ref, enc_ref, tgt_bias_ref, src_bias_ref,
    wq_s_ref, wk_s_ref, wv_s_ref, wo_s_ref,
    wq_c_ref, wk_c_ref, wv_c_ref, wo_c_ref,
    w1_ref, b1_ref, w2_ref, b2_ref,
    a0_ref, g0_ref, a1_ref, g1_ref, a2_ref, g2_ref,
    o_ref, *, scale):
    x = x_ref[0]        # (S, D)
    enc = enc_ref[0]    # (S_kv, D)

    # Residual 0: self-attention. xn reused for q, k and v (single LayerNorm).
    xn = _layernorm(x, a0_ref[...], g0_ref[...])
    x = x + _mha(xn, xn, tgt_bias_ref[...],
                 wq_s_ref[...], wk_s_ref[...], wv_s_ref[...], wo_s_ref[...],
                 scale=scale)

    # Residual 1: cross-attention. q = norm(x); k = v = encoder_output (raw).
    xn = _layernorm(x, a1_ref[...], g1_ref[...])
    x = x + _mha(xn, enc, src_bias_ref[...],
                 wq_c_ref[...], wk_c_ref[...], wv_c_ref[...], wo_c_ref[...],
                 scale=scale)

    # Residual 2: feed-forward.
    xn = _layernorm(x, a2_ref[...], g2_ref[...])
    h1 = jnp.dot(xn, w1_ref[...], preferred_element_type=jnp.float32) + b1_ref[...]
    h1 = jnp.maximum(h1, 0.0)
    x = x + jnp.dot(h1, w2_ref[...], preferred_element_type=jnp.float32) + b2_ref[...]

    o_ref[0] = x


# ----------------------------------------------------------------------------
# Wrapper
# ----------------------------------------------------------------------------
def _split_heads_in(w, h):
    # (D_in, h*d_k) -> (h, D_in, d_k); head hi owns columns hi*d_k:(hi+1)*d_k.
    d_in, d_out = w.shape
    d_k = d_out // h
    return w.reshape(d_in, h, d_k).transpose(1, 0, 2)


def _split_heads_out(w, h):
    # (h*d_k, D_out) -> (h, d_k, D_out); head hi owns rows hi*d_k:(hi+1)*d_k.
    d_in, d_out = w.shape
    d_k = d_in // h
    return w.reshape(h, d_k, d_out)


def decoder_block(x, encoder_output, src_mask, tgt_mask, params, *, h):
    B, S, D = x.shape
    S_kv = encoder_output.shape[1]
    d_k = D // h

    wq_s, wk_s, wv_s, wo_s = params["self_attn"]
    wq_c, wk_c, wv_c, wo_c = params["cross_attn"]
    w1, b1, w2, b2 = params["ffn"]
    a0, g0 = params["ln0"]
    a1, g1 = params["ln1"]
    a2, g2 = params["ln2"]
    d_ff = w1.shape[1]

    # Head-split weight layouts (done once, outside the kernel).
    wq_s_h, wk_s_h, wv_s_h = (_split_heads_in(w, h) for w in (wq_s, wk_s, wv_s))
    wq_c_h, wk_c_h, wv_c_h = (_split_heads_in(w, h) for w in (wq_c, wk_c, wv_c))
    wo_s_h = _split_heads_out(wo_s, h)
    wo_c_h = _split_heads_out(wo_c, h)

    # Dense masks -> additive bias, computed once (mask == 0 -> -1e9 else 0).
    tgt_bias = jnp.where(tgt_mask == 0, NEG_INF, 0.0).astype(jnp.float32)
    src_bias = jnp.where(src_mask == 0, NEG_INF, 0.0).astype(jnp.float32)

    kernel = functools.partial(_decoder_block_kernel, scale=1.0 / math.sqrt(d_k))

    def full(*shape):
        ndim = len(shape)
        return pl.BlockSpec(shape, lambda b, _n=ndim: (0,) * _n)

    def per_batch(seq_len):
        return pl.BlockSpec((1, seq_len, D), lambda b: (b, 0, 0))

    return pl.pallas_call(
        kernel,
        out_shape=jax.ShapeDtypeStruct((B, S, D), x.dtype),
        grid=(B,),
        in_specs=[
            per_batch(S),                 # x
            per_batch(S_kv),              # encoder_output
            full(S, S),                   # tgt mask bias
            full(S, S_kv),                # src mask bias
            full(h, D, d_k), full(h, D, d_k), full(h, D, d_k), full(h, d_k, D),
            full(h, D, d_k), full(h, D, d_k), full(h, D, d_k), full(h, d_k, D),
            full(D, d_ff), full(1, d_ff), full(d_ff, D), full(1, D),
            full(1, D), full(1, D),       # ln0 alpha, beta
            full(1, D), full(1, D),       # ln1 alpha, beta
            full(1, D), full(1, D),       # ln2 alpha, beta
        ],
        out_specs=per_batch(S),
        compiler_params=pltpu.CompilerParams(dimension_semantics=("parallel",)),
    )(x, encoder_output, tgt_bias, src_bias,
      wq_s_h, wk_s_h, wv_s_h, wo_s_h,
      wq_c_h, wk_c_h, wv_c_h, wo_c_h,
      w1, b1, w2, b2,
      a0, g0, a1, g1, a2, g2)


# ----------------------------------------------------------------------------
# Pure-JAX reference (for correctness check)
# ----------------------------------------------------------------------------
def _ref_layernorm(x, alpha, beta):
    d = x.shape[-1]
    mean = jnp.mean(x, axis=-1, keepdims=True)
    var = jnp.sum((x - mean) ** 2, axis=-1, keepdims=True) / (d - 1)
    return alpha * (x - mean) / (jnp.sqrt(var) + EPS) + beta


def _ref_mha(q_in, kv_in, mask, wq, wk, wv, wo, h):
    B, S, D = q_in.shape
    S_kv = kv_in.shape[1]
    d_k = D // h
    q = (q_in @ wq).reshape(B, S, h, d_k).transpose(0, 2, 1, 3)
    k = (kv_in @ wk).reshape(B, S_kv, h, d_k).transpose(0, 2, 1, 3)
    v = (kv_in @ wv).reshape(B, S_kv, h, d_k).transpose(0, 2, 1, 3)
    scores = q @ k.transpose(0, 1, 3, 2) / math.sqrt(d_k)
    scores = jnp.where(mask[None, None] == 0, NEG_INF, scores)
    p = jax.nn.softmax(scores, axis=-1)
    o = (p @ v).transpose(0, 2, 1, 3).reshape(B, S, D)
    return o @ wo


def _ref_decoder_block(x, enc, src_mask, tgt_mask, params, *, h):
    a0, g0 = params["ln0"]
    xn = _ref_layernorm(x, a0, g0)
    x = x + _ref_mha(xn, xn, tgt_mask, *params["self_attn"], h)
    a1, g1 = params["ln1"]
    xn = _ref_layernorm(x, a1, g1)
    x = x + _ref_mha(xn, enc, src_mask, *params["cross_attn"], h)
    a2, g2 = params["ln2"]
    xn = _ref_layernorm(x, a2, g2)
    w1, b1, w2, b2 = params["ffn"]
    x = x + (jnp.maximum(xn @ w1 + b1, 0.0) @ w2 + b2)
    return x


# ----------------------------------------------------------------------------
# Main
# ----------------------------------------------------------------------------
if __name__ == "__main__":
    # Small demo shapes; D = 128 keeps the output stores lane-dense.
    B, S, D, H, D_FF = 2, 8, 128, 4, 256

    key = jax.random.PRNGKey(0)
    keys = jax.random.split(key, 16)

    def init(k, shape, scale=0.1):
        return scale * jax.random.normal(k, shape, dtype=jnp.float32)

    params = {
        "self_attn": (init(keys[0], (D, D)), init(keys[1], (D, D)),
                      init(keys[2], (D, D)), init(keys[3], (D, D))),
        "cross_attn": (init(keys[4], (D, D)), init(keys[5], (D, D)),
                       init(keys[6], (D, D)), init(keys[7], (D, D))),
        "ffn": (init(keys[8], (D, D_FF)), init(keys[9], (1, D_FF)),
                init(keys[10], (D_FF, D)), init(keys[11], (1, D))),
        # LayerNormalization params init to ones / zeros, as in the module.
        "ln0": (jnp.ones((1, D), jnp.float32), jnp.zeros((1, D), jnp.float32)),
        "ln1": (jnp.ones((1, D), jnp.float32), jnp.zeros((1, D), jnp.float32)),
        "ln2": (jnp.ones((1, D), jnp.float32), jnp.zeros((1, D), jnp.float32)),
    }

    x = jax.random.normal(keys[12], (B, S, D), dtype=jnp.float32)
    encoder_output = jax.random.normal(keys[13], (B, S, D), dtype=jnp.float32)
    tgt_mask = jnp.tril(jnp.ones((S, S), dtype=jnp.float32))   # causal mask
    src_mask = jnp.ones((S, S), dtype=jnp.float32)             # no source masking

    out = decoder_block(x, encoder_output, src_mask, tgt_mask, params, h=H)
    out = jax.block_until_ready(out)

    ref = _ref_decoder_block(x, encoder_output, src_mask, tgt_mask, params, h=H)
    assert out.shape == (B, S, D)
    # Tolerance allows for the EUP approximate reciprocal in the softmax.
    assert jnp.allclose(out, ref, atol=1e-2, rtol=1e-2), "mismatch vs reference"

    print("KERNEL_OK")
</pallas_src>

<mosaic_0001>
module attributes {stable_mosaic.version = 11 : i64} {
  func.func @_decoder_block_kernel(%arg0: i32, %arg1: memref<1x8x128xf32, #tpu.memory_space<vmem>>, %arg2: memref<1x8x128xf32, #tpu.memory_space<vmem>>, %arg3: memref<8x8xf32, #tpu.memory_space<vmem>>, %arg4: memref<8x8xf32, #tpu.memory_space<vmem>>, %arg5: memref<4x128x32xf32, #tpu.memory_space<vmem>>, %arg6: memref<4x128x32xf32, #tpu.memory_space<vmem>>, %arg7: memref<4x128x32xf32, #tpu.memory_space<vmem>>, %arg8: memref<4x32x128xf32, #tpu.memory_space<vmem>>, %arg9: memref<4x128x32xf32, #tpu.memory_space<vmem>>, %arg10: memref<4x128x32xf32, #tpu.memory_space<vmem>>, %arg11: memref<4x128x32xf32, #tpu.memory_space<vmem>>, %arg12: memref<4x32x128xf32, #tpu.memory_space<vmem>>, %arg13: memref<128x256xf32, #tpu.memory_space<vmem>>, %arg14: memref<1x256xf32, #tpu.memory_space<vmem>>, %arg15: memref<256x128xf32, #tpu.memory_space<vmem>>, %arg16: memref<1x128xf32, #tpu.memory_space<vmem>>, %arg17: memref<1x128xf32, #tpu.memory_space<vmem>>, %arg18: memref<1x128xf32, #tpu.memory_space<vmem>>, %arg19: memref<1x128xf32, #tpu.memory_space<vmem>>, %arg20: memref<1x128xf32, #tpu.memory_space<vmem>>, %arg21: memref<1x128xf32, #tpu.memory_space<vmem>>, %arg22: memref<1x128xf32, #tpu.memory_space<vmem>>, %arg23: memref<1x8x128xf32, #tpu.memory_space<vmem>>) attributes {dimension_semantics = [#tpu.dimension_semantics<parallel>], iteration_bounds = array<i64: 2>, scalar_prefetch = 0 : i64, scratch_operands = 0 : i64, tpu.core_type = #tpu.core_type<tc>, window_params = [{transform_indices = @transform_0, window_bounds = array<i64: 1, 8, 128>}, {transform_indices = @transform_1, window_bounds = array<i64: 1, 8, 128>}, {pipeline_mode = #tpu.pipeline_mode<synchronous>, transform_indices = @transform_2, window_bounds = array<i64: 8, 8>}, {pipeline_mode = #tpu.pipeline_mode<synchronous>, transform_indices = @transform_3, window_bounds = array<i64: 8, 8>}, {pipeline_mode = #tpu.pipeline_mode<synchronous>, transform_indices = @transform_4, window_bounds = array<i64: 4, 128, 32>}, {pipeline_mode = #tpu.pipeline_mode<synchronous>, transform_indices = @transform_5, window_bounds = array<i64: 4, 128, 32>}, {pipeline_mode = #tpu.pipeline_mode<synchronous>, transform_indices = @transform_6, window_bounds = array<i64: 4, 128, 32>}, {pipeline_mode = #tpu.pipeline_mode<synchronous>, transform_indices = @transform_7, window_bounds = array<i64: 4, 32, 128>}, {pipeline_mode = #tpu.pipeline_mode<synchronous>, transform_indices = @transform_8, window_bounds = array<i64: 4, 128, 32>}, {pipeline_mode = #tpu.pipeline_mode<synchronous>, transform_indices = @transform_9, window_bounds = array<i64: 4, 128, 32>}, {pipeline_mode = #tpu.pipeline_mode<synchronous>, transform_indices = @transform_10, window_bounds = array<i64: 4, 128, 32>}, {pipeline_mode = #tpu.pipeline_mode<synchronous>, transform_indices = @transform_11, window_bounds = array<i64: 4, 32, 128>}, {pipeline_mode = #tpu.pipeline_mode<synchronous>, transform_indices = @transform_12, window_bounds = array<i64: 128, 256>}, {pipeline_mode = #tpu.pipeline_mode<synchronous>, transform_indices = @transform_13, window_bounds = array<i64: 1, 256>}, {pipeline_mode = #tpu.pipeline_mode<synchronous>, transform_indices = @transform_14, window_bounds = array<i64: 256, 128>}, {pipeline_mode = #tpu.pipeline_mode<synchronous>, transform_indices = @transform_15, window_bounds = array<i64: 1, 128>}, {pipeline_mode = #tpu.pipeline_mode<synchronous>, transform_indices = @transform_16, window_bounds = array<i64: 1, 128>}, {pipeline_mode = #tpu.pipeline_mode<synchronous>, transform_indices = @transform_17, window_bounds = array<i64: 1, 128>}, {pipeline_mode = #tpu.pipeline_mode<synchronous>, transform_indices = @transform_18, window_bounds = array<i64: 1, 128>}, {pipeline_mode = #tpu.pipeline_mode<synchronous>, transform_indices = @transform_19, window_bounds = array<i64: 1, 128>}, {pipeline_mode = #tpu.pipeline_mode<synchronous>, transform_indices = @transform_20, window_bounds = array<i64: 1, 128>}, {pipeline_mode = #tpu.pipeline_mode<synchronous>, transform_indices = @transform_21, window_bounds = array<i64: 1, 128>}, {transform_indices = @transform_22, window_bounds = array<i64: 1, 8, 128>}]} {
    %c0 = arith.constant 0 : index
    %c0_0 = arith.constant 0 : index
    %c0_1 = arith.constant 0 : index
    %0 = vector.load %arg1[%c0, %c0_0, %c0_1] : memref<1x8x128xf32, #tpu.memory_space<vmem>>, vector<1x8x128xf32>
    %1 = vector.shape_cast %0 : vector<1x8x128xf32> to vector<8x128xf32>
    %c0_2 = arith.constant 0 : index
    %c0_3 = arith.constant 0 : index
    %c0_4 = arith.constant 0 : index
    %2 = vector.load %arg2[%c0_2, %c0_3, %c0_4] : memref<1x8x128xf32, #tpu.memory_space<vmem>>, vector<1x8x128xf32>
    %3 = vector.shape_cast %2 : vector<1x8x128xf32> to vector<8x128xf32>
    %c0_5 = arith.constant 0 : index
    %c0_6 = arith.constant 0 : index
    %4 = vector.load %arg17[%c0_5, %c0_6] : memref<1x128xf32, #tpu.memory_space<vmem>>, vector<1x128xf32>
    %c0_7 = arith.constant 0 : index
    %c0_8 = arith.constant 0 : index
    %5 = vector.load %arg18[%c0_7, %c0_8] : memref<1x128xf32, #tpu.memory_space<vmem>>, vector<1x128xf32>
    %cst = arith.constant dense<0.000000e+00> : vector<8xf32>
    %6 = vector.multi_reduction <add>, %1, %cst [1] : vector<8x128xf32> to vector<8xf32>
    %7 = vector.shape_cast %6 : vector<8xf32> to vector<8x1xf32>
    %cst_9 = arith.constant 1.280000e+02 : f32
    %8 = vector.broadcast %cst_9 : f32 to vector<8x1xf32>
    %9 = arith.divf %7, %8 : vector<8x1xf32>
    %10 = vector.broadcast %9 : vector<8x1xf32> to vector<8x128xf32>
    %11 = arith.subf %1, %10 : vector<8x128xf32>
    %12 = arith.mulf %11, %11 : vector<8x128xf32>
    %cst_10 = arith.constant dense<0.000000e+00> : vector<8xf32>
    %13 = vector.multi_reduction <add>, %12, %cst_10 [1] : vector<8x128xf32> to vector<8xf32>
    %14 = vector.shape_cast %13 : vector<8xf32> to vector<8x1xf32>
    %cst_11 = arith.constant 0.00787401571 : f32
    %15 = vector.broadcast %cst_11 : f32 to vector<8x1xf32>
    %16 = arith.mulf %14, %15 : vector<8x1xf32>
    %17 = math.sqrt %16 : vector<8x1xf32>
    %18 = vector.broadcast %9 : vector<8x1xf32> to vector<8x128xf32>
    %19 = arith.subf %1, %18 : vector<8x128xf32>
    %20 = vector.broadcast %4 : vector<1x128xf32> to vector<8x128xf32>
    %21 = arith.mulf %20, %19 : vector<8x128xf32>
    %cst_12 = arith.constant 9.99999997E-7 : f32
    %22 = vector.broadcast %cst_12 : f32 to vector<8x1xf32>
    %23 = arith.addf %17, %22 : vector<8x1xf32>
    %24 = vector.broadcast %23 : vector<8x1xf32> to vector<8x128xf32>
    %25 = arith.divf %21, %24 : vector<8x128xf32>
    %26 = vector.broadcast %5 : vector<1x128xf32> to vector<8x128xf32>
    %27 = arith.addf %25, %26 : vector<8x128xf32>
    %c0_13 = arith.constant 0 : index
    %c0_14 = arith.constant 0 : index
    %28 = vector.load %arg3[%c0_13, %c0_14] : memref<8x8xf32, #tpu.memory_space<vmem>>, vector<8x8xf32>
    %c0_15 = arith.constant 0 : index
    %c0_16 = arith.constant 0 : index
    %c0_17 = arith.constant 0 : index
    %29 = vector.load %arg5[%c0_15, %c0_16, %c0_17] : memref<4x128x32xf32, #tpu.memory_space<vmem>>, vector<4x128x32xf32>
    %c0_18 = arith.constant 0 : index
    %c0_19 = arith.constant 0 : index
    %c0_20 = arith.constant 0 : index
    %30 = vector.load %arg6[%c0_18, %c0_19, %c0_20] : memref<4x128x32xf32, #tpu.memory_space<vmem>>, vector<4x128x32xf32>
    %c0_21 = arith.constant 0 : index
    %c0_22 = arith.constant 0 : index
    %c0_23 = arith.constant 0 : index
    %31 = vector.load %arg7[%c0_21, %c0_22, %c0_23] : memref<4x128x32xf32, #tpu.memory_space<vmem>>, vector<4x128x32xf32>
    %c0_24 = arith.constant 0 : index
    %c0_25 = arith.constant 0 : index
    %c0_26 = arith.constant 0 : index
    %32 = vector.load %arg8[%c0_24, %c0_25, %c0_26] : memref<4x32x128xf32, #tpu.memory_space<vmem>>, vector<4x32x128xf32>
    %33 = vector.shape_cast %27 : vector<8x128xf32> to vector<1x8x128xf32>
    %34 = vector.shape_cast %33 : vector<1x8x128xf32> to vector<1x8x128xf32>
    %35 = vector.broadcast %34 : vector<1x8x128xf32> to vector<4x8x128xf32>
    %36 = vector.shape_cast %27 : vector<8x128xf32> to vector<1x8x128xf32>
    %37 = vector.shape_cast %36 : vector<1x8x128xf32> to vector<1x8x128xf32>
    %38 = vector.broadcast %37 : vector<1x8x128xf32> to vector<4x8x128xf32>
    %cst_27 = arith.constant dense<0.000000e+00> : vector<4x8x32xf32>
    %39 = tpu.matmul %35, %29, %cst_27 {dimension_numbers = #tpu.dot_dimension_numbers<[2], [1], [1], [2], [0, 0, 0, 1, 1, 2], [0], [0]>} : vector<4x8x128xf32>, vector<4x128x32xf32>, vector<4x8x32xf32> -> vector<4x8x32xf32>
    %cst_28 = arith.constant 0.176776692 : f32
    %40 = vector.broadcast %cst_28 : f32 to vector<4x8x32xf32>
    %41 = arith.mulf %39, %40 : vector<4x8x32xf32>
    %cst_29 = arith.constant dense<0.000000e+00> : vector<4x8x32xf32>
    %42 = tpu.matmul %38, %30, %cst_29 {dimension_numbers = #tpu.dot_dimension_numbers<[2], [1], [1], [2], [0, 0, 0, 1, 1, 2], [0], [0]>} : vector<4x8x128xf32>, vector<4x128x32xf32>, vector<4x8x32xf32> -> vector<4x8x32xf32>
    %cst_30 = arith.constant dense<0.000000e+00> : vector<4x8x32xf32>
    %43 = tpu.matmul %38, %31, %cst_30 {dimension_numbers = #tpu.dot_dimension_numbers<[2], [1], [1], [2], [0, 0, 0, 1, 1, 2], [0], [0]>} : vector<4x8x128xf32>, vector<4x128x32xf32>, vector<4x8x32xf32> -> vector<4x8x32xf32>
    %cst_31 = arith.constant dense<0.000000e+00> : vector<4x8x8xf32>
    %44 = tpu.matmul %41, %42, %cst_31 {dimension_numbers = #tpu.dot_dimension_numbers<[2], [2], [1], [1], [0, 0, 0, 1, 1, 1], [0], [0]>} : vector<4x8x32xf32>, vector<4x8x32xf32>, vector<4x8x8xf32> -> vector<4x8x8xf32>
    %45 = vector.shape_cast %28 : vector<8x8xf32> to vector<1x8x8xf32>
    %46 = vector.broadcast %45 : vector<1x8x8xf32> to vector<4x8x8xf32>
    %47 = arith.addf %44, %46 : vector<4x8x8xf32>
    %cst_32 = arith.constant dense<0xFF800000> : vector<4x8xf32>
    %48 = vector.multi_reduction <maximumf>, %47, %cst_32 [2] : vector<4x8x8xf32> to vector<4x8xf32>
    %49 = vector.shape_cast %48 : vector<4x8xf32> to vector<4x8x1xf32>
    %50 = vector.broadcast %49 : vector<4x8x1xf32> to vector<4x8x8xf32>
    %51 = arith.subf %47, %50 : vector<4x8x8xf32>
    %52 = math.exp %51 : vector<4x8x8xf32>
    %cst_33 = arith.constant dense<0.000000e+00> : vector<4x8xf32>
    %53 = vector.multi_reduction <add>, %52, %cst_33 [2] : vector<4x8x8xf32> to vector<4x8xf32>
    %54 = vector.shape_cast %53 : vector<4x8xf32> to vector<4x8x1xf32>
    %55 = tpu.reciprocal %54 {approx = true} : vector<4x8x1xf32> -> vector<4x8x1xf32>
    %56 = vector.broadcast %55 : vector<4x8x1xf32> to vector<4x8x8xf32>
    %57 = arith.mulf %52, %56 : vector<4x8x8xf32>
    %cst_34 = arith.constant dense<0.000000e+00> : vector<4x8x32xf32>
    %58 = tpu.matmul %57, %43, %cst_34 {dimension_numbers = #tpu.dot_dimension_numbers<[2], [1], [1], [2], [0, 0, 0, 1, 1, 2], [0], [0]>} : vector<4x8x8xf32>, vector<4x8x32xf32>, vector<4x8x32xf32> -> vector<4x8x32xf32>
    %cst_35 = arith.constant dense<0.000000e+00> : vector<4x8x128xf32>
    %59 = tpu.matmul %58, %32, %cst_35 {dimension_numbers = #tpu.dot_dimension_numbers<[2], [1], [1], [2], [0, 0, 0, 1, 1, 2], [0], [0]>} : vector<4x8x32xf32>, vector<4x32x128xf32>, vector<4x8x128xf32> -> vector<4x8x128xf32>
    %cst_36 = arith.constant dense<0.000000e+00> : vector<8x128xf32>
    %60 = vector.multi_reduction <add>, %59, %cst_36 [0] : vector<4x8x128xf32> to vector<8x128xf32>
    %61 = arith.addf %1, %60 : vector<8x128xf32>
    %c0_37 = arith.constant 0 : index
    %c0_38 = arith.constant 0 : index
    %62 = vector.load %arg19[%c0_37, %c0_38] : memref<1x128xf32, #tpu.memory_space<vmem>>, vector<1x128xf32>
    %c0_39 = arith.constant 0 : index
    %c0_40 = arith.constant 0 : index
    %63 = vector.load %arg20[%c0_39, %c0_40] : memref<1x128xf32, #tpu.memory_space<vmem>>, vector<1x128xf32>
    %cst_41 = arith.constant dense<0.000000e+00> : vector<8xf32>
    %64 = vector.multi_reduction <add>, %61, %cst_41 [1] : vector<8x128xf32> to vector<8xf32>
    %65 = vector.shape_cast %64 : vector<8xf32> to vector<8x1xf32>
    %cst_42 = arith.constant 1.280000e+02 : f32
    %66 = vector.broadcast %cst_42 : f32 to vector<8x1xf32>
    %67 = arith.divf %65, %66 : vector<8x1xf32>
    %68 = vector.broadcast %67 : vector<8x1xf32> to vector<8x128xf32>
    %69 = arith.subf %61, %68 : vector<8x128xf32>
    %70 = arith.mulf %69, %69 : vector<8x128xf32>
    %cst_43 = arith.constant dense<0.000000e+00> : vector<8xf32>
    %71 = vector.multi_reduction <add>, %70, %cst_43 [1] : vector<8x128xf32> to vector<8xf32>
    %72 = vector.shape_cast %71 : vector<8xf32> to vector<8x1xf32>
    %cst_44 = arith.constant 0.00787401571 : f32
    %73 = vector.broadcast %cst_44 : f32 to vector<8x1xf32>
    %74 = arith.mulf %72, %73 : vector<8x1xf32>
    %75 = math.sqrt %74 : vector<8x1xf32>
    %76 = vector.broadcast %67 : vector<8x1xf32> to vector<8x128xf32>
    %77 = arith.subf %61, %76 : vector<8x128xf32>
    %78 = vector.broadcast %62 : vector<1x128xf32> to vector<8x128xf32>
    %79 = arith.mulf %78, %77 : vector<8x128xf32>
    %cst_45 = arith.constant 9.99999997E-7 : f32
    %80 = vector.broadcast %cst_45 : f32 to vector<8x1xf32>
    %81 = arith.addf %75, %80 : vector<8x1xf32>
    %82 = vector.broadcast %81 : vector<8x1xf32> to vector<8x128xf32>
    %83 = arith.divf %79, %82 : vector<8x128xf32>
    %84 = vector.broadcast %63 : vector<1x128xf32> to vector<8x128xf32>
    %85 = arith.addf %83, %84 : vector<8x128xf32>
    %c0_46 = arith.constant 0 : index
    %c0_47 = arith.constant 0 : index
    %86 = vector.load %arg4[%c0_46, %c0_47] : memref<8x8xf32, #tpu.memory_space<vmem>>, vector<8x8xf32>
    %c0_48 = arith.constant 0 : index
    %c0_49 = arith.constant 0 : index
    %c0_50 = arith.constant 0 : index
    %87 = vector.load %arg9[%c0_48, %c0_49, %c0_50] : memref<4x128x32xf32, #tpu.memory_space<vmem>>, vector<4x128x32xf32>
    %c0_51 = arith.constant 0 : index
    %c0_52 = arith.constant 0 : index
    %c0_53 = arith.constant 0 : index
    %88 = vector.load %arg10[%c0_51, %c0_52, %c0_53] : memref<4x128x32xf32, #tpu.memory_space<vmem>>, vector<4x128x32xf32>
    %c0_54 = arith.constant 0 : index
    %c0_55 = arith.constant 0 : index
    %c0_56 = arith.constant 0 : index
    %89 = vector.load %arg11[%c0_54, %c0_55, %c0_56] : memref<4x128x32xf32, #tpu.memory_space<vmem>>, vector<4x128x32xf32>
    %c0_57 = arith.constant 0 : index
    %c0_58 = arith.constant 0 : index
    %c0_59 = arith.constant 0 : index
    %90 = vector.load %arg12[%c0_57, %c0_58, %c0_59] : memref<4x32x128xf32, #tpu.memory_space<vmem>>, vector<4x32x128xf32>
    %91 = vector.shape_cast %85 : vector<8x128xf32> to vector<1x8x128xf32>
    %92 = vector.shape_cast %91 : vector<1x8x128xf32> to vector<1x8x128xf32>
    %93 = vector.broadcast %92 : vector<1x8x128xf32> to vector<4x8x128xf32>
    %94 = vector.shape_cast %3 : vector<8x128xf32> to vector<1x8x128xf32>
    %95 = vector.shape_cast %94 : vector<1x8x128xf32> to vector<1x8x128xf32>
    %96 = vector.broadcast %95 : vector<1x8x128xf32> to vector<4x8x128xf32>
    %cst_60 = arith.constant dense<0.000000e+00> : vector<4x8x32xf32>
    %97 = tpu.matmul %93, %87, %cst_60 {dimension_numbers = #tpu.dot_dimension_numbers<[2], [1], [1], [2], [0, 0, 0, 1, 1, 2], [0], [0]>} : vector<4x8x128xf32>, vector<4x128x32xf32>, vector<4x8x32xf32> -> vector<4x8x32xf32>
    %cst_61 = arith.constant 0.176776692 : f32
    %98 = vector.broadcast %cst_61 : f32 to vector<4x8x32xf32>
    %99 = arith.mulf %97, %98 : vector<4x8x32xf32>
    %cst_62 = arith.constant dense<0.000000e+00> : vector<4x8x32xf32>
    %100 = tpu.matmul %96, %88, %cst_62 {dimension_numbers = #tpu.dot_dimension_numbers<[2], [1], [1], [2], [0, 0, 0, 1, 1, 2], [0], [0]>} : vector<4x8x128xf32>, vector<4x128x32xf32>, vector<4x8x32xf32> -> vector<4x8x32xf32>
    %cst_63 = arith.constant dense<0.000000e+00> : vector<4x8x32xf32>
    %101 = tpu.matmul %96, %89, %cst_63 {dimension_numbers = #tpu.dot_dimension_numbers<[2], [1], [1], [2], [0, 0, 0, 1, 1, 2], [0], [0]>} : vector<4x8x128xf32>, vector<4x128x32xf32>, vector<4x8x32xf32> -> vector<4x8x32xf32>
    %cst_64 = arith.constant dense<0.000000e+00> : vector<4x8x8xf32>
    %102 = tpu.matmul %99, %100, %cst_64 {dimension_numbers = #tpu.dot_dimension_numbers<[2], [2], [1], [1], [0, 0, 0, 1, 1, 1], [0], [0]>} : vector<4x8x32xf32>, vector<4x8x32xf32>, vector<4x8x8xf32> -> vector<4x8x8xf32>
    %103 = vector.shape_cast %86 : vector<8x8xf32> to vector<1x8x8xf32>
    %104 = vector.broadcast %103 : vector<1x8x8xf32> to vector<4x8x8xf32>
    %105 = arith.addf %102, %104 : vector<4x8x8xf32>
    %cst_65 = arith.constant dense<0xFF800000> : vector<4x8xf32>
    %106 = vector.multi_reduction <maximumf>, %105, %cst_65 [2] : vector<4x8x8xf32> to vector<4x8xf32>
    %107 = vector.shape_cast %106 : vector<4x8xf32> to vector<4x8x1xf32>
    %108 = vector.broadcast %107 : vector<4x8x1xf32> to vector<4x8x8xf32>
    %109 = arith.subf %105, %108 : vector<4x8x8xf32>
    %110 = math.exp %109 : vector<4x8x8xf32>
    %cst_66 = arith.constant dense<0.000000e+00> : vector<4x8xf32>
    %111 = vector.multi_reduction <add>, %110, %cst_66 [2] : vector<4x8x8xf32> to vector<4x8xf32>
    %112 = vector.shape_cast %111 : vector<4x8xf32> to vector<4x8x1xf32>
    %113 = tpu.reciprocal %112 {approx = true} : vector<4x8x1xf32> -> vector<4x8x1xf32>
    %114 = vector.broadcast %113 : vector<4x8x1xf32> to vector<4x8x8xf32>
    %115 = arith.mulf %110, %114 : vector<4x8x8xf32>
    %cst_67 = arith.constant dense<0.000000e+00> : vector<4x8x32xf32>
    %116 = tpu.matmul %115, %101, %cst_67 {dimension_numbers = #tpu.dot_dimension_numbers<[2], [1], [1], [2], [0, 0, 0, 1, 1, 2], [0], [0]>} : vector<4x8x8xf32>, vector<4x8x32xf32>, vector<4x8x32xf32> -> vector<4x8x32xf32>
    %cst_68 = arith.constant dense<0.000000e+00> : vector<4x8x128xf32>
    %117 = tpu.matmul %116, %90, %cst_68 {dimension_numbers = #tpu.dot_dimension_numbers<[2], [1], [1], [2], [0, 0, 0, 1, 1, 2], [0], [0]>} : vector<4x8x32xf32>, vector<4x32x128xf32>, vector<4x8x128xf32> -> vector<4x8x128xf32>
    %cst_69 = arith.constant dense<0.000000e+00> : vector<8x128xf32>
    %118 = vector.multi_reduction <add>, %117, %cst_69 [0] : vector<4x8x128xf32> to vector<8x128xf32>
    %119 = arith.addf %61, %118 : vector<8x128xf32>
    %c0_70 = arith.constant 0 : index
    %c0_71 = arith.constant 0 : index
    %120 = vector.load %arg21[%c0_70, %c0_71] : memref<1x128xf32, #tpu.memory_space<vmem>>, vector<1x128xf32>
    %c0_72 = arith.constant 0 : index
    %c0_73 = arith.constant 0 : index
    %121 = vector.load %arg22[%c0_72, %c0_73] : memref<1x128xf32, #tpu.memory_space<vmem>>, vector<1x128xf32>
    %cst_74 = arith.constant dense<0.000000e+00> : vector<8xf32>
    %122 = vector.multi_reduction <add>, %119, %cst_74 [1] : vector<8x128xf32> to vector<8xf32>
    %123 = vector.shape_cast %122 : vector<8xf32> to vector<8x1xf32>
    %cst_75 = arith.constant 1.280000e+02 : f32
    %124 = vector.broadcast %cst_75 : f32 to vector<8x1xf32>
    %125 = arith.divf %123, %124 : vector<8x1xf32>
    %126 = vector.broadcast %125 : vector<8x1xf32> to vector<8x128xf32>
    %127 = arith.subf %119, %126 : vector<8x128xf32>
    %128 = arith.mulf %127, %127 : vector<8x128xf32>
    %cst_76 = arith.constant dense<0.000000e+00> : vector<8xf32>
    %129 = vector.multi_reduction <add>, %128, %cst_76 [1] : vector<8x128xf32> to vector<8xf32>
    %130 = vector.shape_cast %129 : vector<8xf32> to vector<8x1xf32>
    %cst_77 = arith.constant 0.00787401571 : f32
    %131 = vector.broadcast %cst_77 : f32 to vector<8x1xf32>
    %132 = arith.mulf %130, %131 : vector<8x1xf32>
    %133 = math.sqrt %132 : vector<8x1xf32>
    %134 = vector.broadcast %125 : vector<8x1xf32> to vector<8x128xf32>
    %135 = arith.subf %119, %134 : vector<8x128xf32>
    %136 = vector.broadcast %120 : vector<1x128xf32> to vector<8x128xf32>
    %137 = arith.mulf %136, %135 : vector<8x128xf32>
    %cst_78 = arith.constant 9.99999997E-7 : f32
    %138 = vector.broadcast %cst_78 : f32 to vector<8x1xf32>
    %139 = arith.addf %133, %138 : vector<8x1xf32>
    %140 = vector.broadcast %139 : vector<8x1xf32> to vector<8x128xf32>
    %141 = arith.divf %137, %140 : vector<8x128xf32>
    %142 = vector.broadcast %121 : vector<1x128xf32> to vector<8x128xf32>
    %143 = arith.addf %141, %142 : vector<8x128xf32>
    %c0_79 = arith.constant 0 : index
    %c0_80 = arith.constant 0 : index
    %144 = vector.load %arg13[%c0_79, %c0_80] : memref<128x256xf32, #tpu.memory_space<vmem>>, vector<128x256xf32>
    %cst_81 = arith.constant dense<0.000000e+00> : vector<8x256xf32>
    %145 = tpu.matmul %143, %144, %cst_81 {dimension_numbers = #tpu.dot_dimension_numbers<[1], [0], [0], [1], [0, 0, 1, 1], [], []>} : vector<8x128xf32>, vector<128x256xf32>, vector<8x256xf32> -> vector<8x256xf32>
    %c0_82 = arith.constant 0 : index
    %c0_83 = arith.constant 0 : index
    %146 = vector.load %arg14[%c0_82, %c0_83] : memref<1x256xf32, #tpu.memory_space<vmem>>, vector<1x256xf32>
    %147 = vector.broadcast %146 : vector<1x256xf32> to vector<8x256xf32>
    %148 = arith.addf %145, %147 : vector<8x256xf32>
    %cst_84 = arith.constant 0.000000e+00 : f32
    %149 = vector.broadcast %cst_84 : f32 to vector<8x256xf32>
    %150 = arith.maximumf %148, %149 : vector<8x256xf32>
    %c0_85 = arith.constant 0 : index
    %c0_86 = arith.constant 0 : index
    %151 = vector.load %arg15[%c0_85, %c0_86] : memref<256x128xf32, #tpu.memory_space<vmem>>, vector<256x128xf32>
    %cst_87 = arith.constant dense<0.000000e+00> : vector<8x128xf32>
    %152 = tpu.matmul %150, %151, %cst_87 {dimension_numbers = #tpu.dot_dimension_numbers<[1], [0], [0], [1], [0, 0, 1, 1], [], []>} : vector<8x256xf32>, vector<256x128xf32>, vector<8x128xf32> -> vector<8x128xf32>
    %153 = arith.addf %119, %152 : vector<8x128xf32>
    %c0_88 = arith.constant 0 : index
    %c0_89 = arith.constant 0 : index
    %154 = vector.load %arg16[%c0_88, %c0_89] : memref<1x128xf32, #tpu.memory_space<vmem>>, vector<1x128xf32>
    %155 = vector.broadcast %154 : vector<1x128xf32> to vector<8x128xf32>
    %156 = arith.addf %153, %155 : vector<8x128xf32>
    %c0_90 = arith.constant 0 : index
    %c0_91 = arith.constant 0 : index
    %c0_92 = arith.constant 0 : index
    %157 = vector.load %arg23[%c0_90, %c0_91, %c0_92] : memref<1x8x128xf32, #tpu.memory_space<vmem>>, vector<1x8x128xf32>
    %158 = vector.shape_cast %157 : vector<1x8x128xf32> to vector<8x128xf32>
    %159 = vector.shape_cast %156 : vector<8x128xf32> to vector<1x8x128xf32>
    tpu.vector_store %arg23[%c0_90, %c0_91, %c0_92], %159 {strides = array<i32>} : memref<1x8x128xf32, #tpu.memory_space<vmem>>, vector<1x8x128xf32>,
    return
  }
  func.func @transform_0(%arg0: i32) -> (i32, i32, i32) {
    %c0_i32 = arith.constant 0 : i32
    %c0_i32_0 = arith.constant 0 : i32
    %c0_i32_1 = arith.constant 0 : i32
    return %arg0, %c0_i32, %c0_i32_0 : i32, i32, i32
  }
  func.func @transform_1(%arg0: i32) -> (i32, i32, i32) {
    %c0_i32 = arith.constant 0 : i32
    %c0_i32_0 = arith.constant 0 : i32
    %c0_i32_1 = arith.constant 0 : i32
    return %arg0, %c0_i32, %c0_i32_0 : i32, i32, i32
  }
  func.func @transform_2(%arg0: i32) -> (i32, i32) {
    %c0_i32 = arith.constant 0 : i32
    %c0_i32_0 = arith.constant 0 : i32
    %c0_i32_1 = arith.constant 0 : i32
    return %c0_i32, %c0_i32_0 : i32, i32
  }
  func.func @transform_3(%arg0: i32) -> (i32, i32) {
    %c0_i32 = arith.constant 0 : i32
    %c0_i32_0 = arith.constant 0 : i32
    %c0_i32_1 = arith.constant 0 : i32
    return %c0_i32, %c0_i32_0 : i32, i32
  }
  func.func @transform_4(%arg0: i32) -> (i32, i32, i32) {
    %c0_i32 = arith.constant 0 : i32
    %c0_i32_0 = arith.constant 0 : i32
    %c0_i32_1 = arith.constant 0 : i32
    %c0_i32_2 = arith.constant 0 : i32
    return %c0_i32, %c0_i32_0, %c0_i32_1 : i32, i32, i32
  }
  func.func @transform_5(%arg0: i32) -> (i32, i32, i32) {
    %c0_i32 = arith.constant 0 : i32
    %c0_i32_0 = arith.constant 0 : i32
    %c0_i32_1 = arith.constant 0 : i32
    %c0_i32_2 = arith.constant 0 : i32
    return %c0_i32, %c0_i32_0, %c0_i32_1 : i32, i32, i32
  }
  func.func @transform_6(%arg0: i32) -> (i32, i32, i32) {
    %c0_i32 = arith.constant 0 : i32
    %c0_i32_0 = arith.constant 0 : i32
    %c0_i32_1 = arith.constant 0 : i32
    %c0_i32_2 = arith.constant 0 : i32
    return %c0_i32, %c0_i32_0, %c0_i32_1 : i32, i32, i32
  }
  func.func @transform_7(%arg0: i32) -> (i32, i32, i32) {
    %c0_i32 = arith.constant 0 : i32
    %c0_i32_0 = arith.constant 0 : i32
    %c0_i32_1 = arith.constant 0 : i32
    %c0_i32_2 = arith.constant 0 : i32
    return %c0_i32, %c0_i32_0, %c0_i32_1 : i32, i32, i32
  }
  func.func @transform_8(%arg0: i32) -> (i32, i32, i32) {
    %c0_i32 = arith.constant 0 : i32
    %c0_i32_0 = arith.constant 0 : i32
    %c0_i32_1 = arith.constant 0 : i32
    %c0_i32_2 = arith.constant 0 : i32
    return %c0_i32, %c0_i32_0, %c0_i32_1 : i32, i32, i32
  }
  func.func @transform_9(%arg0: i32) -> (i32, i32, i32) {
    %c0_i32 = arith.constant 0 : i32
    %c0_i32_0 = arith.constant 0 : i32
    %c0_i32_1 = arith.constant 0 : i32
    %c0_i32_2 = arith.constant 0 : i32
    return %c0_i32, %c0_i32_0, %c0_i32_1 : i32, i32, i32
  }
  func.func @transform_10(%arg0: i32) -> (i32, i32, i32) {
    %c0_i32 = arith.constant 0 : i32
    %c0_i32_0 = arith.constant 0 : i32
    %c0_i32_1 = arith.constant 0 : i32
    %c0_i32_2 = arith.constant 0 : i32
    return %c0_i32, %c0_i32_0, %c0_i32_1 : i32, i32, i32
  }
  func.func @transform_11(%arg0: i32) -> (i32, i32, i32) {
    %c0_i32 = arith.constant 0 : i32
    %c0_i32_0 = arith.constant 0 : i32
    %c0_i32_1 = arith.constant 0 : i32
    %c0_i32_2 = arith.constant 0 : i32
    return %c0_i32, %c0_i32_0, %c0_i32_1 : i32, i32, i32
  }
  func.func @transform_12(%arg0: i32) -> (i32, i32) {
    %c0_i32 = arith.constant 0 : i32
    %c0_i32_0 = arith.constant 0 : i32
    %c0_i32_1 = arith.constant 0 : i32
    return %c0_i32, %c0_i32_0 : i32, i32
  }
  func.func @transform_13(%arg0: i32) -> (i32, i32) {
    %c0_i32 = arith.constant 0 : i32
    %c0_i32_0 = arith.constant 0 : i32
    %c0_i32_1 = arith.constant 0 : i32
    return %c0_i32, %c0_i32_0 : i32, i32
  }
  func.func @transform_14(%arg0: i32) -> (i32, i32) {
    %c0_i32 = arith.constant 0 : i32
    %c0_i32_0 = arith.constant 0 : i32
    %c0_i32_1 = arith.constant 0 : i32
    return %c0_i32, %c0_i32_0 : i32, i32
  }
  func.func @transform_15(%arg0: i32) -> (i32, i32) {
    %c0_i32 = arith.constant 0 : i32
    %c0_i32_0 = arith.constant 0 : i32
    %c0_i32_1 = arith.constant 0 : i32
    return %c0_i32, %c0_i32_0 : i32, i32
  }
  func.func @transform_16(%arg0: i32) -> (i32, i32) {
    %c0_i32 = arith.constant 0 : i32
    %c0_i32_0 = arith.constant 0 : i32
    %c0_i32_1 = arith.constant 0 : i32
    return %c0_i32, %c0_i32_0 : i32, i32
  }
  func.func @transform_17(%arg0: i32) -> (i32, i32) {
    %c0_i32 = arith.constant 0 : i32
    %c0_i32_0 = arith.constant 0 : i32
    %c0_i32_1 = arith.constant 0 : i32
    return %c0_i32, %c0_i32_0 : i32, i32
  }
  func.func @transform_18(%arg0: i32) -> (i32, i32) {
    %c0_i32 = arith.constant 0 : i32
    %c0_i32_0 = arith.constant 0 : i32
    %c0_i32_1 = arith.constant 0 : i32
    return %c0_i32, %c0_i32_0 : i32, i32
  }
  func.func @transform_19(%arg0: i32) -> (i32, i32) {
    %c0_i32 = arith.constant 0 : i32
    %c0_i32_0 = arith.constant 0 : i32
    %c0_i32_1 = arith.constant 0 : i32
    return %c0_i32, %c0_i32_0 : i32, i32
  }
  func.func @transform_20(%arg0: i32) -> (i32, i32) {
    %c0_i32 = arith.constant 0 : i32
    %c0_i32_0 = arith.constant 0 : i32
    %c0_i32_1 = arith.constant 0 : i32
    return %c0_i32, %c0_i32_0 : i32, i32
  }
  func.func @transform_21(%arg0: i32) -> (i32, i32) {
    %c0_i32 = arith.constant 0 : i32
    %c0_i32_0 = arith.constant 0 : i32
    %c0_i32_1 = arith.constant 0 : i32
    return %c0_i32, %c0_i32_0 : i32, i32
  }
  func.func @transform_22(%arg0: i32) -> (i32, i32, i32) {
    %c0_i32 = arith.constant 0 : i32
    %c0_i32_0 = arith.constant 0 : i32
    %c0_i32_1 = arith.constant 0 : i32
    return %arg0, %c0_i32, %c0_i32_0 : i32, i32, i32
  }
}

</mosaic_0001>

<bundles_post_ra>
// kernel: tpu_custom_call.1
= control target key start
LH: loop header
LB: loop body
LE: loop exit
PB: predicated region body
PF: predicated region fallthrough
CT: control target
= control target key end

     0   :  { %s9143_s0 = inlined_call_operand.vmem [shape: f32[2,8,128], index: 0, kind: input, shape index: {}]   ;;  %s9144_s1 = inlined_call_operand.vmem [shape: f32[2,8,128], index: 1, kind: input, shape index: {}]   ;;  %s9145_s2 = inlined_call_operand.vmem [shape: f32[8,8], index: 2, kind: input, shape index: {}]   ;;  %s9146_s3 = inlined_call_operand.vmem [shape: f32[8,8], index: 3, kind: input, shape index: {}]   ;;  %s9147_s4 = inlined_call_operand.vmem [shape: f32[4,128,32], index: 4, kind: input, shape index: {}]   ;;  %s9148_s5 = inlined_call_operand.vmem [shape: f32[4,128,32], index: 5, kind: input, shape index: {}]   ;;  %s9149_s6 = inlined_call_operand.vmem [shape: f32[4,128,32], index: 6, kind: input, shape index: {}]   ;;  %s9150_s7 = inlined_call_operand.vmem [shape: f32[4,32,128], index: 7, kind: input, shape index: {}]   ;;  %s9151_s8 = inlined_call_operand.vmem [shape: f32[4,128,32], index: 8, kind: input, shape index: {}]   ;;  %s9152_s9 = inlined_call_operand.vmem [shape: f32[4,128,32], index: 9, kind: input, shape index: {}]   ;;  %s9153_s10 = inlined_call_operand.vmem [shape: f32[4,128,32], index: 10, kind: input, shape index: {}]   ;;  %s9154_s11 = inlined_call_operand.vmem [shape: f32[4,32,128], index: 11, kind: input, shape index: {}]   ;;  %s9155_s12 = inlined_call_operand.vmem [shape: f32[128,256], index: 12, kind: input, shape index: {}]   ;;  %s9156_s13 = inlined_call_operand.vmem [shape: f32[1,256], index: 13, kind: input, shape index: {}]   ;;  %s9157_s14 = inlined_call_operand.vmem [shape: f32[256,128], index: 14, kind: input, shape index: {}]   ;;  %s9158_s15 = inlined_call_operand.vmem [shape: f32[1,128], index: 15, kind: input, shape index: {}]   ;;  %s9159_s16 = inlined_call_operand.vmem [shape: f32[1,128], index: 16, kind: input, shape index: {}]   ;;  %s9160_s17 = inlined_call_operand.vmem [shape: f32[1,128], index: 17, kind: input, shape index: {}]   ;;  %s9161_s18 = inlined_call_operand.vmem [shape: f32[1,128], index: 18, kind: input, shape index: {}]   ;;  %s9162_s19 = inlined_call_operand.vmem [shape: f32[1,128], index: 19, kind: input, shape index: {}]   ;;  %s9163_s20 = inlined_call_operand.vmem [shape: f32[1,128], index: 20, kind: input, shape index: {}]   ;;  %s9164_s21 = inlined_call_operand.vmem [shape: f32[1,128], index: 21, kind: input, shape index: {}]   ;;  %s9165_s22 = inlined_call_operand.hbm [shape: f32[2,8,128], index: 22, kind: output, shape index: {}]  }
   0x1   :  { %9176 = sst [smem:[#allocation10_spill]] %s9143_s0 }
   0x2   :  { %9177 = sst [smem:[#allocation11_spill]] %s9144_s1 }
   0x3   :  { %9178 = sst [smem:[#allocation12_spill]] %s9145_s2 }
   0x4   :  { %9179 = sst [smem:[#allocation13_spill]] %s9146_s3 }
   0x5   :  { %9180 = sst [smem:[#allocation14_spill]] %s9147_s4 }
   0x6   :  { %9181 = sst [smem:[#allocation15_spill]] %s9148_s5 }
   0x7   :  { %9182 = sst [smem:[#allocation16_spill]] %s9149_s6 }
   0x8   :  { %9183 = sst [smem:[#allocation17_spill]] %s9150_s7 }
   0x9   :  { %9184 = sst [smem:[#allocation18_spill]] %s9151_s8 }
   0xa   :  { %9185 = sst [smem:[#allocation19_spill]] %s9159_s16 }
   0xb   :  { %27 = vsyncpa [#allocation3], 0 }
   0xc   :  { %29 = vsyncpa [#allocation3 + $0x1], 0  ;;  %s6934_s3 = smov 0   ;;  %s6936_s28 = smov 0  }
   0xd   :  { %s6938_s29 = smov 0   ;;  %s6940_s30 = smov 0  }
   0xe LB: > { %9186 = sst [smem:[#allocation5_spill]] %s6802_s3  ;;  %s6955_s4 = sadd.s32 4294967295, %s6814_s30   ;;  %s6814_s30 = sphi %s6940_s30, %s9206_s30   ;;  %s6810_s29 = sphi %s6938_s29, %s9208_s29   ;;  %s6806_s28 = sphi %s6936_s28, %s9210_s28   ;;  %s6802_s3 = sphi %s6934_s3, %s9209_s3  }
   0xf   : > { %9187 = sst [smem:[#allocation6_spill]] %s6810_s29  ;;  %s5095_s0 = sadd.s32 4294967294, %s6814_s30  }
  0x10   : > { %s6959_s23 = sadd.s32 1, %s6814_s30   ;;  %s514_s1 = sadd.s32 1, %s6810_s29 }
  0x11   : > { %9188 = sst [smem:[#allocation7_spill]] %s6959_s23  ;;  %s511_s5 = ssub.s32 %s6814_s30, %s6959_s23 }
  0x12   : > { %p524_p0 = scmp.ne.s32.totalorder %s6810_s29, %s6806_s28  ;;  %p512_p1 = scmp.eq.s32.totalorder %s511_s5, 0 }
  0x13   : > { %p525_p2 = scmp.eq.s32.totalorder %s6955_s4, 1  ;;  %p530_p3 = scmp.ne.s32.totalorder %s6806_s28, %s6802_s3 }
  0x14   : > { %p531_p4 = scmp.eq.s32.totalorder %s5095_s0, 1  ;;  %p5098_p7 = scmp.ge.s32.totalorder %s6814_s30, 1 }
  0x15   : > { %s6970_s24 = scalar_select %p512_p1, %s6810_s29, %s514_s1  }
  0x16   : > { %p6972_p5 = por %p525_p2, %p524_p0  ;;  %p6976_p6 = por %p531_p4, %p530_p3 }
  0x17   : > { %9189 = sst [smem:[#allocation8_spill]] %s6970_s24  ;;  %p623_p8 = scmp.lt.s32.totalorder %s6814_s30, 3 }
  0x18   : > { %s9191_s25 = scalar_select %p6976_p6, 1, 0 }
  0x19   : > { %p624_p9 = pnand %p5098_p7, %p623_p8 }
  0x1a   : > { %9192 = sst [smem:[#allocation9_spill]] %s9191_s25  ;;  %p688_p10 = scmp.lt.s32.totalorder (!%p624_p9), %s6955_s4, 1 }
  0x1b   : > { %627 = sbr.rel (%p624_p9) target bundleno = 3811 (0xee3), region = 108  ;;  %s9193_s1 = sld [smem:[#allocation10_spill]] (!%p624_p9) }
  0x1c   : > { %s9194_s0 = sld [smem:[#allocation14_spill]] (!%p624_p9) }
  0x1d   : > { %s9195_s16 = sld [smem:[#allocation19_spill]] (!%p624_p9) }
  0x1e   : > { %s9196_s23 = sld [smem:[#allocation15_spill]] (!%p624_p9) }
  0x1f   : > { %s9197_s25 = sld [smem:[#allocation16_spill]] (!%p624_p9) }
  0x20   : > { %s6984_s26 = scalar_select %p688_p10, %s6955_s4, 1  ;;  %v6816_v5 = vmov 0.0   ;;  %vm6817_vm0 = vmmov 0   ;;  %v5103_v49 = vld [vmem:[%s9160_s17] ss:$0 sm:$0xff]  ;;  %vm1786_vm3 = vcmask 261120  }
  0x21   : > { %5660 = vmatprep.subr.mxu0 %v6816_v5  ;;  %5695 = vmatprep.subr.mxu1 %v6816_v5  ;;  %s9198_s24 = sld [smem:[#allocation12_spill]]  ;;  %vm2091_vm4 = vcmask 64512  }
  0x22   : > { %s9169_s2 = sshll.u32 %s6984_s26, 3  ;;  %v749_v6 = vld [vmem:[%s9194_s0 + $0x78] sm:$0xff]  ;;  %v748_v8 = vld [vmem:[%s9194_s0 + $0x70] sm:$0xff]  ;;  %v747_v10 = vld [vmem:[%s9194_s0 + $0x68] sm:$0xff]  ;;  %5692 = vmatprep.mubr.msk.f32.mxu0 %vm6817_vm0, %v6816_v5  ;;  %5727 = vmatprep.mubr.msk.f32.mxu1 %vm6817_vm0, %v6816_v5  ;;  %s9199_s7 = sld [smem:[#allocation17_spill]] }
  0x23   : > { %s6992_s5 = scalar_lea.vmem %s9193_s1, %s9169_s2  ;;  %v765_v7 = vld [vmem:[%s9194_s0 + $0xf8] sm:$0xff]  ;;  %5661 = vmatpush3.msra.mxu0 %v749_v6  ;;  %v764_v9 = vld [vmem:[%s9194_s0 + $0xf0] sm:$0xff]  ;;  %v763_v11 = vld [vmem:[%s9194_s0 + $0xe8] sm:$0xff]  ;;  %s9200_s8 = sld [smem:[#allocation18_spill]] }
  0x24   : > { %v696_v0 = vld [vmem:[%s6992_s5] sm:$0xff]  ;;  %5696 = vmatpush3.msra.mxu1 %v765_v7  ;;  %5662 = vmatprep.subr.mxu0 %v6816_v5  ;;  %v745_v14 = vld [vmem:[%s9194_s0 + $0x58] sm:$0xff]  ;;  %v744_v16 = vld [vmem:[%s9194_s0 + $0x50] sm:$0xff]  ;;  %s9201_s27 = sshll.u32 %s6984_s26, 3  ;;  %s9203_s26 = sld [smem:[#allocation13_spill]] }
  0x25   : > { %700 = vadd.xlane.f32.xlu0 %v696_v0  ;;  %5697 = vmatprep.subr.mxu1 %v6816_v5  ;;  %v746_v12 = vld [vmem:[%s9194_s0 + $0x60] sm:$0xff]  ;;  %v761_v15 = vld [vmem:[%s9194_s0 + $0xd8] sm:$0xff]  ;;  %v760_v17 = vld [vmem:[%s9194_s0 + $0xd0] sm:$0xff] }
  0x26   : > { %5663 = vmatpush3.msra.mxu0 %v748_v8  ;;  %5698 = vmatpush3.msra.mxu1 %v764_v9  ;;  %v762_v13 = vld [vmem:[%s9194_s0 + $0xe0] sm:$0xff]  ;;  %v743_v18 = vld [vmem:[%s9194_s0 + $0x48] sm:$0xff]  ;;  %v741_v22 = vld [vmem:[%s9194_s0 + $0x38] sm:$0xff] }
  0x27   : > { %5664 = vmatprep.subr.mxu0 %v6816_v5  ;;  %5699 = vmatprep.subr.mxu1 %v6816_v5  ;;  %v759_v19 = vld [vmem:[%s9194_s0 + $0xc8] sm:$0xff]  ;;  %v742_v20 = vld [vmem:[%s9194_s0 + $0x40] sm:$0xff]  ;;  %v757_v23 = vld [vmem:[%s9194_s0 + $0xb8] sm:$0xff] }
  0x28   : > { %5665 = vmatpush3.msra.mxu0 %v747_v10  ;;  %5700 = vmatpush3.msra.mxu1 %v763_v11  ;;  %v758_v21 = vld [vmem:[%s9194_s0 + $0xc0] sm:$0xff]  ;;  %v740_v24 = vld [vmem:[%s9194_s0 + $0x30] sm:$0xff]  ;;  %v739_v26 = vld [vmem:[%s9194_s0 + $0x28] sm:$0xff] }
  0x29   : > { %5666 = vmatprep.subr.mxu0 %v6816_v5  ;;  %5701 = vmatprep.subr.mxu1 %v6816_v5  ;;  %v756_v25 = vld [vmem:[%s9194_s0 + $0xb0] sm:$0xff]  ;;  %v755_v27 = vld [vmem:[%s9194_s0 + $0xa8] sm:$0xff]  ;;  %v738_v28 = vld [vmem:[%s9194_s0 + $0x20] sm:$0xff] }
  0x2a   : > { %5667 = vmatpush3.msra.mxu0 %v746_v12  ;;  %5702 = vmatpush3.msra.mxu1 %v762_v13  ;;  %v754_v29 = vld [vmem:[%s9194_s0 + $0xa0] sm:$0xff]  ;;  %v737_v30 = vld [vmem:[%s9194_s0 + $0x18] sm:$0xff]  ;;  %v736_v32 = vld [vmem:[%s9194_s0 + $0x10] sm:$0xff] }
  0x2b   : > { %5668 = vmatprep.subr.mxu0 %v6816_v5  ;;  %5703 = vmatprep.subr.mxu1 %v6816_v5  ;;  %v753_v31 = vld [vmem:[%s9194_s0 + $0x98] sm:$0xff]  ;;  %v752_v33 = vld [vmem:[%s9194_s0 + $0x90] sm:$0xff]  ;;  %v735_v34 = vld [vmem:[%s9194_s0 + $0x8] sm:$0xff] }
  0x2c   : > { %5669 = vmatpush3.msra.mxu0 %v745_v14  ;;  %5704 = vmatpush3.msra.mxu1 %v761_v15  ;;  %v751_v35 = vld [vmem:[%s9194_s0 + $0x88] sm:$0xff]  ;;  %v734_v36 = vld [vmem:[%s9194_s0] sm:$0xff]  ;;  %v781_v52 = vld [vmem:[%s9194_s0 + $0x178] sm:$0xff] }
  0x2d   : > { %5670 = vmatprep.subr.mxu0 %v6816_v5  ;;  %5705 = vmatprep.subr.mxu1 %v6816_v5  ;;  %v750_v37 = vld [vmem:[%s9194_s0 + $0x80] sm:$0xff]  ;;  %v797_v53 = vld [vmem:[%s9194_s0 + $0x1f8] sm:$0xff]  ;;  %v780_v54 = vld [vmem:[%s9194_s0 + $0x170] sm:$0xff] }
  0x2e   : > { %5671 = vmatpush3.msra.mxu0 %v744_v16  ;;  %5706 = vmatpush3.msra.mxu1 %v760_v17  ;;  %v5102_v46 = vld [vmem:[%s9195_s16] ss:$0 sm:$0xff]  ;;  %v796_v55 = vld [vmem:[%s9194_s0 + $0x1f0] sm:$0xff]  ;;  %v779_v56 = vld [vmem:[%s9194_s0 + $0x168] sm:$0xff]  ;;  %s6818_s16 = smov [#allocation2]  }
  0x2f   : > { %5672 = vmatprep.subr.mxu0 %v6816_v5  ;;  %5707 = vmatprep.subr.mxu1 %v6816_v5  ;;  %v795_v57 = vld [vmem:[%s9194_s0 + $0x1e8] sm:$0xff]  ;;  %v778_v58 = vld [vmem:[%s9194_s0 + $0x160] sm:$0xff]  ;;  %v777_v60 = vld [vmem:[%s9194_s0 + $0x158] sm:$0xff]  ;;  %s6758_s2 = sshll.u32 %s6818_s16, 4  ;;  %s6759_s2 = int_to_ptr.vmem [resolvable:$false] %s6758_s2 }
  0x30   : > { %5673 = vmatpush3.msra.mxu0 %v743_v18  ;;  %5708 = vmatpush3.msra.mxu1 %v759_v19  ;;  %v794_v59 = vld [vmem:[%s9194_s0 + $0x1e0] sm:$0xff]  ;;  %v793_v61 = vld [vmem:[%s9194_s0 + $0x1d8] sm:$0xff]  ;;  %v776_v62 = vld [vmem:[%s9194_s0 + $0x150] sm:$0xff] }
  0x31   : > { %5674 = vmatprep.subr.mxu0 %v6816_v5  ;;  %5709 = vmatprep.subr.mxu1 %v6816_v5  ;;  %v792_v63 = vld [vmem:[%s9194_s0 + $0x1d0] sm:$0xff]  ;;  %v789_v6 = vld [vmem:[%s9194_s0 + $0x1b8] sm:$0xff]  ;;  %v771_v9 = vld [vmem:[%s9194_s0 + $0x128] sm:$0xff] }
  0x32   : > { %5675 = vmatpush3.msra.mxu0 %v742_v20  ;;  %5710 = vmatpush3.msra.mxu1 %v758_v21  ;;  %v772_v7 = vld [vmem:[%s9194_s0 + $0x130] sm:$0xff]  ;;  %v787_v10 = vld [vmem:[%s9194_s0 + $0x1a8] sm:$0xff]  ;;  %v770_v11 = vld [vmem:[%s9194_s0 + $0x120] sm:$0xff] }
  0x33   : > { %5676 = vmatprep.subr.mxu0 %v6816_v5  ;;  %5711 = vmatprep.subr.mxu1 %v6816_v5  ;;  %v788_v8 = vld [vmem:[%s9194_s0 + $0x1b0] sm:$0xff]  ;;  %v786_v12 = vld [vmem:[%s9194_s0 + $0x1a0] sm:$0xff]  ;;  %v769_v13 = vld [vmem:[%s9194_s0 + $0x118] sm:$0xff] }
  0x34   : > { %5677 = vmatpush3.msra.mxu0 %v741_v22  ;;  %5712 = vmatpush3.msra.mxu1 %v757_v23  ;;  %v785_v14 = vld [vmem:[%s9194_s0 + $0x198] sm:$0xff]  ;;  %v768_v15 = vld [vmem:[%s9194_s0 + $0x110] sm:$0xff]  ;;  %v767_v17 = vld [vmem:[%s9194_s0 + $0x108] sm:$0xff] }
  0x35   : > { %5678 = vmatprep.subr.mxu0 %v6816_v5  ;;  %5713 = vmatprep.subr.mxu1 %v6816_v5  ;;  %v784_v16 = vld [vmem:[%s9194_s0 + $0x190] sm:$0xff]  ;;  %v783_v18 = vld [vmem:[%s9194_s0 + $0x188] sm:$0xff]  ;;  %v766_v19 = vld [vmem:[%s9194_s0 + $0x100] sm:$0xff] }
  0x36   : > { %5679 = vmatpush3.msra.mxu0 %v740_v24  ;;  %5714 = vmatpush3.msra.mxu1 %v756_v25  ;;  %v782_v20 = vld [vmem:[%s9194_s0 + $0x180] sm:$0xff]  ;;  %v813_v21 = vld [vmem:[%s9196_s23 + $0x78] sm:$0xff]  ;;  %v812_v23 = vld [vmem:[%s9196_s23 + $0x70] sm:$0xff] }
  0x37   : > { %5680 = vmatprep.subr.mxu0 %v6816_v5  ;;  %5715 = vmatprep.subr.mxu1 %v6816_v5  ;;  %v829_v22 = vld [vmem:[%s9196_s23 + $0xf8] sm:$0xff]  ;;  %v828_v24 = vld [vmem:[%s9196_s23 + $0xf0] sm:$0xff]  ;;  %v811_v25 = vld [vmem:[%s9196_s23 + $0x68] sm:$0xff] }
  0x38   : > { %5681 = vmatpush3.msra.mxu0 %v739_v26  ;;  %5716 = vmatpush3.msra.mxu1 %v755_v27  ;;  %v827_v26 = vld [vmem:[%s9196_s23 + $0xe8] sm:$0xff]  ;;  %v810_v27 = vld [vmem:[%s9196_s23 + $0x60] sm:$0xff] }
  0x39   : > { %5682 = vmatprep.subr.mxu0 %v6816_v5  ;;  %5717 = vmatprep.subr.mxu1 %v6816_v5 }
  0x3a   : > { %5683 = vmatpush3.msra.mxu0 %v738_v28  ;;  %5718 = vmatpush3.msra.mxu1 %v754_v29  ;;  %v826_v28 = vld [vmem:[%s9196_s23 + $0xe0] sm:$0xff]  ;;  %v809_v29 = vld [vmem:[%s9196_s23 + $0x58] sm:$0xff] }
  0x3b   : > { %5684 = vmatprep.subr.mxu0 %v6816_v5  ;;  %5719 = vmatprep.subr.mxu1 %v6816_v5 }
  0x3c   : > { %5685 = vmatpush3.msra.mxu0 %v737_v30  ;;  %5720 = vmatpush3.msra.mxu1 %v753_v31  ;;  %v825_v30 = vld [vmem:[%s9196_s23 + $0xd8] sm:$0xff]  ;;  %v808_v31 = vld [vmem:[%s9196_s23 + $0x50] sm:$0xff] }
  0x3d   : > { %5686 = vmatprep.subr.mxu0 %v6816_v5  ;;  %5721 = vmatprep.subr.mxu1 %v6816_v5 }
  0x3e   : > { %5687 = vmatpush3.msra.mxu0 %v736_v32  ;;  %5722 = vmatpush3.msra.mxu1 %v752_v33  ;;  %v824_v32 = vld [vmem:[%s9196_s23 + $0xd0] sm:$0xff]  ;;  %v807_v33 = vld [vmem:[%s9196_s23 + $0x48] sm:$0xff] }
  0x3f   : > { %5688 = vmatprep.subr.mxu0 %v6816_v5  ;;  %5723 = vmatprep.subr.mxu1 %v6816_v5 }
  0x40   : > { %5689 = vmatpush3.msra.mxu0 %v735_v34  ;;  %5724 = vmatpush3.msra.mxu1 %v751_v35  ;;  %v823_v34 = vld [vmem:[%s9196_s23 + $0xc8] sm:$0xff]  ;;  %v806_v35 = vld [vmem:[%s9196_s23 + $0x40] sm:$0xff] }
  0x41   : > { %5690 = vmatprep.subr.mxu0 %v6816_v5  ;;  %5725 = vmatprep.subr.mxu1 %v6816_v5 }
  0x42   : > { %5691 = vmatpush3.msra.mxu0 %v734_v36  ;;  %5726 = vmatpush3.msra.mxu1 %v750_v37  ;;  %v822_v36 = vld [vmem:[%s9196_s23 + $0xc0] sm:$0xff]  ;;  %v805_v37 = vld [vmem:[%s9196_s23 + $0x38] sm:$0xff] }
  0x43   : > { %5730 = vmatprep.subr.mxu0 %v6816_v5  ;;  %5765 = vmatprep.subr.mxu1 %v6816_v5 }
  0xae   : > { %v701_v1 = vpop.xlane.xlu0 %700 }
  0xaf   : > { %v703_v2 = vmul.f32 0.0078125, %v701_v1  ;;  %v791_v1 = vld [vmem:[%s9194_s0 + $0x1c8] sm:$0xff] }
  0xb1   : > { %v6995_v3 = vsub.f32 %v696_v0, %v703_v2  ;;  %v775_v0 = vld [vmem:[%s9194_s0 + $0x148] sm:$0xff]  ;;  %v774_v2 = vld [vmem:[%s9194_s0 + $0x140] sm:$0xff] }
  0xb3   : > { %v705_v4 = vmul.f32 %v6995_v3, %v6995_v3  ;;  %v722_v47 = vmul.f32 %v5102_v46, %v6995_v3  ;;  %v790_v3 = vld [vmem:[%s9194_s0 + $0x1c0] sm:$0xff]  ;;  %v817_v46 = vld [vmem:[%s9196_s23 + $0x98] sm:$0xff] }
  0xb5   : > { %706 = vadd.xlane.f32.xlu0 %v705_v4  ;;  %v773_v4 = vld [vmem:[%s9194_s0 + $0x138] sm:$0xff] }
 0x13e   : > { %v707_v38 = vpop.xlane.xlu0 %706 }
 0x13f   : > { %v708_v39 = vmul.f32 0.007874016, %v707_v38  ;;  %v821_v38 = vld [vmem:[%s9196_s23 + $0xb8] sm:$0xff] }
 0x141   : > { %6709 = vrsqrt.f32 %v708_v39  ;;  %vm711_vm1 = vcmp.eq.f32.partialorder %v708_v39, inf  ;;  %v714_v42 = vand.u32 2147483648, %v708_v39  ;;  %vm713_vm2 = vcmp.eq.f32.partialorder %v708_v39, 0.0 }
 0x14e   : > { %v6710_v40 = vpop.eup %6709 }
 0x14f   : > { %v710_v41 = vmul.f32 %v6710_v40, %v708_v39  ;;  %v820_v40 = vld [vmem:[%s9196_s23 + $0xb0] sm:$0xff] }
 0x151   : > { %v712_v43 = vsel %vm711_vm1, %v708_v39, %v710_v41  ;;  %v804_v39 = vld [vmem:[%s9196_s23 + $0x30] sm:$0xff]  ;;  %v803_v41 = vld [vmem:[%s9196_s23 + $0x28] sm:$0xff] }
 0x152   : > { %v715_v44 = vsel %vm713_vm2, %v714_v42, %v712_v43  ;;  %v819_v42 = vld [vmem:[%s9196_s23 + $0xa8] sm:$0xff]  ;;  %v802_v43 = vld [vmem:[%s9196_s23 + $0x20] sm:$0xff] }
 0x153   : > { %v723_v45 = vadd.f32 1e-06, %v715_v44  ;;  %v818_v44 = vld [vmem:[%s9196_s23 + $0xa0] sm:$0xff] }
 0x155   : > { %6711 = vrcp.f32 %v723_v45  ;;  %v801_v45 = vld [vmem:[%s9196_s23 + $0x18] sm:$0xff] }
 0x162   : > { %v6712_v48 = vpop.eup %6711 }
 0x163   : > { %v725_v50 = vmul.f32 %v6712_v48, %v722_v47  ;;  %v800_v47 = vld [vmem:[%s9196_s23 + $0x10] sm:$0xff] }
 0x164   : > { %v816_v48 = vld [vmem:[%s9196_s23 + $0x90] sm:$0xff] }
 0x165   : > { %v7140_v51 = vadd.f32 %v5103_v49, %v725_v50  ;;  %v799_v49 = vld [vmem:[%s9196_s23 + $0x8] sm:$0xff] }
 0x166   : > { %v815_v50 = vld [vmem:[%s9196_s23 + $0x88] sm:$0xff] }
 0x167   : > { %5693 = vmatmul.mubr.f32.vlgmr.msra.gmra.mxu0 %v7140_v51  ;;  %5728 = vmatmul.mubr.f32.vlgmr.msra.gmra.mxu1 %v7140_v51 }
 0x168   : > { %5731 = vmatpush3.msra.mxu0 %v781_v52  ;;  %5766 = vmatpush3.msra.mxu1 %v797_v53  ;;  %v798_v52 = vld [vmem:[%s9196_s23] sm:$0xff] }
 0x169   : > { %5732 = vmatprep.subr.mxu0 %v6816_v5  ;;  %5767 = vmatprep.subr.mxu1 %v6816_v5  ;;  %v814_v53 = vld [vmem:[%s9196_s23 + $0x80] sm:$0xff] }
 0x16a   : > { %5733 = vmatpush3.msra.mxu0 %v780_v54  ;;  %5768 = vmatpush3.msra.mxu1 %v796_v55  ;;  %v845_v54 = vld [vmem:[%s9196_s23 + $0x178] sm:$0xff] }
 0x16b   : > { %5734 = vmatprep.subr.mxu0 %v6816_v5  ;;  %5769 = vmatprep.subr.mxu1 %v6816_v5  ;;  %v861_v55 = vld [vmem:[%s9196_s23 + $0x1f8] sm:$0xff] }
 0x16c   : > { %5735 = vmatpush3.msra.mxu0 %v779_v56  ;;  %5770 = vmatpush3.msra.mxu1 %v795_v57  ;;  %v844_v56 = vld [vmem:[%s9196_s23 + $0x170] sm:$0xff] }
 0x16d   : > { %5736 = vmatprep.subr.mxu0 %v6816_v5  ;;  %5771 = vmatprep.subr.mxu1 %v6816_v5  ;;  %v860_v57 = vld [vmem:[%s9196_s23 + $0x1f0] sm:$0xff] }
 0x16e   : > { %5737 = vmatpush3.msra.mxu0 %v778_v58  ;;  %5772 = vmatpush3.msra.mxu1 %v794_v59  ;;  %v843_v58 = vld [vmem:[%s9196_s23 + $0x168] sm:$0xff] }
 0x16f   : > { %5738 = vmatprep.subr.mxu0 %v6816_v5  ;;  %5773 = vmatprep.subr.mxu1 %v6816_v5  ;;  %v859_v59 = vld [vmem:[%s9196_s23 + $0x1e8] sm:$0xff] }
 0x170   : > { %5739 = vmatpush3.msra.mxu0 %v777_v60  ;;  %5774 = vmatpush3.msra.mxu1 %v793_v61  ;;  %v842_v60 = vld [vmem:[%s9196_s23 + $0x160] sm:$0xff] }
 0x171   : > { %5740 = vmatprep.subr.mxu0 %v6816_v5  ;;  %5775 = vmatprep.subr.mxu1 %v6816_v5  ;;  %v858_v61 = vld [vmem:[%s9196_s23 + $0x1e0] sm:$0xff] }
 0x172   : > { %5741 = vmatpush3.msra.mxu0 %v776_v62  ;;  %5776 = vmatpush3.msra.mxu1 %v792_v63  ;;  %v841_v62 = vld [vmem:[%s9196_s23 + $0x158] sm:$0xff] }
 0x173   : > { %5742 = vmatprep.subr.mxu0 %v6816_v5  ;;  %5777 = vmatprep.subr.mxu1 %v6816_v5  ;;  %v857_v63 = vld [vmem:[%s9196_s23 + $0x1d8] sm:$0xff] }
 0x174   : > { %5743 = vmatpush3.msra.mxu0 %v775_v0  ;;  %5778 = vmatpush3.msra.mxu1 %v791_v1  ;;  %v840_v0 = vld [vmem:[%s9196_s23 + $0x150] sm:$0xff] }
 0x175   : > { %5744 = vmatprep.subr.mxu0 %v6816_v5  ;;  %5779 = vmatprep.subr.mxu1 %v6816_v5  ;;  %v856_v1 = vld [vmem:[%s9196_s23 + $0x1d0] sm:$0xff] }
 0x176   : > { %5745 = vmatpush3.msra.mxu0 %v774_v2  ;;  %5780 = vmatpush3.msra.mxu1 %v790_v3  ;;  %v839_v2 = vld [vmem:[%s9196_s23 + $0x148] sm:$0xff] }
 0x177   : > { %5746 = vmatprep.subr.mxu0 %v6816_v5  ;;  %5781 = vmatprep.subr.mxu1 %v6816_v5  ;;  %v855_v3 = vld [vmem:[%s9196_s23 + $0x1c8] sm:$0xff] }
 0x178   : > { %5747 = vmatpush3.msra.mxu0 %v773_v4  ;;  %5782 = vmatpush3.msra.mxu1 %v789_v6  ;;  %v838_v4 = vld [vmem:[%s9196_s23 + $0x140] sm:$0xff] }
 0x179   : > { %5748 = vmatprep.subr.mxu0 %v6816_v5  ;;  %5783 = vmatprep.subr.mxu1 %v6816_v5  ;;  %v854_v6 = vld [vmem:[%s9196_s23 + $0x1c0] sm:$0xff] }
 0x17a   : > { %5749 = vmatpush3.msra.mxu0 %v772_v7  ;;  %5784 = vmatpush3.msra.mxu1 %v788_v8  ;;  %v837_v7 = vld [vmem:[%s9196_s23 + $0x138] sm:$0xff] }
 0x17b   : > { %5750 = vmatprep.subr.mxu0 %v6816_v5  ;;  %5785 = vmatprep.subr.mxu1 %v6816_v5  ;;  %v853_v8 = vld [vmem:[%s9196_s23 + $0x1b8] sm:$0xff] }
 0x17c   : > { %5751 = vmatpush3.msra.mxu0 %v771_v9  ;;  %5786 = vmatpush3.msra.mxu1 %v787_v10  ;;  %v836_v9 = vld [vmem:[%s9196_s23 + $0x130] sm:$0xff] }
 0x17d   : > { %5752 = vmatprep.subr.mxu0 %v6816_v5  ;;  %5787 = vmatprep.subr.mxu1 %v6816_v5  ;;  %v852_v10 = vld [vmem:[%s9196_s23 + $0x1b0] sm:$0xff] }
 0x17e   : > { %5753 = vmatpush3.msra.mxu0 %v770_v11  ;;  %5788 = vmatpush3.msra.mxu1 %v786_v12  ;;  %v835_v11 = vld [vmem:[%s9196_s23 + $0x128] sm:$0xff] }
 0x17f   : > { %5754 = vmatprep.subr.mxu0 %v6816_v5  ;;  %5789 = vmatprep.subr.mxu1 %v6816_v5  ;;  %v851_v12 = vld [vmem:[%s9196_s23 + $0x1a8] sm:$0xff] }
 0x180   : > { %5755 = vmatpush3.msra.mxu0 %v769_v13  ;;  %5790 = vmatpush3.msra.mxu1 %v785_v14  ;;  %v834_v13 = vld [vmem:[%s9196_s23 + $0x120] sm:$0xff] }
 0x181   : > { %5756 = vmatprep.subr.mxu0 %v6816_v5  ;;  %5791 = vmatprep.subr.mxu1 %v6816_v5  ;;  %v850_v14 = vld [vmem:[%s9196_s23 + $0x1a0] sm:$0xff] }
 0x182   : > { %5757 = vmatpush3.msra.mxu0 %v768_v15  ;;  %5792 = vmatpush3.msra.mxu1 %v784_v16  ;;  %v833_v15 = vld [vmem:[%s9196_s23 + $0x118] sm:$0xff] }
 0x183   : > { %5758 = vmatprep.subr.mxu0 %v6816_v5  ;;  %5793 = vmatprep.subr.mxu1 %v6816_v5  ;;  %v849_v16 = vld [vmem:[%s9196_s23 + $0x198] sm:$0xff] }
 0x184   : > { %5759 = vmatpush3.msra.mxu0 %v767_v17  ;;  %5794 = vmatpush3.msra.mxu1 %v783_v18  ;;  %v832_v17 = vld [vmem:[%s9196_s23 + $0x110] sm:$0xff] }
 0x185   : > { %5760 = vmatprep.subr.mxu0 %v6816_v5  ;;  %5795 = vmatprep.subr.mxu1 %v6816_v5  ;;  %v848_v18 = vld [vmem:[%s9196_s23 + $0x190] sm:$0xff] }
 0x186   : > { %5761 = vmatpush3.msra.mxu0 %v766_v19  ;;  %5762 = vmatprep.mubr.msk.f32.mxu0 %vm6817_vm0, %v6816_v5  ;;  %v831_v19 = vld [vmem:[%s9196_s23 + $0x108] sm:$0xff] }
 0x187   : > { %5796 = vmatpush3.msra.mxu1 %v782_v20  ;;  %5797 = vmatprep.mubr.msk.f32.mxu1 %vm6817_vm0, %v6816_v5  ;;  %v847_v20 = vld [vmem:[%s9196_s23 + $0x188] sm:$0xff] }
 0x188   : > { %5763 = vmatmul.mubr.f32.vlgmr.msra.gmra.mxu0 %v7140_v51  ;;  %5798 = vmatmul.mubr.f32.vlgmr.msra.gmra.mxu1 %v7140_v51 }
 0x189   : > { %5800 = vmatprep.subr.mxu0 %v6816_v5  ;;  %5835 = vmatprep.subr.mxu1 %v6816_v5 }
 0x18a   : > { %5801 = vmatpush3.msra.mxu0 %v813_v21  ;;  %5836 = vmatpush3.msra.mxu1 %v829_v22  ;;  %v830_v21 = vld [vmem:[%s9196_s23 + $0x100] sm:$0xff] }
 0x18b   : > { %5802 = vmatprep.subr.mxu0 %v6816_v5  ;;  %5837 = vmatprep.subr.mxu1 %v6816_v5  ;;  %v846_v22 = vld [vmem:[%s9196_s23 + $0x180] sm:$0xff] }
 0x18c   : > { %5803 = vmatpush3.msra.mxu0 %v812_v23  ;;  %5838 = vmatpush3.msra.mxu1 %v828_v24  ;;  %v877_v23 = vld [vmem:[%s9197_s25 + $0x78] sm:$0xff] }
 0x18d   : > { %5804 = vmatprep.subr.mxu0 %v6816_v5  ;;  %5839 = vmatprep.subr.mxu1 %v6816_v5  ;;  %v893_v24 = vld [vmem:[%s9197_s25 + $0xf8] sm:$0xff] }
 0x18e   : > { %5805 = vmatpush3.msra.mxu0 %v811_v25  ;;  %5840 = vmatpush3.msra.mxu1 %v827_v26  ;;  %v876_v25 = vld [vmem:[%s9197_s25 + $0x70] sm:$0xff] }
 0x18f   : > { %5806 = vmatprep.subr.mxu0 %v6816_v5  ;;  %5841 = vmatprep.subr.mxu1 %v6816_v5  ;;  %v892_v26 = vld [vmem:[%s9197_s25 + $0xf0] sm:$0xff] }
 0x190   : > { %5807 = vmatpush3.msra.mxu0 %v810_v27  ;;  %5842 = vmatpush3.msra.mxu1 %v826_v28  ;;  %v875_v27 = vld [vmem:[%s9197_s25 + $0x68] sm:$0xff] }
 0x191   : > { %5808 = vmatprep.subr.mxu0 %v6816_v5  ;;  %5843 = vmatprep.subr.mxu1 %v6816_v5  ;;  %v891_v28 = vld [vmem:[%s9197_s25 + $0xe8] sm:$0xff] }
 0x192   : > { %5809 = vmatpush3.msra.mxu0 %v809_v29  ;;  %5844 = vmatpush3.msra.mxu1 %v825_v30  ;;  %v874_v29 = vld [vmem:[%s9197_s25 + $0x60] sm:$0xff] }
 0x193   : > { %5810 = vmatprep.subr.mxu0 %v6816_v5  ;;  %5845 = vmatprep.subr.mxu1 %v6816_v5  ;;  %v890_v30 = vld [vmem:[%s9197_s25 + $0xe0] sm:$0xff] }
 0x194   : > { %5811 = vmatpush3.msra.mxu0 %v808_v31  ;;  %5846 = vmatpush3.msra.mxu1 %v824_v32  ;;  %v873_v31 = vld [vmem:[%s9197_s25 + $0x58] sm:$0xff] }
 0x195   : > { %5812 = vmatprep.subr.mxu0 %v6816_v5  ;;  %5847 = vmatprep.subr.mxu1 %v6816_v5  ;;  %v889_v32 = vld [vmem:[%s9197_s25 + $0xd8] sm:$0xff] }
 0x196   : > { %5813 = vmatpush3.msra.mxu0 %v807_v33  ;;  %5848 = vmatpush3.msra.mxu1 %v823_v34  ;;  %v872_v33 = vld [vmem:[%s9197_s25 + $0x50] sm:$0xff] }
 0x197   : > { %5814 = vmatprep.subr.mxu0 %v6816_v5  ;;  %5849 = vmatprep.subr.mxu1 %v6816_v5  ;;  %v888_v34 = vld [vmem:[%s9197_s25 + $0xd0] sm:$0xff] }
 0x198   : > { %5815 = vmatpush3.msra.mxu0 %v806_v35  ;;  %5850 = vmatpush3.msra.mxu1 %v822_v36  ;;  %v871_v35 = vld [vmem:[%s9197_s25 + $0x48] sm:$0xff] }
 0x199   : > { %5816 = vmatprep.subr.mxu0 %v6816_v5  ;;  %5851 = vmatprep.subr.mxu1 %v6816_v5  ;;  %v887_v36 = vld [vmem:[%s9197_s25 + $0xc8] sm:$0xff] }
 0x19a   : > { %5817 = vmatpush3.msra.mxu0 %v805_v37  ;;  %5852 = vmatpush3.msra.mxu1 %v821_v38  ;;  %v870_v37 = vld [vmem:[%s9197_s25 + $0x40] sm:$0xff] }
 0x19b   : > { %5818 = vmatprep.subr.mxu0 %v6816_v5  ;;  %5853 = vmatprep.subr.mxu1 %v6816_v5  ;;  %v886_v38 = vld [vmem:[%s9197_s25 + $0xc0] sm:$0xff] }
 0x19c   : > { %5819 = vmatpush3.msra.mxu0 %v804_v39  ;;  %5854 = vmatpush3.msra.mxu1 %v820_v40  ;;  %v869_v39 = vld [vmem:[%s9197_s25 + $0x38] sm:$0xff] }
 0x19d   : > { %5820 = vmatprep.subr.mxu0 %v6816_v5  ;;  %5855 = vmatprep.subr.mxu1 %v6816_v5  ;;  %v885_v40 = vld [vmem:[%s9197_s25 + $0xb8] sm:$0xff] }
 0x19e   : > { %5821 = vmatpush3.msra.mxu0 %v803_v41  ;;  %5856 = vmatpush3.msra.mxu1 %v819_v42  ;;  %v868_v41 = vld [vmem:[%s9197_s25 + $0x30] sm:$0xff] }
 0x19f   : > { %5822 = vmatprep.subr.mxu0 %v6816_v5  ;;  %5857 = vmatprep.subr.mxu1 %v6816_v5  ;;  %v884_v42 = vld [vmem:[%s9197_s25 + $0xb0] sm:$0xff] }
 0x1a0   : > { %5823 = vmatpush3.msra.mxu0 %v802_v43  ;;  %5858 = vmatpush3.msra.mxu1 %v818_v44  ;;  %v867_v43 = vld [vmem:[%s9197_s25 + $0x28] sm:$0xff] }
 0x1a1   : > { %5824 = vmatprep.subr.mxu0 %v6816_v5  ;;  %5859 = vmatprep.subr.mxu1 %v6816_v5  ;;  %v883_v44 = vld [vmem:[%s9197_s25 + $0xa8] sm:$0xff] }
 0x1a2   : > { %5825 = vmatpush3.msra.mxu0 %v801_v45  ;;  %5860 = vmatpush3.msra.mxu1 %v817_v46  ;;  %v866_v45 = vld [vmem:[%s9197_s25 + $0x20] sm:$0xff] }
 0x1a3   : > { %5826 = vmatprep.subr.mxu0 %v6816_v5  ;;  %5861 = vmatprep.subr.mxu1 %v6816_v5  ;;  %v882_v46 = vld [vmem:[%s9197_s25 + $0xa0] sm:$0xff] }
 0x1a4   : > { %5827 = vmatpush3.msra.mxu0 %v800_v47  ;;  %5862 = vmatpush3.msra.mxu1 %v816_v48  ;;  %v865_v47 = vld [vmem:[%s9197_s25 + $0x18] sm:$0xff] }
 0x1a5   : > { %5828 = vmatprep.subr.mxu0 %v6816_v5  ;;  %5863 = vmatprep.subr.mxu1 %v6816_v5  ;;  %v881_v48 = vld [vmem:[%s9197_s25 + $0x98] sm:$0xff] }
 0x1a6   : > { %5829 = vmatpush3.msra.mxu0 %v799_v49  ;;  %5864 = vmatpush3.msra.mxu1 %v815_v50  ;;  %v864_v49 = vld [vmem:[%s9197_s25 + $0x10] sm:$0xff] }
 0x1a7   : > { %5830 = vmatprep.subr.mxu0 %v6816_v5  ;;  %5865 = vmatprep.subr.mxu1 %v6816_v5  ;;  %v880_v50 = vld [vmem:[%s9197_s25 + $0x90] sm:$0xff] }
 0x1a8   : > { %5831 = vmatpush3.msra.mxu0 %v798_v52  ;;  %5832 = vmatprep.mubr.msk.f32.mxu0 %vm6817_vm0, %v6816_v5  ;;  %v863_v52 = vld [vmem:[%s9197_s25 + $0x8] sm:$0xff] }
 0x1a9   : > { %5866 = vmatpush3.msra.mxu1 %v814_v53  ;;  %5867 = vmatprep.mubr.msk.f32.mxu1 %vm6817_vm0, %v6816_v5  ;;  %v879_v53 = vld [vmem:[%s9197_s25 + $0x88] sm:$0xff] }
 0x1aa   : > { %5833 = vmatmul.mubr.f32.vlgmr.msra.gmra.mxu0 %v7140_v51  ;;  %5868 = vmatmul.mubr.f32.vlgmr.msra.gmra.mxu1 %v7140_v51 }
 0x1ab   : > { %5870 = vmatprep.subr.mxu0 %v6816_v5  ;;  %5905 = vmatprep.subr.mxu1 %v6816_v5 }
 0x1ac   : > { %5871 = vmatpush3.msra.mxu0 %v845_v54  ;;  %5906 = vmatpush3.msra.mxu1 %v861_v55  ;;  %v862_v54 = vld [vmem:[%s9197_s25] sm:$0xff] }
 0x1ad   : > { %5872 = vmatprep.subr.mxu0 %v6816_v5  ;;  %5907 = vmatprep.subr.mxu1 %v6816_v5  ;;  %v878_v55 = vld [vmem:[%s9197_s25 + $0x80] sm:$0xff] }
 0x1ae   : > { %5873 = vmatpush3.msra.mxu0 %v844_v56  ;;  %5908 = vmatpush3.msra.mxu1 %v860_v57  ;;  %v909_v56 = vld [vmem:[%s9197_s25 + $0x178] sm:$0xff] }
 0x1af   : > { %5874 = vmatprep.subr.mxu0 %v6816_v5  ;;  %5909 = vmatprep.subr.mxu1 %v6816_v5  ;;  %v925_v57 = vld [vmem:[%s9197_s25 + $0x1f8] sm:$0xff] }
 0x1b0   : > { %5875 = vmatpush3.msra.mxu0 %v843_v58  ;;  %5910 = vmatpush3.msra.mxu1 %v859_v59  ;;  %v908_v58 = vld [vmem:[%s9197_s25 + $0x170] sm:$0xff] }
 0x1b1   : > { %5876 = vmatprep.subr.mxu0 %v6816_v5  ;;  %5911 = vmatprep.subr.mxu1 %v6816_v5  ;;  %v924_v59 = vld [vmem:[%s9197_s25 + $0x1f0] sm:$0xff] }
 0x1b2   : > { %5877 = vmatpush3.msra.mxu0 %v842_v60  ;;  %5912 = vmatpush3.msra.mxu1 %v858_v61  ;;  %v907_v60 = vld [vmem:[%s9197_s25 + $0x168] sm:$0xff] }
 0x1b3   : > { %5878 = vmatprep.subr.mxu0 %v6816_v5  ;;  %5913 = vmatprep.subr.mxu1 %v6816_v5  ;;  %v923_v61 = vld [vmem:[%s9197_s25 + $0x1e8] sm:$0xff] }
 0x1b4   : > { %5879 = vmatpush3.msra.mxu0 %v841_v62  ;;  %5914 = vmatpush3.msra.mxu1 %v857_v63  ;;  %v906_v62 = vld [vmem:[%s9197_s25 + $0x160] sm:$0xff] }
 0x1b5   : > { %5880 = vmatprep.subr.mxu0 %v6816_v5  ;;  %5915 = vmatprep.subr.mxu1 %v6816_v5  ;;  %v922_v63 = vld [vmem:[%s9197_s25 + $0x1e0] sm:$0xff] }
 0x1b6   : > { %5881 = vmatpush3.msra.mxu0 %v840_v0  ;;  %5916 = vmatpush3.msra.mxu1 %v856_v1  ;;  %v905_v0 = vld [vmem:[%s9197_s25 + $0x158] sm:$0xff] }
 0x1b7   : > { %5882 = vmatprep.subr.mxu0 %v6816_v5  ;;  %5917 = vmatprep.subr.mxu1 %v6816_v5  ;;  %v921_v1 = vld [vmem:[%s9197_s25 + $0x1d8] sm:$0xff] }
 0x1b8   : > { %5883 = vmatpush3.msra.mxu0 %v839_v2  ;;  %5918 = vmatpush3.msra.mxu1 %v855_v3  ;;  %v904_v2 = vld [vmem:[%s9197_s25 + $0x150] sm:$0xff] }
 0x1b9   : > { %5884 = vmatprep.subr.mxu0 %v6816_v5  ;;  %5919 = vmatprep.subr.mxu1 %v6816_v5  ;;  %v920_v3 = vld [vmem:[%s9197_s25 + $0x1d0] sm:$0xff] }
 0x1ba   : > { %5885 = vmatpush3.msra.mxu0 %v838_v4  ;;  %5920 = vmatpush3.msra.mxu1 %v854_v6  ;;  %v903_v4 = vld [vmem:[%s9197_s25 + $0x148] sm:$0xff] }
 0x1bb   : > { %5886 = vmatprep.subr.mxu0 %v6816_v5  ;;  %5921 = vmatprep.subr.mxu1 %v6816_v5  ;;  %v919_v6 = vld [vmem:[%s9197_s25 + $0x1c8] sm:$0xff] }
 0x1bc   : > { %5887 = vmatpush3.msra.mxu0 %v837_v7  ;;  %5922 = vmatpush3.msra.mxu1 %v853_v8  ;;  %v902_v7 = vld [vmem:[%s9197_s25 + $0x140] sm:$0xff] }
 0x1bd   : > { %5888 = vmatprep.subr.mxu0 %v6816_v5  ;;  %5923 = vmatprep.subr.mxu1 %v6816_v5  ;;  %v918_v8 = vld [vmem:[%s9197_s25 + $0x1c0] sm:$0xff] }
 0x1be   : > { %5889 = vmatpush3.msra.mxu0 %v836_v9  ;;  %5924 = vmatpush3.msra.mxu1 %v852_v10  ;;  %v901_v9 = vld [vmem:[%s9197_s25 + $0x138] sm:$0xff] }
 0x1bf   : > { %5890 = vmatprep.subr.mxu0 %v6816_v5  ;;  %5925 = vmatprep.subr.mxu1 %v6816_v5  ;;  %v917_v10 = vld [vmem:[%s9197_s25 + $0x1b8] sm:$0xff] }
 0x1c0   : > { %5891 = vmatpush3.msra.mxu0 %v835_v11  ;;  %5926 = vmatpush3.msra.mxu1 %v851_v12  ;;  %v900_v11 = vld [vmem:[%s9197_s25 + $0x130] sm:$0xff] }
 0x1c1   : > { %5892 = vmatprep.subr.mxu0 %v6816_v5  ;;  %5927 = vmatprep.subr.mxu1 %v6816_v5  ;;  %v916_v12 = vld [vmem:[%s9197_s25 + $0x1b0] sm:$0xff] }
 0x1c2   : > { %5893 = vmatpush3.msra.mxu0 %v834_v13  ;;  %5928 = vmatpush3.msra.mxu1 %v850_v14  ;;  %v899_v13 = vld [vmem:[%s9197_s25 + $0x128] sm:$0xff] }
 0x1c3   : > { %5894 = vmatprep.subr.mxu0 %v6816_v5  ;;  %5929 = vmatprep.subr.mxu1 %v6816_v5  ;;  %v915_v14 = vld [vmem:[%s9197_s25 + $0x1a8] sm:$0xff] }
 0x1c4   : > { %5895 = vmatpush3.msra.mxu0 %v833_v15  ;;  %5930 = vmatpush3.msra.mxu1 %v849_v16  ;;  %v898_v15 = vld [vmem:[%s9197_s25 + $0x120] sm:$0xff] }
 0x1c5   : > { %5896 = vmatprep.subr.mxu0 %v6816_v5  ;;  %5931 = vmatprep.subr.mxu1 %v6816_v5  ;;  %v914_v16 = vld [vmem:[%s9197_s25 + $0x1a0] sm:$0xff] }
 0x1c6   : > { %5897 = vmatpush3.msra.mxu0 %v832_v17  ;;  %5932 = vmatpush3.msra.mxu1 %v848_v18  ;;  %v897_v17 = vld [vmem:[%s9197_s25 + $0x118] sm:$0xff] }
 0x1c7   : > { %5898 = vmatprep.subr.mxu0 %v6816_v5  ;;  %5933 = vmatprep.subr.mxu1 %v6816_v5  ;;  %v913_v18 = vld [vmem:[%s9197_s25 + $0x198] sm:$0xff] }
 0x1c8   : > { %5899 = vmatpush3.msra.mxu0 %v831_v19  ;;  %5934 = vmatpush3.msra.mxu1 %v847_v20  ;;  %v896_v19 = vld [vmem:[%s9197_s25 + $0x110] sm:$0xff] }
 0x1c9   : > { %5900 = vmatprep.subr.mxu0 %v6816_v5  ;;  %5935 = vmatprep.subr.mxu1 %v6816_v5  ;;  %v912_v20 = vld [vmem:[%s9197_s25 + $0x190] sm:$0xff] }
 0x1ca   : > { %5901 = vmatpush3.msra.mxu0 %v830_v21  ;;  %5902 = vmatprep.mubr.msk.f32.mxu0 %vm6817_vm0, %v6816_v5  ;;  %v895_v21 = vld [vmem:[%s9197_s25 + $0x108] sm:$0xff] }
 0x1cb   : > { %5936 = vmatpush3.msra.mxu1 %v846_v22  ;;  %5937 = vmatprep.mubr.msk.f32.mxu1 %vm6817_vm0, %v6816_v5  ;;  %v911_v22 = vld [vmem:[%s9197_s25 + $0x188] sm:$0xff] }
 0x1cc   : > { %5903 = vmatmul.mubr.f32.vlgmr.msra.gmra.mxu0 %v7140_v51  ;;  %5938 = vmatmul.mubr.f32.vlgmr.msra.gmra.mxu1 %v7140_v51 }
 0x1cd   : > { %5940 = vmatprep.subr.mxu0 %v6816_v5  ;;  %5975 = vmatprep.subr.mxu1 %v6816_v5 }
 0x1ce   : > { %5941 = vmatpush3.msra.mxu0 %v877_v23  ;;  %5976 = vmatpush3.msra.mxu1 %v893_v24  ;;  %v894_v23 = vld [vmem:[%s9197_s25 + $0x100] sm:$0xff] }
 0x1cf   : > { %5942 = vmatprep.subr.mxu0 %v6816_v5  ;;  %5977 = vmatprep.subr.mxu1 %v6816_v5  ;;  %v910_v24 = vld [vmem:[%s9197_s25 + $0x180] sm:$0xff] }
 0x1d0   : > { %5943 = vmatpush3.msra.mxu0 %v876_v25  ;;  %5978 = vmatpush3.msra.mxu1 %v892_v26 }
 0x1d1   : > { %5944 = vmatprep.subr.mxu0 %v6816_v5  ;;  %5979 = vmatprep.subr.mxu1 %v6816_v5 }
 0x1d2   : > { %5945 = vmatpush3.msra.mxu0 %v875_v27  ;;  %5980 = vmatpush3.msra.mxu1 %v891_v28 }
 0x1d3   : > { %5946 = vmatprep.subr.mxu0 %v6816_v5  ;;  %5981 = vmatprep.subr.mxu1 %v6816_v5 }
 0x1d4   : > { %5947 = vmatpush3.msra.mxu0 %v874_v29  ;;  %5982 = vmatpush3.msra.mxu1 %v890_v30 }
 0x1d5   : > { %5948 = vmatprep.subr.mxu0 %v6816_v5  ;;  %5983 = vmatprep.subr.mxu1 %v6816_v5 }
 0x1d6   : > { %5949 = vmatpush3.msra.mxu0 %v873_v31  ;;  %5984 = vmatpush3.msra.mxu1 %v889_v32 }
 0x1d7   : > { %5950 = vmatprep.subr.mxu0 %v6816_v5  ;;  %5985 = vmatprep.subr.mxu1 %v6816_v5 }
 0x1d8   : > { %5951 = vmatpush3.msra.mxu0 %v872_v33  ;;  %5986 = vmatpush3.msra.mxu1 %v888_v34 }
 0x1d9   : > { %5952 = vmatprep.subr.mxu0 %v6816_v5  ;;  %5987 = vmatprep.subr.mxu1 %v6816_v5 }
 0x1da   : > { %5953 = vmatpush3.msra.mxu0 %v871_v35  ;;  %5988 = vmatpush3.msra.mxu1 %v887_v36 }
 0x1db   : > { %5954 = vmatprep.subr.mxu0 %v6816_v5  ;;  %5989 = vmatprep.subr.mxu1 %v6816_v5 }
 0x1dc   : > { %5955 = vmatpush3.msra.mxu0 %v870_v37  ;;  %5990 = vmatpush3.msra.mxu1 %v886_v38 }
 0x1dd   : > { %5956 = vmatprep.subr.mxu0 %v6816_v5  ;;  %5991 = vmatprep.subr.mxu1 %v6816_v5 }
 0x1de   : > { %5957 = vmatpush3.msra.mxu0 %v869_v39  ;;  %5992 = vmatpush3.msra.mxu1 %v885_v40 }
 0x1df   : > { %5958 = vmatprep.subr.mxu0 %v6816_v5  ;;  %5993 = vmatprep.subr.mxu1 %v6816_v5 }
 0x1e0   : > { %5959 = vmatpush3.msra.mxu0 %v868_v41  ;;  %5994 = vmatpush3.msra.mxu1 %v884_v42 }
 0x1e1   : > { %5960 = vmatprep.subr.mxu0 %v6816_v5  ;;  %5995 = vmatprep.subr.mxu1 %v6816_v5 }
 0x1e2   : > { %5961 = vmatpush3.msra.mxu0 %v867_v43  ;;  %5996 = vmatpush3.msra.mxu1 %v883_v44 }
 0x1e3   : > { %5962 = vmatprep.subr.mxu0 %v6816_v5  ;;  %5997 = vmatprep.subr.mxu1 %v6816_v5 }
 0x1e4   : > { %5963 = vmatpush3.msra.mxu0 %v866_v45  ;;  %5998 = vmatpush3.msra.mxu1 %v882_v46 }
 0x1e5   : > { %5964 = vmatprep.subr.mxu0 %v6816_v5  ;;  %5999 = vmatprep.subr.mxu1 %v6816_v5 }
 0x1e6   : > { %5965 = vmatpush3.msra.mxu0 %v865_v47  ;;  %6000 = vmatpush3.msra.mxu1 %v881_v48 }
 0x1e7   : > { %5966 = vmatprep.subr.mxu0 %v6816_v5  ;;  %6001 = vmatprep.subr.mxu1 %v6816_v5 }
 0x1e8   : > { %5967 = vmatpush3.msra.mxu0 %v864_v49  ;;  %6002 = vmatpush3.msra.mxu1 %v880_v50 }
 0x1e9   : > { %5968 = vmatprep.subr.mxu0 %v6816_v5  ;;  %6003 = vmatprep.subr.mxu1 %v6816_v5 }
 0x1ea   : > { %5969 = vmatpush3.msra.mxu0 %v863_v52  ;;  %6004 = vmatpush3.msra.mxu1 %v879_v53  ;;  %v733_v53 = vld [vmem:[%s9198_s24] sm:$0xff] }
 0x1eb   : > { %5970 = vmatprep.subr.mxu0 %v6816_v5  ;;  %6005 = vmatprep.subr.mxu1 %v6816_v5 }
 0x1ec   : > { %5971 = vmatpush3.msra.mxu0 %v862_v54  ;;  %5972 = vmatprep.mubr.msk.f32.mxu0 %vm6817_vm0, %v6816_v5 }
 0x1ed   : > { %6006 = vmatpush3.msra.mxu1 %v878_v55  ;;  %6007 = vmatprep.mubr.msk.f32.mxu1 %vm6817_vm0, %v6816_v5 }
 0x1ee   : > { %5973 = vmatmul.mubr.f32.vlgmr.msra.gmra.mxu0 %v7140_v51  ;;  %6008 = vmatmul.mubr.f32.vlgmr.msra.gmra.mxu1 %v7140_v51 }
 0x1ef   : > { %6010 = vmatprep.subr.mxu0 %v6816_v5  ;;  %6045 = vmatprep.subr.mxu1 %v6816_v5 }
 0x1f0   : > { %6011 = vmatpush3.msra.mxu0 %v909_v56  ;;  %6046 = vmatpush3.msra.mxu1 %v925_v57 }
 0x1f1   : > { %6012 = vmatprep.subr.mxu0 %v6816_v5  ;;  %6047 = vmatprep.subr.mxu1 %v6816_v5 }
 0x1f2   : > { %6013 = vmatpush3.msra.mxu0 %v908_v58  ;;  %6048 = vmatpush3.msra.mxu1 %v924_v59 }
 0x1f3   : > { %6014 = vmatprep.subr.mxu0 %v6816_v5  ;;  %6049 = vmatprep.subr.mxu1 %v6816_v5 }
 0x1f4   : > { %6015 = vmatpush3.msra.mxu0 %v907_v60  ;;  %6050 = vmatpush3.msra.mxu1 %v923_v61 }
 0x1f5   : > { %6016 = vmatprep.subr.mxu0 %v6816_v5  ;;  %6051 = vmatprep.subr.mxu1 %v6816_v5 }
 0x1f6   : > { %6017 = vmatpush3.msra.mxu0 %v906_v62  ;;  %6052 = vmatpush3.msra.mxu1 %v922_v63 }
 0x1f7   : > { %6018 = vmatprep.subr.mxu0 %v6816_v5  ;;  %6053 = vmatprep.subr.mxu1 %v6816_v5 }
 0x1f8   : > { %6019 = vmatpush3.msra.mxu0 %v905_v0  ;;  %6054 = vmatpush3.msra.mxu1 %v921_v1 }
 0x1f9   : > { %6020 = vmatprep.subr.mxu0 %v6816_v5  ;;  %6055 = vmatprep.subr.mxu1 %v6816_v5 }
 0x1fa   : > { %6021 = vmatpush3.msra.mxu0 %v904_v2  ;;  %6056 = vmatpush3.msra.mxu1 %v920_v3 }
 0x1fb   : > { %6022 = vmatprep.subr.mxu0 %v6816_v5  ;;  %6057 = vmatprep.subr.mxu1 %v6816_v5 }
 0x1fc   : > { %6023 = vmatpush3.msra.mxu0 %v903_v4  ;;  %6058 = vmatpush3.msra.mxu1 %v919_v6 }
 0x1fd   : > { %6024 = vmatprep.subr.mxu0 %v6816_v5  ;;  %6059 = vmatprep.subr.mxu1 %v6816_v5 }
 0x1fe   : > { %6025 = vmatpush3.msra.mxu0 %v902_v7  ;;  %6060 = vmatpush3.msra.mxu1 %v918_v8 }
 0x1ff   : > { %6026 = vmatprep.subr.mxu0 %v6816_v5  ;;  %6061 = vmatprep.subr.mxu1 %v6816_v5 }
 0x200   : > { %6027 = vmatpush3.msra.mxu0 %v901_v9  ;;  %6062 = vmatpush3.msra.mxu1 %v917_v10 }
 0x201   : > { %6028 = vmatprep.subr.mxu0 %v6816_v5  ;;  %6063 = vmatprep.subr.mxu1 %v6816_v5 }
 0x202   : > { %6029 = vmatpush3.msra.mxu0 %v900_v11  ;;  %6064 = vmatpush3.msra.mxu1 %v916_v12 }
 0x203   : > { %6030 = vmatprep.subr.mxu0 %v6816_v5  ;;  %6065 = vmatprep.subr.mxu1 %v6816_v5 }
 0x204   : > { %6031 = vmatpush3.msra.mxu0 %v899_v13  ;;  %6066 = vmatpush3.msra.mxu1 %v915_v14 }
 0x205   : > { %6032 = vmatprep.subr.mxu0 %v6816_v5  ;;  %6067 = vmatprep.subr.mxu1 %v6816_v5 }
 0x206   : > { %6033 = vmatpush3.msra.mxu0 %v898_v15  ;;  %6068 = vmatpush3.msra.mxu1 %v914_v16 }
 0x207   : > { %6034 = vmatprep.subr.mxu0 %v6816_v5  ;;  %6069 = vmatprep.subr.mxu1 %v6816_v5 }
 0x208   : > { %6035 = vmatpush3.msra.mxu0 %v897_v17  ;;  %6070 = vmatpush3.msra.mxu1 %v913_v18 }
 0x209   : > { %6036 = vmatprep.subr.mxu0 %v6816_v5  ;;  %6071 = vmatprep.subr.mxu1 %v6816_v5 }
 0x20a   : > { %6037 = vmatpush3.msra.mxu0 %v896_v19  ;;  %6072 = vmatpush3.msra.mxu1 %v912_v20 }
 0x20b   : > { %6038 = vmatprep.subr.mxu0 %v6816_v5  ;;  %6073 = vmatprep.subr.mxu1 %v6816_v5 }
 0x20c   : > { %6039 = vmatpush3.msra.mxu0 %v895_v21  ;;  %6074 = vmatpush3.msra.mxu1 %v911_v22 }
 0x20d   : > { %6040 = vmatprep.subr.mxu0 %v6816_v5  ;;  %6075 = vmatprep.subr.mxu1 %v6816_v5 }
 0x20e   : > { %6041 = vmatpush3.msra.mxu0 %v894_v23  ;;  %6042 = vmatprep.mubr.msk.f32.mxu0 %vm6817_vm0, %v6816_v5 }
 0x20f   : > { %6076 = vmatpush3.msra.mxu1 %v910_v24  ;;  %6077 = vmatprep.mubr.msk.f32.mxu1 %vm6817_vm0, %v6816_v5 }
 0x210   : > { %6043 = vmatmul.mubr.f32.vlgmr.msra.gmra.mxu0 %v7140_v51  ;;  %6078 = vmatmul.mubr.f32.vlgmr.msra.gmra.mxu1 %v7140_v51 }
 0x211   : > { %6080 = vmatprep.subr.mxu0 %v6816_v5  ;;  %6085 = vmatprep.subr.mxu1 %v6816_v5 }
 0x212   : > { %6082 = vmatprep.mubr.msk.f32.mxu0 %vm6817_vm0, %v6816_v5  ;;  %6087 = vmatprep.mubr.msk.f32.mxu1 %vm6817_vm0, %v6816_v5 }
 0x227   : > { %v1008_v25 = vpop.f32.mrf.mxu0  ;;  %v1078_v26 = vpop.f32.mrf.mxu1 }
 0x228   : > { %v1222_v34 = vmul.f32 0.17677669, %v1008_v25  ;;  %v1223_v35 = vmul.f32 0.17677669, %v1078_v26 }
 0x229   : > { %v5694_v27 = vpop.f32.mrf.mxu0  ;;  %v5729_v28 = vpop.f32.mrf.mxu1 }
 0x248   : > { %v1148_v29 = vpop.f32.mrf.mxu0  ;;  %v1218_v30 = vpop.f32.mrf.mxu1 }
 0x249   : > { %v1224_v40 = vmul.f32 0.17677669, %v1148_v29  ;;  %v1225_v41 = vmul.f32 0.17677669, %v1218_v30 }
 0x24a   : > { %v5764_v31 = vpop.f32.mrf.mxu0  ;;  %v5799_v32 = vpop.f32.mrf.mxu1 }
 0x26a   : > { %v1292_v51 = vpop.f32.mrf.mxu0  ;;  %v1362_v33 = vpop.f32.mrf.mxu1 }
 0x26b   : > { %6081 = vmatpush3.xpose.msk.msra.mxu0 %vm1786_vm3, %v1292_v51  ;;  %6086 = vmatpush3.xpose.msk.msra.mxu1 %vm1786_vm3, %v1362_v33 }
 0x26c   : > { %v5834_v36 = vpop.f32.mrf.mxu0  ;;  %v5869_v37 = vpop.f32.mrf.mxu1  ;;  %6090 = vmatprep.subr.mxu0 %v6816_v5  ;;  %6095 = vmatprep.subr.mxu1 %v6816_v5 }
 0x26d   : > { %v933_v37 = vld [vmem:[%s9199_s7 + $0x38] sm:$0xff] }
 0x26e   : > { %6083 = vmatmul.mubr.msk.f32.vlgmr.msra.gmra.mxu0 %vm1786_vm3, %v1222_v34  ;;  %6088 = vmatmul.mubr.msk.f32.vlgmr.msra.gmra.mxu1 %vm1786_vm3, %v1223_v35 }
 0x26f   : > { %6092 = vmatprep.mubr.msk.f32.mxu0 %vm6817_vm0, %v6816_v5  ;;  %6097 = vmatprep.mubr.msk.f32.mxu1 %vm6817_vm0, %v6816_v5 }
 0x28c   : > { %v1432_v38 = vpop.f32.mrf.mxu0  ;;  %v1502_v39 = vpop.f32.mrf.mxu1 }
 0x28d   : > { %6091 = vmatpush3.xpose.msk.msra.mxu0 %vm1786_vm3, %v1432_v38  ;;  %6096 = vmatpush3.xpose.msk.msra.mxu1 %vm1786_vm3, %v1502_v39  ;;  %v929_v39 = vld [vmem:[%s9199_s7 + $0x18] sm:$0xff] }
 0x28e   : > { %v5904_v42 = vpop.f32.mrf.mxu0  ;;  %v5939_v43 = vpop.f32.mrf.mxu1  ;;  %6100 = vmatprep.subr.mxu0 %v6816_v5  ;;  %6105 = vmatprep.subr.mxu1 %v6816_v5 }
 0x28f   : > { %v926_v42 = vld [vmem:[%s9199_s7] sm:$0xff]  ;;  %v932_v43 = vld [vmem:[%s9199_s7 + $0x30] sm:$0xff] }
 0x290   : > { %6093 = vmatmul.mubr.msk.f32.vlgmr.msra.gmra.mxu0 %vm1786_vm3, %v1224_v40  ;;  %6098 = vmatmul.mubr.msk.f32.vlgmr.msra.gmra.mxu1 %vm1786_vm3, %v1225_v41  ;;  %v928_v40 = vld [vmem:[%s9199_s7 + $0x10] sm:$0xff]  ;;  %v927_v41 = vld [vmem:[%s9199_s7 + $0x8] sm:$0xff] }
 0x291   : > { %6102 = vmatprep.mubr.msk.f32.mxu0 %vm6817_vm0, %v6816_v5  ;;  %6107 = vmatprep.mubr.msk.f32.mxu1 %vm6817_vm0, %v6816_v5 }
 0x2ae   : > { %v1572_v44 = vpop.f32.mrf.mxu0  ;;  %v1642_v45 = vpop.f32.mrf.mxu1 }
 0x2af   : > { %6101 = vmatpush3.msra.mxu0 %v1572_v44  ;;  %6106 = vmatpush3.msra.mxu1 %v1642_v45  ;;  %v931_v44 = vld [vmem:[%s9199_s7 + $0x28] sm:$0xff]  ;;  %v930_v45 = vld [vmem:[%s9199_s7 + $0x20] sm:$0xff] }
 0x2b0   : > { %v5974_v46 = vpop.f32.mrf.mxu0  ;;  %v6009_v47 = vpop.f32.mrf.mxu1  ;;  %6110 = vmatprep.subr.mxu0 %v6816_v5  ;;  %6115 = vmatprep.subr.mxu1 %v6816_v5 }
 0x2b1   : > { %v937_v46 = vld [vmem:[%s9199_s7 + $0x58] sm:$0xff] }
 0x2d0   : > { %v1712_v48 = vpop.f32.mrf.mxu0  ;;  %v7840_v49 = vpop.f32.mrf.mxu1 }
 0x2d2   : > { %v6044_v50 = vpop.f32.mrf.mxu0  ;;  %v6079_v52 = vpop.f32.mrf.mxu1 }
 0x2d3   : > { %v941_v50 = vld [vmem:[%s9199_s7 + $0x78] sm:$0xff]  ;;  %v935_v52 = vld [vmem:[%s9199_s7 + $0x48] sm:$0xff] }
 0x32e   : > { %v1859_v54 = vpop.f32.mrf.mxu0  ;;  %v1935_v55 = vpop.f32.mrf.mxu1 }
 0x32f   : > { %v1860_v56 = vadd.f32 %v1859_v54, %v733_v53  ;;  %v1936_v59 = vadd.f32 %v1935_v55, %v733_v53  ;;  %v940_v54 = vld [vmem:[%s9199_s7 + $0x70] sm:$0xff]  ;;  %v934_v55 = vld [vmem:[%s9199_s7 + $0x40] sm:$0xff] }
 0x330   : > { %v6084_v57 = vpop.f32.mrf.mxu0  ;;  %v6089_v58 = vpop.f32.mrf.mxu1 }
 0x331   : > { %v2092_v60 = vsel %vm2091_vm4, %v1860_v56, -inf  ;;  %v2095_v61 = vsel %vm2091_vm4, %v1936_v59, -inf  ;;  %v939_v57 = vld [vmem:[%s9199_s7 + $0x68] sm:$0xff]  ;;  %v938_v58 = vld [vmem:[%s9199_s7 + $0x60] sm:$0xff] }
 0x332   : > { %2093 = vmax.xlane.f32.xlu1 %v2092_v60 }
 0x336   : > { %2096 = vmax.xlane.f32.xlu1 %v2095_v61 }
 0x350   : > { %v2011_v62 = vpop.f32.mrf.mxu0  ;;  %v2087_v63 = vpop.f32.mrf.mxu1 }
 0x351   : > { %v2012_v0 = vadd.f32 %v2011_v62, %v733_v53  ;;  %v2088_v1 = vadd.f32 %v2087_v63, %v733_v53 }
 0x352   : > { %v6094_v2 = vpop.f32.mrf.mxu0  ;;  %v6099_v3 = vpop.f32.mrf.mxu1 }
 0x353   : > { %v2101_v4 = vsel %vm2091_vm4, %v2088_v1, -inf  ;;  %v2098_v6 = vsel %vm2091_vm4, %v2012_v0, -inf }
 0x354   : > { %2102 = vmax.xlane.f32.xlu1 %v2101_v4  ;;  %2099 = vmax.xlane.f32.xlu0 %v2098_v6 }
 0x3bb   : > { %v2094_v7 = vpop.xlane.xlu1 %2093 }
 0x3bc   : > { %v2104_v8 = vsub.f32 %v1860_v56, %v2094_v7 }
 0x3be   : > { %v2108_v9 = vmul.f32 1.442695, %v2104_v8 }
 0x3bf   : > { %v2097_v10 = vpop.xlane.xlu1 %2096 }
 0x3c0   : > { %6713 = vpow2.f32 %v2108_v9  ;;  %v2105_v11 = vsub.f32 %v1936_v59, %v2097_v10 }
 0x3c2   : > { %v2110_v12 = vmul.f32 1.442695, %v2105_v11  ;;  %v6753_v11 = vld [vmem:[%s6992_s5] sm:$0xff] }
 0x3c4   : > { %6715 = vpow2.f32 %v2110_v12 }
 0x3cd   : > { %v6714_v13 = vpop.eup %6713 }
 0x3ce   : > { %v2116_v14 = vsel %vm2091_vm4, %v6714_v13, 0.0 }
 0x3cf   : > { %2117 = vadd.xlane.f32.xlu0 %v2116_v14 }
 0x3d1   : > { %v6716_v15 = vpop.eup %6715 }
 0x3d2   : > { %v2119_v16 = vsel %vm2091_vm4, %v6716_v15, 0.0 }
 0x3d3   : > { %2120 = vadd.xlane.f32.xlu1 %v2119_v16 }
 0x3dd   : > { %v2103_v17 = vpop.xlane.xlu1 %2102  ;;  %v2100_v18 = vpop.xlane.xlu0 %2099 }
 0x3de   : > { %v2107_v19 = vsub.f32 %v2088_v1, %v2103_v17  ;;  %v2106_v20 = vsub.f32 %v2012_v0, %v2100_v18  ;;  %v2774_v17 = vld [vmem:[%s9200_s8 + $0x78] sm:$0xff] }
 0x3df   : > { %v2790_v18 = vld [vmem:[%s9200_s8 + $0xf8] sm:$0xff] }
 0x3e0   : > { %v2114_v21 = vmul.f32 1.442695, %v2107_v19  ;;  %v2112_v22 = vmul.f32 1.442695, %v2106_v20  ;;  %v2773_v19 = vld [vmem:[%s9200_s8 + $0x70] sm:$0xff] }
 0x3e1   : > { %v2789_v20 = vld [vmem:[%s9200_s8 + $0xf0] sm:$0xff] }
 0x3e2   : > { %6717 = vpow2.f32 %v2114_v21  ;;  %v2772_v21 = vld [vmem:[%s9200_s8 + $0x68] sm:$0xff] }
 0x3e3   : > { %6719 = vpow2.f32 %v2112_v22  ;;  %v2788_v22 = vld [vmem:[%s9200_s8 + $0xe8] sm:$0xff] }
 0x3ef   : > { %v6718_v23 = vpop.eup %6717 }
 0x3f0   : > { %v6720_v24 = vpop.eup %6719  ;;  %v2125_v25 = vsel %vm2091_vm4, %v6718_v23, 0.0 }
 0x3f1   : > { %2126 = vadd.xlane.f32.xlu1 %v2125_v25  ;;  %v2122_v26 = vsel %vm2091_vm4, %v6720_v24, 0.0  ;;  %v2770_v25 = vld [vmem:[%s9200_s8 + $0x58] sm:$0xff] }
 0x3f2   : > { %2123 = vadd.xlane.f32.xlu0 %v2122_v26  ;;  %v2786_v26 = vld [vmem:[%s9200_s8 + $0xd8] sm:$0xff] }
 0x458   : > { %v2118_v27 = vpop.xlane.xlu0 %2117 }
 0x459   : > { %6721 = vrcp.f32 %v2118_v27  ;;  %v2769_v27 = vld [vmem:[%s9200_s8 + $0x50] sm:$0xff] }
 0x45c   : > { %v2121_v28 = vpop.xlane.xlu1 %2120 }
 0x45d   : > { %6723 = vrcp.f32 %v2121_v28  ;;  %v2785_v28 = vld [vmem:[%s9200_s8 + $0xd0] sm:$0xff] }
 0x466   : > { %v6722_v29 = vpop.eup %6721 }
 0x467   : > { %v2132_v30 = vmul.f32 %v6722_v29, %v6714_v13  ;;  %v2768_v29 = vld [vmem:[%s9200_s8 + $0x48] sm:$0xff] }
 0x469   : > { %6103 = vmatmul.mubr.msk.f32.vlgmr.msra.gmra.mxu0 %vm2091_vm4, %v2132_v30  ;;  %v2784_v30 = vld [vmem:[%s9200_s8 + $0xc8] sm:$0xff] }
 0x46a   : > { %v6724_v31 = vpop.eup %6723  ;;  %6111 = vmatpush3.msra.mxu0 %v1712_v48  ;;  %6112 = vmatprep.mubr.msk.f32.mxu0 %vm6817_vm0, %v6816_v5  ;;  %v936_v48 = vld [vmem:[%s9199_s7 + $0x50] sm:$0xff]  ;;  %s9202_s7 = sld [smem:[#allocation11_spill]] }
 0x46b   : > { %v2133_v32 = vmul.f32 %v6724_v31, %v6716_v15  ;;  %6120 = vmatprep.subr.mxu0 %v6816_v5  ;;  %v2767_v31 = vld [vmem:[%s9200_s8 + $0x40] sm:$0xff] }
 0x46d   : > { %6108 = vmatmul.mubr.msk.f32.vlgmr.msra.gmra.mxu1 %vm2091_vm4, %v2133_v32  ;;  %v2783_v32 = vld [vmem:[%s9200_s8 + $0xc0] sm:$0xff] }
 0x46e   : > { %6116 = vmatpush3.msra.mxu1 %v7840_v49  ;;  %6117 = vmatprep.mubr.msk.f32.mxu1 %vm6817_vm0, %v6816_v5 }
 0x46f   : > { %6131 = vmatprep.subr.mxu1 %v6816_v5 }
 0x470   : > { %s695_s3 = scalar_lea.vmem %s9202_s7, %s9201_s27  ;;  %s5142_s27 = sshll.u32 %s6955_s4, 7 }
 0x471   : > { %s5022_s24 = scalar_lea.hbm %s9165_s22, %s5142_s27  ;;  %s6760_s4 = scalar_lea.vmem %s6759_s2, 256 }
 0x47a   : > { %v2127_v51 = vpop.xlane.xlu1 %2126 }
 0x47b   : > { %6725 = vrcp.f32 %v2127_v51  ;;  %v2124_v33 = vpop.xlane.xlu0 %2123  ;;  %v2766_v51 = vld [vmem:[%s9200_s8 + $0x38] sm:$0xff] }
 0x47c   : > { %6727 = vrcp.f32 %v2124_v33  ;;  %v2782_v33 = vld [vmem:[%s9200_s8 + $0xb8] sm:$0xff] }
 0x488   : > { %v6726_v34 = vpop.eup %6725 }
 0x489   : > { %v6728_v35 = vpop.eup %6727  ;;  %v2135_v36 = vmul.f32 %v6726_v34, %v6718_v23  ;;  %v2771_v23 = vld [vmem:[%s9200_s8 + $0x60] sm:$0xff]  ;;  %v2765_v34 = vld [vmem:[%s9200_s8 + $0x30] sm:$0xff] }
 0x48a   : > { %v2134_v38 = vmul.f32 %v6728_v35, %v6720_v24  ;;  %v2787_v24 = vld [vmem:[%s9200_s8 + $0xe0] sm:$0xff]  ;;  %v2781_v35 = vld [vmem:[%s9200_s8 + $0xb0] sm:$0xff] }
 0x48b   : > { %6118 = vmatmul.mubr.msk.f32.vlgmr.msra.gmra.mxu1 %vm2091_vm4, %v2135_v36  ;;  %v2764_v36 = vld [vmem:[%s9200_s8 + $0x28] sm:$0xff] }
 0x48c   : > { %6113 = vmatmul.mubr.msk.f32.vlgmr.msra.gmra.mxu0 %vm2091_vm4, %v2134_v38  ;;  %6132 = vmatpush3.msra.mxu1 %v933_v37  ;;  %v2780_v37 = vld [vmem:[%s9200_s8 + $0xa8] sm:$0xff]  ;;  %v2763_v38 = vld [vmem:[%s9200_s8 + $0x20] sm:$0xff] }
 0x48d   : > { %6121 = vmatpush3.msra.mxu0 %v929_v39  ;;  %6133 = vmatprep.subr.mxu1 %v6816_v5  ;;  %v2779_v39 = vld [vmem:[%s9200_s8 + $0xa0] sm:$0xff] }
 0x48e   : > { %6122 = vmatprep.subr.mxu0 %v6816_v5  ;;  %6128 = vmatprep.mubr.msk.f32.mxu0 %vm6817_vm0, %v6816_v5 }
 0x48f   : > { %6123 = vmatpush3.msra.mxu0 %v928_v40  ;;  %6139 = vmatprep.mubr.msk.f32.mxu1 %vm6817_vm0, %v6816_v5  ;;  %v2762_v40 = vld [vmem:[%s9200_s8 + $0x18] sm:$0xff] }
 0x490   : > { %6124 = vmatprep.subr.mxu0 %v6816_v5  ;;  %6134 = vmatpush3.msra.mxu1 %v932_v43  ;;  %v2777_v43 = vld [vmem:[%s9200_s8 + $0x90] sm:$0xff] }
 0x491   : > { %6125 = vmatpush3.msra.mxu0 %v927_v41  ;;  %6135 = vmatprep.subr.mxu1 %v6816_v5  ;;  %v2778_v41 = vld [vmem:[%s9200_s8 + $0x98] sm:$0xff] }
 0x492   : > { %6126 = vmatprep.subr.mxu0 %v6816_v5  ;;  %6136 = vmatpush3.msra.mxu1 %v931_v44  ;;  %v2760_v44 = vld [vmem:[%s9200_s8 + $0x8] sm:$0xff] }
 0x493   : > { %6127 = vmatpush3.msra.mxu0 %v926_v42  ;;  %6137 = vmatprep.subr.mxu1 %v6816_v5  ;;  %v2761_v42 = vld [vmem:[%s9200_s8 + $0x10] sm:$0xff] }
 0x494   : > { %6142 = vmatprep.subr.mxu0 %v6816_v5  ;;  %6138 = vmatpush3.msra.mxu1 %v930_v45  ;;  %v2776_v45 = vld [vmem:[%s9200_s8 + $0x88] sm:$0xff] }
 0x495   : > { %6153 = vmatprep.subr.mxu1 %v6816_v5 }
 0x529   : > { %v2205_v47 = vpop.f32.mrf.mxu0 }
 0x52a   : > { %6129 = vmatmul.mubr.msk.f32.vlgmr.msra.gmra.mxu0 %vm1786_vm3, %v2205_v47  ;;  %v2775_v47 = vld [vmem:[%s9200_s8 + $0x80] sm:$0xff] }
 0x52b   : > { %v6104_v49 = vpop.f32.mrf.mxu0  ;;  %6143 = vmatpush3.msra.mxu0 %v937_v46  ;;  %6150 = vmatprep.mubr.msk.f32.mxu0 %vm6817_vm0, %v6816_v5  ;;  %v2759_v46 = vld [vmem:[%s9200_s8] sm:$0xff] }
 0x52c   : > { %6144 = vmatprep.subr.mxu0 %v6816_v5 }
 0x52d   : > { %v2278_v53 = vpop.f32.mrf.mxu1  ;;  %6145 = vmatpush3.msra.mxu0 %v936_v48 }
 0x52e   : > { %6140 = vmatmul.mubr.msk.f32.vlgmr.msra.gmra.mxu1 %vm1786_vm3, %v2278_v53  ;;  %6146 = vmatprep.subr.mxu0 %v6816_v5 }
 0x52f   : > { %v6109_v56 = vpop.f32.mrf.mxu1  ;;  %6154 = vmatpush3.msra.mxu1 %v941_v50  ;;  %6147 = vmatpush3.msra.mxu0 %v935_v52 }
 0x530   : > { %6155 = vmatprep.subr.mxu1 %v6816_v5  ;;  %6148 = vmatprep.subr.mxu0 %v6816_v5 }
 0x531   : > { %6156 = vmatpush3.msra.mxu1 %v940_v54  ;;  %6149 = vmatpush3.msra.mxu0 %v934_v55 }
 0x532   : > { %6157 = vmatprep.subr.mxu1 %v6816_v5  ;;  %6161 = vmatprep.mubr.msk.f32.mxu1 %vm6817_vm0, %v6816_v5 }
 0x533   : > { %6158 = vmatpush3.msra.mxu1 %v939_v57  ;;  %6164 = vmatprep.subr.mxu0 %v6816_v5  ;;  %v5120_v57 = vld [vmem:[%s9161_s18] ss:$0 sm:$0xff] }
 0x534   : > { %6159 = vmatprep.subr.mxu1 %v6816_v5 }
 0x535   : > { %6160 = vmatpush3.msra.mxu1 %v938_v58 }
 0x536   : > { %6199 = vmatprep.subr.mxu1 %v6816_v5 }
 0x54b   : > { %v2424_v59 = vpop.f32.mrf.mxu1 }
 0x54c   : > { %v2351_v60 = vpop.f32.mrf.mxu0  ;;  %6162 = vmatmul.mubr.msk.f32.vlgmr.msra.gmra.mxu1 %vm1786_vm3, %v2424_v59 }
 0x54d   : > { %6151 = vmatmul.mubr.msk.f32.vlgmr.msra.gmra.mxu0 %vm1786_vm3, %v2351_v60  ;;  %v6119_v61 = vpop.f32.mrf.mxu1  ;;  %6231 = vmatprep.mubr.msk.f32.mxu1 %vm6817_vm0, %v6816_v5  ;;  %v5121_v60 = vld [vmem:[%s9162_s19] ss:$0 sm:$0xff] }
 0x54e   : > { %v6114_v62 = vpop.f32.mrf.mxu0  ;;  %6196 = vmatprep.mubr.msk.f32.mxu0 %vm6817_vm0, %v6816_v5  ;;  %6165 = vmatpush3.msra.mxu0 %v2774_v17  ;;  %v2798_v17 = vld [vmem:[%s9200_s8 + $0x138] sm:$0xff] }
 0x54f   : > { %6200 = vmatpush3.msra.mxu1 %v2790_v18  ;;  %6166 = vmatprep.subr.mxu0 %v6816_v5  ;;  %v2814_v18 = vld [vmem:[%s9200_s8 + $0x1b8] sm:$0xff] }
 0x550   : > { %6201 = vmatprep.subr.mxu1 %v6816_v5  ;;  %6167 = vmatpush3.msra.mxu0 %v2773_v19  ;;  %v2797_v19 = vld [vmem:[%s9200_s8 + $0x130] sm:$0xff] }
 0x551   : > { %6202 = vmatpush3.msra.mxu1 %v2789_v20  ;;  %6168 = vmatprep.subr.mxu0 %v6816_v5  ;;  %v2813_v20 = vld [vmem:[%s9200_s8 + $0x1b0] sm:$0xff] }
 0x552   : > { %6203 = vmatprep.subr.mxu1 %v6816_v5  ;;  %6169 = vmatpush3.msra.mxu0 %v2772_v21  ;;  %v2796_v21 = vld [vmem:[%s9200_s8 + $0x128] sm:$0xff] }
 0x553   : > { %6204 = vmatpush3.msra.mxu1 %v2788_v22  ;;  %6170 = vmatprep.subr.mxu0 %v6816_v5  ;;  %v2812_v22 = vld [vmem:[%s9200_s8 + $0x1a8] sm:$0xff] }
 0x554   : > { %6205 = vmatprep.subr.mxu1 %v6816_v5  ;;  %6171 = vmatpush3.msra.mxu0 %v2771_v23  ;;  %v2795_v23 = vld [vmem:[%s9200_s8 + $0x120] sm:$0xff] }
 0x555   : > { %6206 = vmatpush3.msra.mxu1 %v2787_v24  ;;  %6172 = vmatprep.subr.mxu0 %v6816_v5  ;;  %v2811_v24 = vld [vmem:[%s9200_s8 + $0x1a0] sm:$0xff] }
 0x556   : > { %6207 = vmatprep.subr.mxu1 %v6816_v5  ;;  %6173 = vmatpush3.msra.mxu0 %v2770_v25  ;;  %v2794_v25 = vld [vmem:[%s9200_s8 + $0x118] sm:$0xff] }
 0x557   : > { %6208 = vmatpush3.msra.mxu1 %v2786_v26  ;;  %6174 = vmatprep.subr.mxu0 %v6816_v5  ;;  %v2810_v26 = vld [vmem:[%s9200_s8 + $0x198] sm:$0xff] }
 0x558   : > { %6209 = vmatprep.subr.mxu1 %v6816_v5  ;;  %6175 = vmatpush3.msra.mxu0 %v2769_v27  ;;  %v2793_v27 = vld [vmem:[%s9200_s8 + $0x110] sm:$0xff] }
 0x559   : > { %6210 = vmatpush3.msra.mxu1 %v2785_v28  ;;  %6176 = vmatprep.subr.mxu0 %v6816_v5  ;;  %v2809_v28 = vld [vmem:[%s9200_s8 + $0x190] sm:$0xff] }
 0x55a   : > { %6211 = vmatprep.subr.mxu1 %v6816_v5  ;;  %6177 = vmatpush3.msra.mxu0 %v2768_v29  ;;  %v2792_v29 = vld [vmem:[%s9200_s8 + $0x108] sm:$0xff] }
 0x55b   : > { %6212 = vmatpush3.msra.mxu1 %v2784_v30  ;;  %6178 = vmatprep.subr.mxu0 %v6816_v5  ;;  %v2808_v30 = vld [vmem:[%s9200_s8 + $0x188] sm:$0xff] }
 0x55c   : > { %6213 = vmatprep.subr.mxu1 %v6816_v5  ;;  %6179 = vmatpush3.msra.mxu0 %v2767_v31  ;;  %v2791_v31 = vld [vmem:[%s9200_s8 + $0x100] sm:$0xff] }
 0x55d   : > { %6214 = vmatpush3.msra.mxu1 %v2783_v32  ;;  %6180 = vmatprep.subr.mxu0 %v6816_v5  ;;  %v2807_v32 = vld [vmem:[%s9200_s8 + $0x180] sm:$0xff] }
 0x55e   : > { %6215 = vmatprep.subr.mxu1 %v6816_v5  ;;  %6181 = vmatpush3.msra.mxu0 %v2766_v51  ;;  %v2838_v51 = vld [vmem:[%s9152_s9 + $0x78] sm:$0xff] }
 0x55f   : > { %6216 = vmatpush3.msra.mxu1 %v2782_v33  ;;  %6182 = vmatprep.subr.mxu0 %v6816_v5  ;;  %v2854_v33 = vld [vmem:[%s9152_s9 + $0xf8] sm:$0xff] }
 0x560   : > { %6217 = vmatprep.subr.mxu1 %v6816_v5  ;;  %6183 = vmatpush3.msra.mxu0 %v2765_v34  ;;  %v2837_v34 = vld [vmem:[%s9152_s9 + $0x70] sm:$0xff] }
 0x561   : > { %6218 = vmatpush3.msra.mxu1 %v2781_v35  ;;  %6184 = vmatprep.subr.mxu0 %v6816_v5  ;;  %v2853_v35 = vld [vmem:[%s9152_s9 + $0xf0] sm:$0xff] }
 0x562   : > { %6219 = vmatprep.subr.mxu1 %v6816_v5  ;;  %6185 = vmatpush3.msra.mxu0 %v2764_v36  ;;  %v2836_v36 = vld [vmem:[%s9152_s9 + $0x68] sm:$0xff] }
 0x563   : > { %6220 = vmatpush3.msra.mxu1 %v2780_v37  ;;  %6186 = vmatprep.subr.mxu0 %v6816_v5  ;;  %v2852_v37 = vld [vmem:[%s9152_s9 + $0xe8] sm:$0xff] }
 0x564   : > { %6221 = vmatprep.subr.mxu1 %v6816_v5  ;;  %6187 = vmatpush3.msra.mxu0 %v2763_v38  ;;  %v2835_v38 = vld [vmem:[%s9152_s9 + $0x60] sm:$0xff] }
 0x565   : > { %6222 = vmatpush3.msra.mxu1 %v2779_v39  ;;  %6188 = vmatprep.subr.mxu0 %v6816_v5  ;;  %v2851_v39 = vld [vmem:[%s9152_s9 + $0xe0] sm:$0xff] }
 0x566   : > { %6223 = vmatprep.subr.mxu1 %v6816_v5  ;;  %6189 = vmatpush3.msra.mxu0 %v2762_v40  ;;  %v2834_v40 = vld [vmem:[%s9152_s9 + $0x58] sm:$0xff] }
 0x567   : > { %6224 = vmatpush3.msra.mxu1 %v2778_v41  ;;  %6190 = vmatprep.subr.mxu0 %v6816_v5  ;;  %v2850_v41 = vld [vmem:[%s9152_s9 + $0xd8] sm:$0xff] }
 0x568   : > { %6225 = vmatprep.subr.mxu1 %v6816_v5  ;;  %6191 = vmatpush3.msra.mxu0 %v2761_v42  ;;  %v2833_v42 = vld [vmem:[%s9152_s9 + $0x50] sm:$0xff] }
 0x569   : > { %6226 = vmatpush3.msra.mxu1 %v2777_v43  ;;  %6192 = vmatprep.subr.mxu0 %v6816_v5  ;;  %v2849_v43 = vld [vmem:[%s9152_s9 + $0xd0] sm:$0xff] }
 0x56a   : > { %6227 = vmatprep.subr.mxu1 %v6816_v5  ;;  %6193 = vmatpush3.msra.mxu0 %v2760_v44  ;;  %v2832_v44 = vld [vmem:[%s9152_s9 + $0x48] sm:$0xff] }
 0x56b   : > { %6228 = vmatpush3.msra.mxu1 %v2776_v45  ;;  %6194 = vmatprep.subr.mxu0 %v6816_v5  ;;  %v2848_v45 = vld [vmem:[%s9152_s9 + $0xc8] sm:$0xff] }
 0x56c   : > { %6229 = vmatprep.subr.mxu1 %v6816_v5  ;;  %6195 = vmatpush3.msra.mxu0 %v2759_v46  ;;  %v2831_v46 = vld [vmem:[%s9152_s9 + $0x40] sm:$0xff] }
 0x56d   : > { %6230 = vmatpush3.msra.mxu1 %v2775_v47  ;;  %6234 = vmatprep.subr.mxu0 %v6816_v5  ;;  %v2847_v47 = vld [vmem:[%s9152_s9 + $0xc0] sm:$0xff] }
 0x56e   : > { %6269 = vmatprep.subr.mxu1 %v6816_v5 }
 0x5ea   : > { %v2497_v63 = vpop.f32.mrf.mxu0 }
 0x5ec   : > { %v6130_v0 = vpop.f32.mrf.mxu0 }
 0x5ed   : > { %v2822_v0 = vld [vmem:[%s9200_s8 + $0x1f8] sm:$0xff] }
 0x5ee   : > { %v2570_v1 = vpop.f32.mrf.mxu1 }
 0x5ef   : > { %v2720_v3 = vadd.f32 %v2570_v1, %v2497_v63  ;;  %v2806_v63 = vld [vmem:[%s9200_s8 + $0x178] sm:$0xff]  ;;  %v2805_v1 = vld [vmem:[%s9200_s8 + $0x170] sm:$0xff] }
 0x5f0   : > { %v6141_v2 = vpop.f32.mrf.mxu1 }
 0x5f1   : > { %v2821_v2 = vld [vmem:[%s9200_s8 + $0x1f0] sm:$0xff] }
 0x60c   : > { %v2716_v4 = vpop.f32.mrf.mxu1 }
 0x60d   : > { %v2643_v6 = vpop.f32.mrf.mxu0 }
 0x60e   : > { %v2721_v7 = vadd.f32 %v2720_v3, %v2643_v6  ;;  %v6163_v8 = vpop.f32.mrf.mxu1  ;;  %v2804_v3 = vld [vmem:[%s9200_s8 + $0x168] sm:$0xff]  ;;  %v2803_v6 = vld [vmem:[%s9200_s8 + $0x160] sm:$0xff] }
 0x60f   : > { %v6152_v9 = vpop.f32.mrf.mxu0  ;;  %v2802_v8 = vld [vmem:[%s9200_s8 + $0x158] sm:$0xff] }
 0x610   : > { %v2722_v10 = vadd.f32 %v2721_v7, %v2716_v4  ;;  %v2820_v4 = vld [vmem:[%s9200_s8 + $0x1e8] sm:$0xff]  ;;  %v2819_v7 = vld [vmem:[%s9200_s8 + $0x1e0] sm:$0xff]  ;;  %v2818_v9 = vld [vmem:[%s9200_s8 + $0x1d8] sm:$0xff] }
 0x612   : > { %v7945_v12 = vadd.f32 %v6753_v11, %v2722_v10  ;;  %v2801_v10 = vld [vmem:[%s9200_s8 + $0x150] sm:$0xff] }
 0x613   : > { %v2817_v11 = vld [vmem:[%s9200_s8 + $0x1d0] sm:$0xff] }
 0x614   : > { %2726 = vadd.xlane.f32.xlu0 %v7945_v12 }
 0x69d   : > { %v2727_v13 = vpop.xlane.xlu0 %2726 }
 0x69e   : > { %v2728_v14 = vmul.f32 0.0078125, %v2727_v13  ;;  %v2800_v13 = vld [vmem:[%s9200_s8 + $0x148] sm:$0xff] }
 0x6a0   : > { %v7949_v15 = vsub.f32 %v7945_v12, %v2728_v14  ;;  %v2816_v14 = vld [vmem:[%s9200_s8 + $0x1c8] sm:$0xff] }
 0x6a2   : > { %v2730_v16 = vmul.f32 %v7949_v15, %v7949_v15  ;;  %v2747_v58 = vmul.f32 %v5120_v57, %v7949_v15  ;;  %v2799_v15 = vld [vmem:[%s9200_s8 + $0x140] sm:$0xff]  ;;  %v2826_v57 = vld [vmem:[%s9152_s9 + $0x18] sm:$0xff] }
 0x6a4   : > { %2731 = vadd.xlane.f32.xlu1 %v2730_v16  ;;  %v2815_v16 = vld [vmem:[%s9200_s8 + $0x1c0] sm:$0xff]  ;;  %s685_s8 = sand.u32 1, %s6806_s28  }
 0x6a5   : > { %s5011_s0 = scalar_lea.sflag [#allocation3], %s685_s8 }
 0x72d   : > { %v2732_v48 = vpop.xlane.xlu1 %2731 }
 0x72e   : > { %v2733_v49 = vmul.f32 0.007874016, %v2732_v48  ;;  %v2830_v48 = vld [vmem:[%s9152_s9 + $0x38] sm:$0xff] }
 0x730   : > { %6729 = vrsqrt.f32 %v2733_v49  ;;  %vm2736_vm5 = vcmp.eq.f32.partialorder %v2733_v49, inf  ;;  %v2739_v53 = vand.u32 2147483648, %v2733_v49  ;;  %vm2738_vm6 = vcmp.eq.f32.partialorder %v2733_v49, 0.0 }
 0x73d   : > { %v6730_v50 = vpop.eup %6729 }
 0x73e   : > { %v2735_v52 = vmul.f32 %v6730_v50, %v2733_v49  ;;  %v2829_v50 = vld [vmem:[%s9152_s9 + $0x30] sm:$0xff] }
 0x740   : > { %v2737_v54 = vsel %vm2736_vm5, %v2733_v49, %v2735_v52  ;;  %v2846_v49 = vld [vmem:[%s9152_s9 + $0xb8] sm:$0xff]  ;;  %v2845_v52 = vld [vmem:[%s9152_s9 + $0xb0] sm:$0xff] }
 0x741   : > { %v2740_v55 = vsel %vm2738_vm6, %v2739_v53, %v2737_v54  ;;  %v2828_v53 = vld [vmem:[%s9152_s9 + $0x28] sm:$0xff] }
 0x742   : > { %v2748_v56 = vadd.f32 1e-06, %v2740_v55  ;;  %v2844_v54 = vld [vmem:[%s9152_s9 + $0xa8] sm:$0xff]  ;;  %v2827_v55 = vld [vmem:[%s9152_s9 + $0x20] sm:$0xff] }
 0x744   : > { %6731 = vrcp.f32 %v2748_v56  ;;  %v2843_v56 = vld [vmem:[%s9152_s9 + $0xa0] sm:$0xff] }
 0x751   : > { %v6732_v59 = vpop.eup %6731 }
 0x752   : > { %v2750_v61 = vmul.f32 %v6732_v59, %v2747_v58  ;;  %v2842_v58 = vld [vmem:[%s9152_s9 + $0x98] sm:$0xff]  ;;  %v2825_v59 = vld [vmem:[%s9152_s9 + $0x10] sm:$0xff] }
 0x754   : > { %v8088_v62 = vadd.f32 %v5121_v60, %v2750_v61  ;;  %v2841_v60 = vld [vmem:[%s9152_s9 + $0x90] sm:$0xff]  ;;  %v2824_v61 = vld [vmem:[%s9152_s9 + $0x8] sm:$0xff] }
 0x756   : > { %6197 = vmatmul.mubr.f32.vlgmr.msra.gmra.mxu0 %v8088_v62  ;;  %6232 = vmatmul.mubr.f32.vlgmr.msra.gmra.mxu1 %v8088_v62 }
 0x757   : > { %6235 = vmatpush3.msra.mxu0 %v2806_v63  ;;  %6270 = vmatpush3.msra.mxu1 %v2822_v0  ;;  %v2823_v63 = vld [vmem:[%s9152_s9] sm:$0xff] }
 0x758   : > { %6236 = vmatprep.subr.mxu0 %v6816_v5  ;;  %6271 = vmatprep.subr.mxu1 %v6816_v5  ;;  %v2839_v0 = vld [vmem:[%s9152_s9 + $0x80] sm:$0xff] }
 0x759   : > { %6237 = vmatpush3.msra.mxu0 %v2805_v1  ;;  %6272 = vmatpush3.msra.mxu1 %v2821_v2  ;;  %v8355_v1 = vld [vmem:[%s695_s3] sm:$0xff]  ;;  %v2870_v2 = vld [vmem:[%s9152_s9 + $0x178] sm:$0xff] }
 0x75a   : > { %6238 = vmatprep.subr.mxu0 %v6816_v5  ;;  %6273 = vmatprep.subr.mxu1 %v6816_v5 }
 0x75b   : > { %6239 = vmatpush3.msra.mxu0 %v2804_v3  ;;  %6274 = vmatpush3.msra.mxu1 %v2820_v4  ;;  %v2886_v3 = vld [vmem:[%s9152_s9 + $0x1f8] sm:$0xff]  ;;  %v2869_v4 = vld [vmem:[%s9152_s9 + $0x170] sm:$0xff] }
 0x75c   : > { %6240 = vmatprep.subr.mxu0 %v6816_v5  ;;  %6275 = vmatprep.subr.mxu1 %v6816_v5 }
 0x75d   : > { %6241 = vmatpush3.msra.mxu0 %v2803_v6  ;;  %6276 = vmatpush3.msra.mxu1 %v2819_v7  ;;  %v2885_v6 = vld [vmem:[%s9152_s9 + $0x1f0] sm:$0xff]  ;;  %v2868_v7 = vld [vmem:[%s9152_s9 + $0x168] sm:$0xff] }
 0x75e   : > { %6242 = vmatprep.subr.mxu0 %v6816_v5  ;;  %6277 = vmatprep.subr.mxu1 %v6816_v5 }
 0x75f   : > { %6243 = vmatpush3.msra.mxu0 %v2802_v8  ;;  %6278 = vmatpush3.msra.mxu1 %v2818_v9  ;;  %v2884_v8 = vld [vmem:[%s9152_s9 + $0x1e8] sm:$0xff]  ;;  %v2867_v9 = vld [vmem:[%s9152_s9 + $0x160] sm:$0xff] }
 0x760   : > { %6244 = vmatprep.subr.mxu0 %v6816_v5  ;;  %6279 = vmatprep.subr.mxu1 %v6816_v5 }
 0x761   : > { %6245 = vmatpush3.msra.mxu0 %v2801_v10  ;;  %6280 = vmatpush3.msra.mxu1 %v2817_v11  ;;  %v2883_v10 = vld [vmem:[%s9152_s9 + $0x1e0] sm:$0xff]  ;;  %v2866_v11 = vld [vmem:[%s9152_s9 + $0x158] sm:$0xff] }
 0x762   : > { %6246 = vmatprep.subr.mxu0 %v6816_v5  ;;  %6281 = vmatprep.subr.mxu1 %v6816_v5 }
 0x763   : > { %6247 = vmatpush3.msra.mxu0 %v2800_v13  ;;  %6282 = vmatpush3.msra.mxu1 %v2816_v14  ;;  %v2882_v13 = vld [vmem:[%s9152_s9 + $0x1d8] sm:$0xff]  ;;  %v2865_v14 = vld [vmem:[%s9152_s9 + $0x150] sm:$0xff] }
 0x764   : > { %6248 = vmatprep.subr.mxu0 %v6816_v5  ;;  %6283 = vmatprep.subr.mxu1 %v6816_v5 }
 0x765   : > { %6249 = vmatpush3.msra.mxu0 %v2799_v15  ;;  %6284 = vmatpush3.msra.mxu1 %v2815_v16  ;;  %v2881_v15 = vld [vmem:[%s9152_s9 + $0x1d0] sm:$0xff]  ;;  %v2864_v16 = vld [vmem:[%s9152_s9 + $0x148] sm:$0xff] }
 0x766   : > { %6250 = vmatprep.subr.mxu0 %v6816_v5  ;;  %6285 = vmatprep.subr.mxu1 %v6816_v5 }
 0x767   : > { %6251 = vmatpush3.msra.mxu0 %v2798_v17  ;;  %6286 = vmatpush3.msra.mxu1 %v2814_v18  ;;  %v2880_v17 = vld [vmem:[%s9152_s9 + $0x1c8] sm:$0xff]  ;;  %v2863_v18 = vld [vmem:[%s9152_s9 + $0x140] sm:$0xff] }
 0x768   : > { %6252 = vmatprep.subr.mxu0 %v6816_v5  ;;  %6287 = vmatprep.subr.mxu1 %v6816_v5 }
 0x769   : > { %6253 = vmatpush3.msra.mxu0 %v2797_v19  ;;  %6288 = vmatpush3.msra.mxu1 %v2813_v20  ;;  %v2879_v19 = vld [vmem:[%s9152_s9 + $0x1c0] sm:$0xff]  ;;  %v2862_v20 = vld [vmem:[%s9152_s9 + $0x138] sm:$0xff] }
 0x76a   : > { %6254 = vmatprep.subr.mxu0 %v6816_v5  ;;  %6289 = vmatprep.subr.mxu1 %v6816_v5 }
 0x76b   : > { %6255 = vmatpush3.msra.mxu0 %v2796_v21  ;;  %6290 = vmatpush3.msra.mxu1 %v2812_v22  ;;  %v2878_v21 = vld [vmem:[%s9152_s9 + $0x1b8] sm:$0xff]  ;;  %v2861_v22 = vld [vmem:[%s9152_s9 + $0x130] sm:$0xff] }
 0x76c   : > { %6256 = vmatprep.subr.mxu0 %v6816_v5  ;;  %6291 = vmatprep.subr.mxu1 %v6816_v5 }
 0x76d   : > { %6257 = vmatpush3.msra.mxu0 %v2795_v23  ;;  %6292 = vmatpush3.msra.mxu1 %v2811_v24  ;;  %v2877_v23 = vld [vmem:[%s9152_s9 + $0x1b0] sm:$0xff]  ;;  %v2860_v24 = vld [vmem:[%s9152_s9 + $0x128] sm:$0xff] }
 0x76e   : > { %6258 = vmatprep.subr.mxu0 %v6816_v5  ;;  %6293 = vmatprep.subr.mxu1 %v6816_v5 }
 0x76f   : > { %6259 = vmatpush3.msra.mxu0 %v2794_v25  ;;  %6294 = vmatpush3.msra.mxu1 %v2810_v26  ;;  %v2876_v25 = vld [vmem:[%s9152_s9 + $0x1a8] sm:$0xff]  ;;  %v2859_v26 = vld [vmem:[%s9152_s9 + $0x120] sm:$0xff] }
 0x770   : > { %6260 = vmatprep.subr.mxu0 %v6816_v5  ;;  %6295 = vmatprep.subr.mxu1 %v6816_v5 }
 0x771   : > { %6261 = vmatpush3.msra.mxu0 %v2793_v27  ;;  %6296 = vmatpush3.msra.mxu1 %v2809_v28  ;;  %v2875_v27 = vld [vmem:[%s9152_s9 + $0x1a0] sm:$0xff]  ;;  %v2858_v28 = vld [vmem:[%s9152_s9 + $0x118] sm:$0xff] }
 0x772   : > { %6262 = vmatprep.subr.mxu0 %v6816_v5  ;;  %6297 = vmatprep.subr.mxu1 %v6816_v5 }
 0x773   : > { %6263 = vmatpush3.msra.mxu0 %v2792_v29  ;;  %6298 = vmatpush3.msra.mxu1 %v2808_v30  ;;  %v2874_v29 = vld [vmem:[%s9152_s9 + $0x198] sm:$0xff]  ;;  %v2857_v30 = vld [vmem:[%s9152_s9 + $0x110] sm:$0xff] }
 0x774   : > { %6264 = vmatprep.subr.mxu0 %v6816_v5  ;;  %6299 = vmatprep.subr.mxu1 %v6816_v5 }
 0x775   : > { %6265 = vmatpush3.msra.mxu0 %v2791_v31  ;;  %6266 = vmatprep.mubr.msk.f32.mxu0 %vm6817_vm0, %v6816_v5  ;;  %v2873_v31 = vld [vmem:[%s9152_s9 + $0x190] sm:$0xff] }
 0x776   : > { %6300 = vmatpush3.msra.mxu1 %v2807_v32  ;;  %6301 = vmatprep.mubr.msk.f32.mxu1 %vm6817_vm0, %v6816_v5  ;;  %v2856_v32 = vld [vmem:[%s9152_s9 + $0x108] sm:$0xff] }
 0x777   : > { %6267 = vmatmul.mubr.f32.vlgmr.msra.gmra.mxu0 %v8088_v62  ;;  %6302 = vmatmul.mubr.f32.vlgmr.msra.gmra.mxu1 %v8088_v62  ;;  %v2840_v62 = vld [vmem:[%s9152_s9 + $0x88] sm:$0xff] }
 0x778   : > { %6304 = vmatprep.subr.mxu0 %v6816_v5  ;;  %6339 = vmatprep.subr.mxu1 %v6816_v5 }
 0x779   : > { %6305 = vmatpush3.msra.mxu0 %v2838_v51  ;;  %6340 = vmatpush3.msra.mxu1 %v2854_v33  ;;  %v2872_v51 = vld [vmem:[%s9152_s9 + $0x188] sm:$0xff]  ;;  %v2855_v33 = vld [vmem:[%s9152_s9 + $0x100] sm:$0xff] }
 0x77a   : > { %6306 = vmatprep.subr.mxu0 %v6816_v5  ;;  %6341 = vmatprep.subr.mxu1 %v6816_v5 }
 0x77b   : > { %6307 = vmatpush3.msra.mxu0 %v2837_v34  ;;  %6342 = vmatpush3.msra.mxu1 %v2853_v35  ;;  %v2871_v34 = vld [vmem:[%s9152_s9 + $0x180] sm:$0xff]  ;;  %v2902_v35 = vld [vmem:[%s9153_s10 + $0x78] sm:$0xff] }
 0x77c   : > { %6308 = vmatprep.subr.mxu0 %v6816_v5  ;;  %6343 = vmatprep.subr.mxu1 %v6816_v5 }
 0x77d   : > { %6309 = vmatpush3.msra.mxu0 %v2836_v36  ;;  %6344 = vmatpush3.msra.mxu1 %v2852_v37  ;;  %v2918_v36 = vld [vmem:[%s9153_s10 + $0xf8] sm:$0xff]  ;;  %v2901_v37 = vld [vmem:[%s9153_s10 + $0x70] sm:$0xff] }
 0x77e   : > { %6310 = vmatprep.subr.mxu0 %v6816_v5  ;;  %6345 = vmatprep.subr.mxu1 %v6816_v5 }
 0x77f   : > { %6311 = vmatpush3.msra.mxu0 %v2835_v38  ;;  %6346 = vmatpush3.msra.mxu1 %v2851_v39  ;;  %v2917_v38 = vld [vmem:[%s9153_s10 + $0xf0] sm:$0xff]  ;;  %v2900_v39 = vld [vmem:[%s9153_s10 + $0x68] sm:$0xff] }
 0x780   : > { %6312 = vmatprep.subr.mxu0 %v6816_v5  ;;  %6347 = vmatprep.subr.mxu1 %v6816_v5 }
 0x781   : > { %6313 = vmatpush3.msra.mxu0 %v2834_v40  ;;  %6348 = vmatpush3.msra.mxu1 %v2850_v41  ;;  %v2916_v40 = vld [vmem:[%s9153_s10 + $0xe8] sm:$0xff]  ;;  %v2899_v41 = vld [vmem:[%s9153_s10 + $0x60] sm:$0xff] }
 0x782   : > { %6314 = vmatprep.subr.mxu0 %v6816_v5  ;;  %6349 = vmatprep.subr.mxu1 %v6816_v5 }
 0x783   : > { %6315 = vmatpush3.msra.mxu0 %v2833_v42  ;;  %6350 = vmatpush3.msra.mxu1 %v2849_v43  ;;  %v2915_v42 = vld [vmem:[%s9153_s10 + $0xe0] sm:$0xff]  ;;  %v2898_v43 = vld [vmem:[%s9153_s10 + $0x58] sm:$0xff] }
 0x784   : > { %6316 = vmatprep.subr.mxu0 %v6816_v5  ;;  %6351 = vmatprep.subr.mxu1 %v6816_v5 }
 0x785   : > { %6317 = vmatpush3.msra.mxu0 %v2832_v44  ;;  %6352 = vmatpush3.msra.mxu1 %v2848_v45  ;;  %v2914_v44 = vld [vmem:[%s9153_s10 + $0xd8] sm:$0xff]  ;;  %v2897_v45 = vld [vmem:[%s9153_s10 + $0x50] sm:$0xff] }
 0x786   : > { %6318 = vmatprep.subr.mxu0 %v6816_v5  ;;  %6353 = vmatprep.subr.mxu1 %v6816_v5 }
 0x787   : > { %6319 = vmatpush3.msra.mxu0 %v2831_v46  ;;  %6354 = vmatpush3.msra.mxu1 %v2847_v47  ;;  %v2913_v46 = vld [vmem:[%s9153_s10 + $0xd0] sm:$0xff]  ;;  %v2896_v47 = vld [vmem:[%s9153_s10 + $0x48] sm:$0xff] }
 0x788   : > { %6320 = vmatprep.subr.mxu0 %v6816_v5  ;;  %6355 = vmatprep.subr.mxu1 %v6816_v5 }
 0x789   : > { %6321 = vmatpush3.msra.mxu0 %v2830_v48  ;;  %6356 = vmatpush3.msra.mxu1 %v2846_v49  ;;  %v2912_v48 = vld [vmem:[%s9153_s10 + $0xc8] sm:$0xff]  ;;  %v2895_v49 = vld [vmem:[%s9153_s10 + $0x40] sm:$0xff] }
 0x78a   : > { %6322 = vmatprep.subr.mxu0 %v6816_v5  ;;  %6357 = vmatprep.subr.mxu1 %v6816_v5 }
 0x78b   : > { %6323 = vmatpush3.msra.mxu0 %v2829_v50  ;;  %6358 = vmatpush3.msra.mxu1 %v2845_v52  ;;  %v2911_v50 = vld [vmem:[%s9153_s10 + $0xc0] sm:$0xff]  ;;  %v2894_v52 = vld [vmem:[%s9153_s10 + $0x38] sm:$0xff] }
 0x78c   : > { %6324 = vmatprep.subr.mxu0 %v6816_v5  ;;  %6359 = vmatprep.subr.mxu1 %v6816_v5 }
 0x78d   : > { %6325 = vmatpush3.msra.mxu0 %v2828_v53  ;;  %6360 = vmatpush3.msra.mxu1 %v2844_v54  ;;  %v2910_v53 = vld [vmem:[%s9153_s10 + $0xb8] sm:$0xff]  ;;  %v2893_v54 = vld [vmem:[%s9153_s10 + $0x30] sm:$0xff] }
 0x78e   : > { %6326 = vmatprep.subr.mxu0 %v6816_v5  ;;  %6361 = vmatprep.subr.mxu1 %v6816_v5 }
 0x78f   : > { %6327 = vmatpush3.msra.mxu0 %v2827_v55  ;;  %6362 = vmatpush3.msra.mxu1 %v2843_v56  ;;  %v2909_v55 = vld [vmem:[%s9153_s10 + $0xb0] sm:$0xff]  ;;  %v2892_v56 = vld [vmem:[%s9153_s10 + $0x28] sm:$0xff] }
 0x790   : > { %6328 = vmatprep.subr.mxu0 %v6816_v5  ;;  %6363 = vmatprep.subr.mxu1 %v6816_v5 }
 0x791   : > { %6329 = vmatpush3.msra.mxu0 %v2826_v57  ;;  %6364 = vmatpush3.msra.mxu1 %v2842_v58  ;;  %v2908_v57 = vld [vmem:[%s9153_s10 + $0xa8] sm:$0xff]  ;;  %v2891_v58 = vld [vmem:[%s9153_s10 + $0x20] sm:$0xff] }
 0x792   : > { %6330 = vmatprep.subr.mxu0 %v6816_v5  ;;  %6365 = vmatprep.subr.mxu1 %v6816_v5 }
 0x793   : > { %6331 = vmatpush3.msra.mxu0 %v2825_v59  ;;  %6366 = vmatpush3.msra.mxu1 %v2841_v60  ;;  %v2907_v59 = vld [vmem:[%s9153_s10 + $0xa0] sm:$0xff]  ;;  %v2890_v60 = vld [vmem:[%s9153_s10 + $0x18] sm:$0xff] }
 0x794   : > { %6332 = vmatprep.subr.mxu0 %v6816_v5  ;;  %6367 = vmatprep.subr.mxu1 %v6816_v5 }
 0x795   : > { %6333 = vmatpush3.msra.mxu0 %v2824_v61  ;;  %6368 = vmatpush3.msra.mxu1 %v2840_v62  ;;  %v2906_v61 = vld [vmem:[%s9153_s10 + $0x98] sm:$0xff]  ;;  %v2889_v62 = vld [vmem:[%s9153_s10 + $0x10] sm:$0xff] }
 0x796   : > { %6334 = vmatprep.subr.mxu0 %v6816_v5  ;;  %6369 = vmatprep.subr.mxu1 %v6816_v5 }
 0x797   : > { %6335 = vmatpush3.msra.mxu0 %v2823_v63  ;;  %6336 = vmatprep.mubr.msk.f32.mxu0 %vm6817_vm0, %v6816_v5  ;;  %v2905_v63 = vld [vmem:[%s9153_s10 + $0x90] sm:$0xff] }
 0x798   : > { %6370 = vmatpush3.msra.mxu1 %v2839_v0  ;;  %6371 = vmatprep.mubr.msk.f32.mxu1 %vm6817_vm0, %v6816_v5  ;;  %v2888_v0 = vld [vmem:[%s9153_s10 + $0x8] sm:$0xff] }
 0x799   : > { %6337 = vmatmul.mubr.f32.vlgmr.msra.gmra.mxu0 %v8355_v1  ;;  %6372 = vmatmul.mubr.f32.vlgmr.msra.gmra.mxu1 %v8355_v1 }
 0x79a   : > { %6374 = vmatprep.subr.mxu0 %v6816_v5  ;;  %6409 = vmatprep.subr.mxu1 %v6816_v5 }
 0x79b   : > { %6375 = vmatpush3.msra.mxu0 %v2870_v2  ;;  %6410 = vmatpush3.msra.mxu1 %v2886_v3  ;;  %v2904_v2 = vld [vmem:[%s9153_s10 + $0x88] sm:$0xff]  ;;  %v2887_v3 = vld [vmem:[%s9153_s10] sm:$0xff] }
 0x79c   : > { %6376 = vmatprep.subr.mxu0 %v6816_v5  ;;  %6411 = vmatprep.subr.mxu1 %v6816_v5 }
 0x79d   : > { %6377 = vmatpush3.msra.mxu0 %v2869_v4  ;;  %6412 = vmatpush3.msra.mxu1 %v2885_v6  ;;  %v2903_v4 = vld [vmem:[%s9153_s10 + $0x80] sm:$0xff]  ;;  %v2934_v6 = vld [vmem:[%s9153_s10 + $0x178] sm:$0xff] }
 0x79e   : > { %6378 = vmatprep.subr.mxu0 %v6816_v5  ;;  %6413 = vmatprep.subr.mxu1 %v6816_v5 }
 0x79f   : > { %6379 = vmatpush3.msra.mxu0 %v2868_v7  ;;  %6414 = vmatpush3.msra.mxu1 %v2884_v8  ;;  %v2950_v7 = vld [vmem:[%s9153_s10 + $0x1f8] sm:$0xff]  ;;  %v2933_v8 = vld [vmem:[%s9153_s10 + $0x170] sm:$0xff] }
 0x7a0   : > { %6380 = vmatprep.subr.mxu0 %v6816_v5  ;;  %6415 = vmatprep.subr.mxu1 %v6816_v5 }
 0x7a1   : > { %6381 = vmatpush3.msra.mxu0 %v2867_v9  ;;  %6416 = vmatpush3.msra.mxu1 %v2883_v10  ;;  %v2949_v9 = vld [vmem:[%s9153_s10 + $0x1f0] sm:$0xff]  ;;  %v2932_v10 = vld [vmem:[%s9153_s10 + $0x168] sm:$0xff] }
 0x7a2   : > { %6382 = vmatprep.subr.mxu0 %v6816_v5  ;;  %6417 = vmatprep.subr.mxu1 %v6816_v5 }
 0x7a3   : > { %6383 = vmatpush3.msra.mxu0 %v2866_v11  ;;  %6418 = vmatpush3.msra.mxu1 %v2882_v13  ;;  %v2948_v11 = vld [vmem:[%s9153_s10 + $0x1e8] sm:$0xff]  ;;  %v2931_v13 = vld [vmem:[%s9153_s10 + $0x160] sm:$0xff] }
 0x7a4   : > { %6384 = vmatprep.subr.mxu0 %v6816_v5  ;;  %6419 = vmatprep.subr.mxu1 %v6816_v5 }
 0x7a5   : > { %6385 = vmatpush3.msra.mxu0 %v2865_v14  ;;  %6420 = vmatpush3.msra.mxu1 %v2881_v15  ;;  %v2947_v14 = vld [vmem:[%s9153_s10 + $0x1e0] sm:$0xff]  ;;  %v2930_v15 = vld [vmem:[%s9153_s10 + $0x158] sm:$0xff] }
 0x7a6   : > { %6386 = vmatprep.subr.mxu0 %v6816_v5  ;;  %6421 = vmatprep.subr.mxu1 %v6816_v5 }
 0x7a7   : > { %6387 = vmatpush3.msra.mxu0 %v2864_v16  ;;  %6422 = vmatpush3.msra.mxu1 %v2880_v17  ;;  %v2946_v16 = vld [vmem:[%s9153_s10 + $0x1d8] sm:$0xff]  ;;  %v2929_v17 = vld [vmem:[%s9153_s10 + $0x150] sm:$0xff] }
 0x7a8   : > { %6388 = vmatprep.subr.mxu0 %v6816_v5  ;;  %6423 = vmatprep.subr.mxu1 %v6816_v5 }
 0x7a9   : > { %6389 = vmatpush3.msra.mxu0 %v2863_v18  ;;  %6424 = vmatpush3.msra.mxu1 %v2879_v19  ;;  %v2945_v18 = vld [vmem:[%s9153_s10 + $0x1d0] sm:$0xff]  ;;  %v2928_v19 = vld [vmem:[%s9153_s10 + $0x148] sm:$0xff] }
 0x7aa   : > { %6390 = vmatprep.subr.mxu0 %v6816_v5  ;;  %6425 = vmatprep.subr.mxu1 %v6816_v5 }
 0x7ab   : > { %6391 = vmatpush3.msra.mxu0 %v2862_v20  ;;  %6426 = vmatpush3.msra.mxu1 %v2878_v21  ;;  %v2944_v20 = vld [vmem:[%s9153_s10 + $0x1c8] sm:$0xff]  ;;  %v2927_v21 = vld [vmem:[%s9153_s10 + $0x140] sm:$0xff] }
 0x7ac   : > { %6392 = vmatprep.subr.mxu0 %v6816_v5  ;;  %6427 = vmatprep.subr.mxu1 %v6816_v5 }
 0x7ad   : > { %6393 = vmatpush3.msra.mxu0 %v2861_v22  ;;  %6428 = vmatpush3.msra.mxu1 %v2877_v23  ;;  %v2943_v22 = vld [vmem:[%s9153_s10 + $0x1c0] sm:$0xff]  ;;  %v2926_v23 = vld [vmem:[%s9153_s10 + $0x138] sm:$0xff] }
 0x7ae   : > { %6394 = vmatprep.subr.mxu0 %v6816_v5  ;;  %6429 = vmatprep.subr.mxu1 %v6816_v5 }
 0x7af   : > { %6395 = vmatpush3.msra.mxu0 %v2860_v24  ;;  %6430 = vmatpush3.msra.mxu1 %v2876_v25  ;;  %v2942_v24 = vld [vmem:[%s9153_s10 + $0x1b8] sm:$0xff]  ;;  %v2925_v25 = vld [vmem:[%s9153_s10 + $0x130] sm:$0xff] }
 0x7b0   : > { %6396 = vmatprep.subr.mxu0 %v6816_v5  ;;  %6431 = vmatprep.subr.mxu1 %v6816_v5 }
 0x7b1   : > { %6397 = vmatpush3.msra.mxu0 %v2859_v26  ;;  %6432 = vmatpush3.msra.mxu1 %v2875_v27  ;;  %v2941_v26 = vld [vmem:[%s9153_s10 + $0x1b0] sm:$0xff]  ;;  %v2924_v27 = vld [vmem:[%s9153_s10 + $0x128] sm:$0xff] }
 0x7b2   : > { %6398 = vmatprep.subr.mxu0 %v6816_v5  ;;  %6433 = vmatprep.subr.mxu1 %v6816_v5 }
 0x7b3   : > { %6399 = vmatpush3.msra.mxu0 %v2858_v28  ;;  %6434 = vmatpush3.msra.mxu1 %v2874_v29  ;;  %v2940_v28 = vld [vmem:[%s9153_s10 + $0x1a8] sm:$0xff]  ;;  %v2923_v29 = vld [vmem:[%s9153_s10 + $0x120] sm:$0xff] }
 0x7b4   : > { %6400 = vmatprep.subr.mxu0 %v6816_v5  ;;  %6435 = vmatprep.subr.mxu1 %v6816_v5 }
 0x7b5   : > { %6401 = vmatpush3.msra.mxu0 %v2857_v30  ;;  %6436 = vmatpush3.msra.mxu1 %v2873_v31  ;;  %v2939_v30 = vld [vmem:[%s9153_s10 + $0x1a0] sm:$0xff]  ;;  %v2922_v31 = vld [vmem:[%s9153_s10 + $0x118] sm:$0xff] }
 0x7b6   : > { %6402 = vmatprep.subr.mxu0 %v6816_v5  ;;  %6437 = vmatprep.subr.mxu1 %v6816_v5 }
 0x7b7   : > { %6403 = vmatpush3.msra.mxu0 %v2856_v32  ;;  %6438 = vmatpush3.msra.mxu1 %v2872_v51  ;;  %v2938_v32 = vld [vmem:[%s9153_s10 + $0x198] sm:$0xff]  ;;  %v2921_v51 = vld [vmem:[%s9153_s10 + $0x110] sm:$0xff] }
 0x7b8   : > { %6404 = vmatprep.subr.mxu0 %v6816_v5  ;;  %6439 = vmatprep.subr.mxu1 %v6816_v5 }
 0x7b9   : > { %6405 = vmatpush3.msra.mxu0 %v2855_v33  ;;  %6406 = vmatprep.mubr.msk.f32.mxu0 %vm6817_vm0, %v6816_v5  ;;  %v2937_v33 = vld [vmem:[%s9153_s10 + $0x190] sm:$0xff] }
 0x7ba   : > { %6440 = vmatpush3.msra.mxu1 %v2871_v34  ;;  %6441 = vmatprep.mubr.msk.f32.mxu1 %vm6817_vm0, %v6816_v5  ;;  %v2920_v34 = vld [vmem:[%s9153_s10 + $0x108] sm:$0xff] }
 0x7bb   : > { %6407 = vmatmul.mubr.f32.vlgmr.msra.gmra.mxu0 %v8355_v1  ;;  %6442 = vmatmul.mubr.f32.vlgmr.msra.gmra.mxu1 %v8355_v1 }
 0x7bc   : > { %6444 = vmatprep.subr.mxu0 %v6816_v5  ;;  %6479 = vmatprep.subr.mxu1 %v6816_v5 }
 0x7bd   : > { %6445 = vmatpush3.msra.mxu0 %v2902_v35  ;;  %6480 = vmatpush3.msra.mxu1 %v2918_v36  ;;  %v2936_v35 = vld [vmem:[%s9153_s10 + $0x188] sm:$0xff]  ;;  %v2919_v36 = vld [vmem:[%s9153_s10 + $0x100] sm:$0xff] }
 0x7be   : > { %6446 = vmatprep.subr.mxu0 %v6816_v5  ;;  %6481 = vmatprep.subr.mxu1 %v6816_v5 }
 0x7bf   : > { %6447 = vmatpush3.msra.mxu0 %v2901_v37  ;;  %6482 = vmatpush3.msra.mxu1 %v2917_v38  ;;  %v2935_v37 = vld [vmem:[%s9153_s10 + $0x180] sm:$0xff] }
 0x7c0   : > { %6448 = vmatprep.subr.mxu0 %v6816_v5  ;;  %6483 = vmatprep.subr.mxu1 %v6816_v5 }
 0x7c1   : > { %6449 = vmatpush3.msra.mxu0 %v2900_v39  ;;  %6484 = vmatpush3.msra.mxu1 %v2916_v40 }
 0x7c2   : > { %6450 = vmatprep.subr.mxu0 %v6816_v5  ;;  %6485 = vmatprep.subr.mxu1 %v6816_v5 }
 0x7c3   : > { %6451 = vmatpush3.msra.mxu0 %v2899_v41  ;;  %6486 = vmatpush3.msra.mxu1 %v2915_v42 }
 0x7c4   : > { %6452 = vmatprep.subr.mxu0 %v6816_v5  ;;  %6487 = vmatprep.subr.mxu1 %v6816_v5 }
 0x7c5   : > { %6453 = vmatpush3.msra.mxu0 %v2898_v43  ;;  %6488 = vmatpush3.msra.mxu1 %v2914_v44 }
 0x7c6   : > { %6454 = vmatprep.subr.mxu0 %v6816_v5  ;;  %6489 = vmatprep.subr.mxu1 %v6816_v5 }
 0x7c7   : > { %6455 = vmatpush3.msra.mxu0 %v2897_v45  ;;  %6490 = vmatpush3.msra.mxu1 %v2913_v46 }
 0x7c8   : > { %6456 = vmatprep.subr.mxu0 %v6816_v5  ;;  %6491 = vmatprep.subr.mxu1 %v6816_v5 }
 0x7c9   : > { %6457 = vmatpush3.msra.mxu0 %v2896_v47  ;;  %6492 = vmatpush3.msra.mxu1 %v2912_v48 }
 0x7ca   : > { %6458 = vmatprep.subr.mxu0 %v6816_v5  ;;  %6493 = vmatprep.subr.mxu1 %v6816_v5 }
 0x7cb   : > { %6459 = vmatpush3.msra.mxu0 %v2895_v49  ;;  %6494 = vmatpush3.msra.mxu1 %v2911_v50 }
 0x7cc   : > { %6460 = vmatprep.subr.mxu0 %v6816_v5  ;;  %6495 = vmatprep.subr.mxu1 %v6816_v5 }
 0x7cd   : > { %6461 = vmatpush3.msra.mxu0 %v2894_v52  ;;  %6496 = vmatpush3.msra.mxu1 %v2910_v53 }
 0x7ce   : > { %6462 = vmatprep.subr.mxu0 %v6816_v5  ;;  %6497 = vmatprep.subr.mxu1 %v6816_v5 }
 0x7cf   : > { %6463 = vmatpush3.msra.mxu0 %v2893_v54  ;;  %6498 = vmatpush3.msra.mxu1 %v2909_v55 }
 0x7d0   : > { %6464 = vmatprep.subr.mxu0 %v6816_v5  ;;  %6499 = vmatprep.subr.mxu1 %v6816_v5 }
 0x7d1   : > { %6465 = vmatpush3.msra.mxu0 %v2892_v56  ;;  %6500 = vmatpush3.msra.mxu1 %v2908_v57 }
 0x7d2   : > { %6466 = vmatprep.subr.mxu0 %v6816_v5  ;;  %6501 = vmatprep.subr.mxu1 %v6816_v5 }
 0x7d3   : > { %6467 = vmatpush3.msra.mxu0 %v2891_v58  ;;  %6502 = vmatpush3.msra.mxu1 %v2907_v59 }
 0x7d4   : > { %6468 = vmatprep.subr.mxu0 %v6816_v5  ;;  %6503 = vmatprep.subr.mxu1 %v6816_v5 }
 0x7d5   : > { %6469 = vmatpush3.msra.mxu0 %v2890_v60  ;;  %6504 = vmatpush3.msra.mxu1 %v2906_v61 }
 0x7d6   : > { %6470 = vmatprep.subr.mxu0 %v6816_v5  ;;  %6505 = vmatprep.subr.mxu1 %v6816_v5 }
 0x7d7   : > { %6471 = vmatpush3.msra.mxu0 %v2889_v62  ;;  %6506 = vmatpush3.msra.mxu1 %v2905_v63 }
 0x7d8   : > { %6472 = vmatprep.subr.mxu0 %v6816_v5  ;;  %6507 = vmatprep.subr.mxu1 %v6816_v5 }
 0x7d9   : > { %6473 = vmatpush3.msra.mxu0 %v2888_v0  ;;  %6508 = vmatpush3.msra.mxu1 %v2904_v2 }
 0x7da   : > { %6474 = vmatprep.subr.mxu0 %v6816_v5  ;;  %6509 = vmatprep.subr.mxu1 %v6816_v5 }
 0x7db   : > { %6475 = vmatpush3.msra.mxu0 %v2887_v3  ;;  %6510 = vmatpush3.msra.mxu1 %v2903_v4  ;;  %v2758_v3 = vld [vmem:[%s9203_s26] sm:$0xff]  ;;  %s5099_s26 = sshll.u32 %s685_s8, 3 }
 0x7dc   : > { %6476 = vmatprep.mubr.msk.f32.mxu0 %vm6817_vm0, %v6816_v5  ;;  %6511 = vmatprep.mubr.msk.f32.mxu1 %vm6817_vm0, %v6816_v5  ;;  %s687_s5 = scalar_lea.vmem [#allocation2], %s5099_s26 }
 0x7dd   : > { %6514 = vmatprep.subr.mxu0 %v6816_v5  ;;  %6549 = vmatprep.subr.mxu1 %v6816_v5  ;;  %s5024_s1 = sshll.u32 %s687_s5, 4  ;;  %s5025_s1 = int_to_ptr.vmem [resolvable:$true] %s5024_s1 }
 0x7de   : > { %6477 = vmatmul.mubr.f32.vlgmr.msra.gmra.mxu0 %v8355_v1  ;;  %6512 = vmatmul.mubr.f32.vlgmr.msra.gmra.mxu1 %v8355_v1  ;;  %s6754_s7 = scalar_lea.vmem %s5025_s1, 128  ;;  %p6761_p0 = scmp.lt.s32.totalorder %s5025_s1, %s6759_s2 }
 0x7df   : > { %6515 = vmatpush3.msra.mxu0 %v2934_v6  ;;  %6550 = vmatpush3.msra.mxu1 %v2950_v7  ;;  %p6755_p11 = scmp.ne.s32.totalorder %s5025_s1, %s6754_s7  ;;  %p6762_p1 = scmp.lt.s32.totalorder %s6760_s4, %s6754_s7 }
 0x7e0   : > { %6516 = vmatprep.subr.mxu0 %v6816_v5  ;;  %6551 = vmatprep.subr.mxu1 %v6816_v5 }
 0x7e1   : > { %6517 = vmatpush3.msra.mxu0 %v2933_v8  ;;  %6552 = vmatpush3.msra.mxu1 %v2949_v9  ;;  %p6756_p12 = pnand %p6755_p11, %p6972_p5  ;;  %p6763_p2 = por %p6762_p1, %p6761_p0 }
 0x7e2   : > { %6518 = vmatprep.subr.mxu0 %v6816_v5  ;;  %6553 = vmatprep.subr.mxu1 %v6816_v5 }
 0x7e3   : > { %6519 = vmatpush3.msra.mxu0 %v2932_v10  ;;  %6554 = vmatpush3.msra.mxu1 %v2948_v11  ;;  %p6757_p13 = pneg %p6756_p12 }
 0x7e4   : > { %6520 = vmatprep.subr.mxu0 %v6816_v5  ;;  %6555 = vmatprep.subr.mxu1 %v6816_v5 }
 0x7e5   : > { %6521 = vmatpush3.msra.mxu0 %v2931_v13  ;;  %6556 = vmatpush3.msra.mxu1 %v2947_v14  ;;  %p6764_p3 = pnand %p6763_p2, %p6757_p13 }
 0x7e6   : > { %6522 = vmatprep.subr.mxu0 %v6816_v5  ;;  %6557 = vmatprep.subr.mxu1 %v6816_v5 }
 0x7e7   : > { %6523 = vmatpush3.msra.mxu0 %v2930_v15  ;;  %6558 = vmatpush3.msra.mxu1 %v2946_v16 }
 0x7e8   : > { %6524 = vmatprep.subr.mxu0 %v6816_v5  ;;  %6559 = vmatprep.subr.mxu1 %v6816_v5 }
 0x7e9   : > { %6525 = vmatpush3.msra.mxu0 %v2929_v17  ;;  %6560 = vmatpush3.msra.mxu1 %v2945_v18 }
 0x7ea   : > { %6526 = vmatprep.subr.mxu0 %v6816_v5  ;;  %6561 = vmatprep.subr.mxu1 %v6816_v5 }
 0x7eb   : > { %6527 = vmatpush3.msra.mxu0 %v2928_v19  ;;  %6562 = vmatpush3.msra.mxu1 %v2944_v20 }
 0x7ec   : > { %6528 = vmatprep.subr.mxu0 %v6816_v5  ;;  %6563 = vmatprep.subr.mxu1 %v6816_v5 }
 0x7ed   : > { %6529 = vmatpush3.msra.mxu0 %v2927_v21  ;;  %6564 = vmatpush3.msra.mxu1 %v2943_v22 }
 0x7ee   : > { %6530 = vmatprep.subr.mxu0 %v6816_v5  ;;  %6565 = vmatprep.subr.mxu1 %v6816_v5 }
 0x7ef   : > { %6531 = vmatpush3.msra.mxu0 %v2926_v23  ;;  %6566 = vmatpush3.msra.mxu1 %v2942_v24 }
 0x7f0   : > { %6532 = vmatprep.subr.mxu0 %v6816_v5  ;;  %6567 = vmatprep.subr.mxu1 %v6816_v5 }
 0x7f1   : > { %6533 = vmatpush3.msra.mxu0 %v2925_v25  ;;  %6568 = vmatpush3.msra.mxu1 %v2941_v26 }
 0x7f2   : > { %6534 = vmatprep.subr.mxu0 %v6816_v5  ;;  %6569 = vmatprep.subr.mxu1 %v6816_v5 }
 0x7f3   : > { %6535 = vmatpush3.msra.mxu0 %v2924_v27  ;;  %6570 = vmatpush3.msra.mxu1 %v2940_v28 }
 0x7f4   : > { %6536 = vmatprep.subr.mxu0 %v6816_v5  ;;  %6571 = vmatprep.subr.mxu1 %v6816_v5 }
 0x7f5   : > { %6537 = vmatpush3.msra.mxu0 %v2923_v29  ;;  %6572 = vmatpush3.msra.mxu1 %v2939_v30 }
 0x7f6   : > { %6538 = vmatprep.subr.mxu0 %v6816_v5  ;;  %6573 = vmatprep.subr.mxu1 %v6816_v5 }
 0x7f7   : > { %6539 = vmatpush3.msra.mxu0 %v2922_v31  ;;  %6574 = vmatpush3.msra.mxu1 %v2938_v32 }
 0x7f8   : > { %6540 = vmatprep.subr.mxu0 %v6816_v5  ;;  %6575 = vmatprep.subr.mxu1 %v6816_v5 }
 0x7f9   : > { %6541 = vmatpush3.msra.mxu0 %v2921_v51  ;;  %6576 = vmatpush3.msra.mxu1 %v2937_v33 }
 0x7fa   : > { %6542 = vmatprep.subr.mxu0 %v6816_v5  ;;  %6577 = vmatprep.subr.mxu1 %v6816_v5 }
 0x7fb   : > { %6543 = vmatpush3.msra.mxu0 %v2920_v34  ;;  %6578 = vmatpush3.msra.mxu1 %v2936_v35 }
 0x7fc   : > { %6544 = vmatprep.subr.mxu0 %v6816_v5  ;;  %6579 = vmatprep.subr.mxu1 %v6816_v5 }
 0x7fd   : > { %6545 = vmatpush3.msra.mxu0 %v2919_v36  ;;  %6546 = vmatprep.mubr.msk.f32.mxu0 %vm6817_vm0, %v6816_v5 }
 0x7fe   : > { %6580 = vmatpush3.msra.mxu1 %v2935_v37  ;;  %6581 = vmatprep.mubr.msk.f32.mxu1 %vm6817_vm0, %v6816_v5 }
 0x7ff   : > { %6547 = vmatmul.mubr.f32.vlgmr.msra.gmra.mxu0 %v8355_v1  ;;  %6582 = vmatmul.mubr.f32.vlgmr.msra.gmra.mxu1 %v8355_v1 }
 0x800   : > { %6584 = vmatprep.subr.mxu0 %v6816_v5  ;;  %6589 = vmatprep.subr.mxu1 %v6816_v5 }
 0x801   : > { %6586 = vmatprep.mubr.msk.f32.mxu0 %vm6817_vm0, %v6816_v5  ;;  %6591 = vmatprep.mubr.msk.f32.mxu1 %vm6817_vm0, %v6816_v5 }
 0x816   : > { %v3033_v38 = vpop.f32.mrf.mxu0  ;;  %v3103_v39 = vpop.f32.mrf.mxu1 }
 0x817   : > { %v3247_v47 = vmul.f32 0.17677669, %v3033_v38  ;;  %v3248_v48 = vmul.f32 0.17677669, %v3103_v39 }
 0x818   : > { %v6198_v40 = vpop.f32.mrf.mxu0  ;;  %v6233_v41 = vpop.f32.mrf.mxu1 }
 0x837   : > { %v3173_v42 = vpop.f32.mrf.mxu0  ;;  %v3243_v43 = vpop.f32.mrf.mxu1 }
 0x838   : > { %v3249_v54 = vmul.f32 0.17677669, %v3173_v42  ;;  %v3250_v55 = vmul.f32 0.17677669, %v3243_v43 }
 0x839   : > { %v6268_v44 = vpop.f32.mrf.mxu0  ;;  %v6303_v45 = vpop.f32.mrf.mxu1 }
 0x859   : > { %v3317_v46 = vpop.f32.mrf.mxu0  ;;  %v3387_v1 = vpop.f32.mrf.mxu1 }
 0x85a   : > { %6585 = vmatpush3.xpose.msk.msra.mxu0 %vm1786_vm3, %v3317_v46  ;;  %6590 = vmatpush3.xpose.msk.msra.mxu1 %vm1786_vm3, %v3387_v1 }
 0x85b   : > { %v6338_v49 = vpop.f32.mrf.mxu0  ;;  %v6373_v50 = vpop.f32.mrf.mxu1  ;;  %6594 = vmatprep.subr.mxu0 %v6816_v5  ;;  %6599 = vmatprep.subr.mxu1 %v6816_v5 }
 0x85d   : > { %6587 = vmatmul.mubr.msk.f32.vlgmr.msra.gmra.mxu0 %vm1786_vm3, %v3247_v47  ;;  %6592 = vmatmul.mubr.msk.f32.vlgmr.msra.gmra.mxu1 %vm1786_vm3, %v3248_v48 }
 0x85e   : > { %6596 = vmatprep.mubr.msk.f32.mxu0 %vm6817_vm0, %v6816_v5  ;;  %6601 = vmatprep.mubr.msk.f32.mxu1 %vm6817_vm0, %v6816_v5 }
 0x87b   : > { %v3457_v52 = vpop.f32.mrf.mxu0  ;;  %v3527_v53 = vpop.f32.mrf.mxu1 }
 0x87c   : > { %6595 = vmatpush3.xpose.msk.msra.mxu0 %vm1786_vm3, %v3457_v52  ;;  %6600 = vmatpush3.xpose.msk.msra.mxu1 %vm1786_vm3, %v3527_v53  ;;  %v2958_v52 = vld [vmem:[%s9154_s11 + $0x38] sm:$0xff] }
 0x87d   : > { %v6408_v56 = vpop.f32.mrf.mxu0  ;;  %v6443_v57 = vpop.f32.mrf.mxu1  ;;  %6604 = vmatprep.subr.mxu0 %v6816_v5  ;;  %6609 = vmatprep.subr.mxu1 %v6816_v5 }
 0x87e   : > { %v2953_v56 = vld [vmem:[%s9154_s11 + $0x10] sm:$0xff]  ;;  %v2956_v57 = vld [vmem:[%s9154_s11 + $0x28] sm:$0xff] }
 0x87f   : > { %6597 = vmatmul.mubr.msk.f32.vlgmr.msra.gmra.mxu0 %vm1786_vm3, %v3249_v54  ;;  %6602 = vmatmul.mubr.msk.f32.vlgmr.msra.gmra.mxu1 %vm1786_vm3, %v3250_v55  ;;  %v2954_v54 = vld [vmem:[%s9154_s11 + $0x18] sm:$0xff]  ;;  %v2957_v55 = vld [vmem:[%s9154_s11 + $0x30] sm:$0xff] }
 0x880   : > { %6606 = vmatprep.mubr.msk.f32.mxu0 %vm6817_vm0, %v6816_v5  ;;  %6611 = vmatprep.mubr.msk.f32.mxu1 %vm6817_vm0, %v6816_v5 }
 0x89e   : > { %v3597_v58 = vpop.f32.mrf.mxu0  ;;  %v3667_v59 = vpop.f32.mrf.mxu1 }
 0x89f   : > { %6605 = vmatpush3.msra.mxu0 %v3597_v58  ;;  %6610 = vmatpush3.msra.mxu1 %v3667_v59  ;;  %v2952_v58 = vld [vmem:[%s9154_s11 + $0x8] sm:$0xff]  ;;  %v2951_v59 = vld [vmem:[%s9154_s11] sm:$0xff] }
 0x8a0   : > { %v6478_v60 = vpop.f32.mrf.mxu0  ;;  %v6513_v61 = vpop.f32.mrf.mxu1  ;;  %6614 = vmatprep.subr.mxu0 %v6816_v5  ;;  %6619 = vmatprep.subr.mxu1 %v6816_v5 }
 0x8a1   : > { %v2955_v60 = vld [vmem:[%s9154_s11 + $0x20] sm:$0xff]  ;;  %v2966_v61 = vld [vmem:[%s9154_s11 + $0x78] sm:$0xff] }
 0x8bf   : > { %v8795_v62 = vpop.f32.mrf.mxu0  ;;  %v3807_v63 = vpop.f32.mrf.mxu1 }
 0x8c1   : > { %v6548_v0 = vpop.f32.mrf.mxu0  ;;  %v6583_v2 = vpop.f32.mrf.mxu1 }
 0x8c2   : > { %v2965_v2 = vld [vmem:[%s9154_s11 + $0x70] sm:$0xff] }
 0x91d   : > { %v3883_v4 = vpop.f32.mrf.mxu0  ;;  %v3959_v6 = vpop.f32.mrf.mxu1 }
 0x91e   : > { %v3884_v7 = vadd.f32 %v3883_v4, %v2758_v3  ;;  %v3960_v8 = vadd.f32 %v3959_v6, %v2758_v3  ;;  %v2961_v4 = vld [vmem:[%s9154_s11 + $0x50] sm:$0xff] }
 0x91f   : > { %v6588_v9 = vpop.f32.mrf.mxu0  ;;  %v6593_v10 = vpop.f32.mrf.mxu1 }
 0x920   : > { %v4118_v11 = vsel %vm2091_vm4, %v3960_v8, -inf  ;;  %v4115_v13 = vsel %vm2091_vm4, %v3884_v7, -inf  ;;  %v2959_v9 = vld [vmem:[%s9154_s11 + $0x40] sm:$0xff] }
 0x921   : > { %4119 = vmax.xlane.f32.xlu1 %v4118_v11  ;;  %4116 = vmax.xlane.f32.xlu0 %v4115_v13  ;;  %v2963_v10 = vld [vmem:[%s9154_s11 + $0x60] sm:$0xff] }
 0x93f   : > { %v4035_v14 = vpop.f32.mrf.mxu0  ;;  %v4111_v15 = vpop.f32.mrf.mxu1 }
 0x940   : > { %v4036_v16 = vadd.f32 %v4035_v14, %v2758_v3  ;;  %v4112_v17 = vadd.f32 %v4111_v15, %v2758_v3 }
 0x941   : > { %v6598_v18 = vpop.f32.mrf.mxu0  ;;  %v6603_v19 = vpop.f32.mrf.mxu1 }
 0x942   : > { %v4124_v20 = vsel %vm2091_vm4, %v4112_v17, -inf  ;;  %v4121_v21 = vsel %vm2091_vm4, %v4036_v16, -inf }
 0x943   : > { %4125 = vmax.xlane.f32.xlu1 %v4124_v20  ;;  %4122 = vmax.xlane.f32.xlu0 %v4121_v21 }
 0x9aa   : > { %v4120_v22 = vpop.xlane.xlu1 %4119  ;;  %v4117_v23 = vpop.xlane.xlu0 %4116 }
 0x9ab   : > { %v4128_v24 = vsub.f32 %v3960_v8, %v4120_v22  ;;  %v4127_v25 = vsub.f32 %v3884_v7, %v4117_v23  ;;  %v2964_v7 = vld [vmem:[%s9154_s11 + $0x68] sm:$0xff] }
 0x9ac   : > { %v2960_v8 = vld [vmem:[%s9154_s11 + $0x48] sm:$0xff] }
 0x9ad   : > { %v4133_v26 = vmul.f32 1.442695, %v4128_v24  ;;  %v4131_v27 = vmul.f32 1.442695, %v4127_v25 }
 0x9af   : > { %6733 = vpow2.f32 %v4133_v26 }
 0x9b0   : > { %6735 = vpow2.f32 %v4131_v27 }
 0x9bc   : > { %v6734_v28 = vpop.eup %6733 }
 0x9bd   : > { %v6736_v29 = vpop.eup %6735  ;;  %v4142_v30 = vsel %vm2091_vm4, %v6734_v28, 0.0 }
 0x9be   : > { %4143 = vadd.xlane.f32.xlu1 %v4142_v30  ;;  %v4139_v31 = vsel %vm2091_vm4, %v6736_v29, 0.0 }
 0x9bf   : > { %4140 = vadd.xlane.f32.xlu0 %v4139_v31  ;;  %v4812_v31 = vld [vmem:[%s9155_s12 + $0xf8] sm:$0xff] }
 0x9cc   : > { %v4126_v32 = vpop.xlane.xlu1 %4125  ;;  %v4123_v51 = vpop.xlane.xlu0 %4122 }
 0x9cd   : > { %v4130_v33 = vsub.f32 %v4112_v17, %v4126_v32  ;;  %v4129_v34 = vsub.f32 %v4036_v16, %v4123_v51  ;;  %v4810_v32 = vld [vmem:[%s9155_s12 + $0xe8] sm:$0xff]  ;;  %v4809_v51 = vld [vmem:[%s9155_s12 + $0xe0] sm:$0xff] }
 0x9cf   : > { %v4137_v35 = vmul.f32 1.442695, %v4130_v33  ;;  %v4135_v36 = vmul.f32 1.442695, %v4129_v34  ;;  %v4808_v33 = vld [vmem:[%s9155_s12 + $0xd8] sm:$0xff]  ;;  %v4807_v34 = vld [vmem:[%s9155_s12 + $0xd0] sm:$0xff] }
 0x9d1   : > { %6737 = vpow2.f32 %v4137_v35  ;;  %v4806_v35 = vld [vmem:[%s9155_s12 + $0xc8] sm:$0xff] }
 0x9d2   : > { %6739 = vpow2.f32 %v4135_v36  ;;  %v4805_v36 = vld [vmem:[%s9155_s12 + $0xc0] sm:$0xff] }
 0x9de   : > { %v6738_v37 = vpop.eup %6737 }
 0x9df   : > { %v6740_v38 = vpop.eup %6739  ;;  %v4148_v39 = vsel %vm2091_vm4, %v6738_v37, 0.0 }
 0x9e0   : > { %4149 = vadd.xlane.f32.xlu1 %v4148_v39  ;;  %v4145_v40 = vsel %vm2091_vm4, %v6740_v38, 0.0  ;;  %v4802_v39 = vld [vmem:[%s9155_s12 + $0xa8] sm:$0xff] }
 0x9e1   : > { %4146 = vadd.xlane.f32.xlu0 %v4145_v40  ;;  %v4801_v40 = vld [vmem:[%s9155_s12 + $0xa0] sm:$0xff] }
 0xa47   : > { %v4144_v41 = vpop.xlane.xlu1 %4143 }
 0xa48   : > { %6741 = vrcp.f32 %v4144_v41  ;;  %v4141_v42 = vpop.xlane.xlu0 %4140  ;;  %v4800_v41 = vld [vmem:[%s9155_s12 + $0x98] sm:$0xff] }
 0xa49   : > { %6743 = vrcp.f32 %v4141_v42  ;;  %v4799_v42 = vld [vmem:[%s9155_s12 + $0x90] sm:$0xff] }
 0xa55   : > { %v6742_v43 = vpop.eup %6741 }
 0xa56   : > { %v6744_v44 = vpop.eup %6743  ;;  %v4156_v45 = vmul.f32 %v6742_v43, %v6734_v28  ;;  %v4798_v43 = vld [vmem:[%s9155_s12 + $0x88] sm:$0xff] }
 0xa57   : > { %v4155_v46 = vmul.f32 %v6744_v44, %v6736_v29  ;;  %v4797_v44 = vld [vmem:[%s9155_s12 + $0x80] sm:$0xff] }
 0xa58   : > { %6612 = vmatmul.mubr.msk.f32.vlgmr.msra.gmra.mxu1 %vm2091_vm4, %v4156_v45  ;;  %v4796_v45 = vld [vmem:[%s9155_s12 + $0x78] sm:$0xff] }
 0xa59   : > { %6607 = vmatmul.mubr.msk.f32.vlgmr.msra.gmra.mxu0 %vm2091_vm4, %v4155_v46  ;;  %6620 = vmatpush3.msra.mxu1 %v3807_v63  ;;  %v2962_v63 = vld [vmem:[%s9154_s11 + $0x58] sm:$0xff]  ;;  %v4795_v46 = vld [vmem:[%s9155_s12 + $0x70] sm:$0xff] }
 0xa5a   : > { %6615 = vmatpush3.msra.mxu0 %v8795_v62  ;;  %6616 = vmatprep.mubr.msk.f32.mxu0 %vm6817_vm0, %v6816_v5 }
 0xa5b   : > { %6621 = vmatprep.mubr.msk.f32.mxu1 %vm6817_vm0, %v6816_v5  ;;  %6624 = vmatprep.subr.mxu0 %v6816_v5 }
 0xa5c   : > { %6635 = vmatprep.subr.mxu1 %v6816_v5 }
 0xa69   : > { %v4150_v1 = vpop.xlane.xlu1 %4149 }
 0xa6a   : > { %6745 = vrcp.f32 %v4150_v1  ;;  %v4147_v47 = vpop.xlane.xlu0 %4146  ;;  %v4794_v1 = vld [vmem:[%s9155_s12 + $0x68] sm:$0xff] }
 0xa6b   : > { %6747 = vrcp.f32 %v4147_v47  ;;  %v4793_v47 = vld [vmem:[%s9155_s12 + $0x60] sm:$0xff] }
 0xa77   : > { %v6746_v48 = vpop.eup %6745 }
 0xa78   : > { %v6748_v49 = vpop.eup %6747  ;;  %v4158_v50 = vmul.f32 %v6746_v48, %v6738_v37  ;;  %v4804_v37 = vld [vmem:[%s9155_s12 + $0xb8] sm:$0xff] }
 0xa79   : > { %v4157_v53 = vmul.f32 %v6748_v49, %v6740_v38  ;;  %v4803_v38 = vld [vmem:[%s9155_s12 + $0xb0] sm:$0xff]  ;;  %v4792_v48 = vld [vmem:[%s9155_s12 + $0x58] sm:$0xff] }
 0xa7a   : > { %6622 = vmatmul.mubr.msk.f32.vlgmr.msra.gmra.mxu1 %vm2091_vm4, %v4158_v50  ;;  %v4791_v49 = vld [vmem:[%s9155_s12 + $0x50] sm:$0xff]  ;;  %v4790_v50 = vld [vmem:[%s9155_s12 + $0x48] sm:$0xff] }
 0xa7b   : > { %6617 = vmatmul.mubr.msk.f32.vlgmr.msra.gmra.mxu0 %vm2091_vm4, %v4157_v53  ;;  %6636 = vmatpush3.msra.mxu1 %v2958_v52  ;;  %v4789_v52 = vld [vmem:[%s9155_s12 + $0x40] sm:$0xff]  ;;  %v4788_v53 = vld [vmem:[%s9155_s12 + $0x38] sm:$0xff] }
 0xa7c   : > { %6625 = vmatpush3.msra.mxu0 %v2954_v54  ;;  %6637 = vmatprep.subr.mxu1 %v6816_v5  ;;  %v4787_v54 = vld [vmem:[%s9155_s12 + $0x30] sm:$0xff] }
 0xa7d   : > { %6626 = vmatprep.subr.mxu0 %v6816_v5  ;;  %6638 = vmatpush3.msra.mxu1 %v2957_v55  ;;  %v4786_v55 = vld [vmem:[%s9155_s12 + $0x28] sm:$0xff] }
 0xa7e   : > { %6627 = vmatpush3.msra.mxu0 %v2953_v56  ;;  %6639 = vmatprep.subr.mxu1 %v6816_v5  ;;  %v4785_v56 = vld [vmem:[%s9155_s12 + $0x20] sm:$0xff] }
 0xa7f   : > { %6628 = vmatprep.subr.mxu0 %v6816_v5  ;;  %6640 = vmatpush3.msra.mxu1 %v2956_v57  ;;  %v4784_v57 = vld [vmem:[%s9155_s12 + $0x18] sm:$0xff] }
 0xa80   : > { %6629 = vmatpush3.msra.mxu0 %v2952_v58  ;;  %6641 = vmatprep.subr.mxu1 %v6816_v5  ;;  %v4783_v58 = vld [vmem:[%s9155_s12 + $0x10] sm:$0xff] }
 0xa81   : > { %6630 = vmatprep.subr.mxu0 %v6816_v5  ;;  %6632 = vmatprep.mubr.msk.f32.mxu0 %vm6817_vm0, %v6816_v5 }
 0xa82   : > { %6643 = vmatprep.mubr.msk.f32.mxu1 %vm6817_vm0, %v6816_v5  ;;  %6631 = vmatpush3.msra.mxu0 %v2951_v59  ;;  %v4782_v59 = vld [vmem:[%s9155_s12 + $0x8] sm:$0xff] }
 0xa83   : > { %6642 = vmatpush3.msra.mxu1 %v2955_v60  ;;  %6646 = vmatprep.subr.mxu0 %v6816_v5  ;;  %v4781_v60 = vld [vmem:[%s9155_s12] sm:$0xff] }
 0xa84   : > { %6657 = vmatprep.subr.mxu1 %v6816_v5 }
 0xb18   : > { %v4301_v62 = vpop.f32.mrf.mxu1 }
 0xb19   : > { %v4228_v0 = vpop.f32.mrf.mxu0  ;;  %6644 = vmatmul.mubr.msk.f32.vlgmr.msra.gmra.mxu1 %vm1786_vm3, %v4301_v62  ;;  %v4913_v62 = vld [vmem:[%s9157_s14 + $0x78] sm:$0xff] }
 0xb1a   : > { %6633 = vmatmul.mubr.msk.f32.vlgmr.msra.gmra.mxu0 %vm1786_vm3, %v4228_v0  ;;  %v6613_v3 = vpop.f32.mrf.mxu1  ;;  %6658 = vmatpush3.msra.mxu1 %v2966_v61  ;;  %v4929_v61 = vld [vmem:[%s9157_s14 + $0xf8] sm:$0xff]  ;;  %v4912_v0 = vld [vmem:[%s9157_s14 + $0x70] sm:$0xff] }
 0xb1b   : > { %v6608_v6 = vpop.f32.mrf.mxu0  ;;  %6647 = vmatpush3.msra.mxu0 %v2962_v63  ;;  %6659 = vmatprep.subr.mxu1 %v6816_v5  ;;  %v4928_v63 = vld [vmem:[%s9157_s14 + $0xf0] sm:$0xff]  ;;  %v4911_v3 = vld [vmem:[%s9157_s14 + $0x68] sm:$0xff] }
 0xb1c   : > { %6648 = vmatprep.subr.mxu0 %v6816_v5  ;;  %6660 = vmatpush3.msra.mxu1 %v2965_v2  ;;  %v4927_v2 = vld [vmem:[%s9157_s14 + $0xe8] sm:$0xff]  ;;  %v4910_v6 = vld [vmem:[%s9157_s14 + $0x60] sm:$0xff] }
 0xb1d   : > { %6649 = vmatpush3.msra.mxu0 %v2961_v4  ;;  %6661 = vmatprep.subr.mxu1 %v6816_v5  ;;  %v4926_v4 = vld [vmem:[%s9157_s14 + $0xe0] sm:$0xff] }
 0xb1e   : > { %6650 = vmatprep.subr.mxu0 %v6816_v5  ;;  %6662 = vmatpush3.msra.mxu1 %v2964_v7  ;;  %v4925_v7 = vld [vmem:[%s9157_s14 + $0xd8] sm:$0xff] }
 0xb1f   : > { %6651 = vmatpush3.msra.mxu0 %v2960_v8  ;;  %6663 = vmatprep.subr.mxu1 %v6816_v5  ;;  %v4909_v8 = vld [vmem:[%s9157_s14 + $0x58] sm:$0xff] }
 0xb20   : > { %6652 = vmatprep.subr.mxu0 %v6816_v5  ;;  %6654 = vmatprep.mubr.msk.f32.mxu0 %vm6817_vm0, %v6816_v5 }
 0xb21   : > { %6653 = vmatpush3.msra.mxu0 %v2959_v9  ;;  %6664 = vmatpush3.msra.mxu1 %v2963_v10  ;;  %v4924_v9 = vld [vmem:[%s9157_s14 + $0xd0] sm:$0xff] }
 0xb22   : > { %6665 = vmatprep.mubr.msk.f32.mxu1 %vm6817_vm0, %v6816_v5  ;;  %4825 = vmatprep.subr.mxu0 %v4812_v31  ;;  %v4908_v10 = vld [vmem:[%s9157_s14 + $0x50] sm:$0xff] }
 0xb23   : > { %5625 = vmatprep.subr.mxu1 %v4929_v61 }
 0xb3a   : > { %v4447_v11 = vpop.f32.mrf.mxu1 }
 0xb3b   : > { %v4374_v13 = vpop.f32.mrf.mxu0  ;;  %6666 = vmatmul.mubr.msk.f32.vlgmr.msra.gmra.mxu1 %vm1786_vm3, %v4447_v11  ;;  %v4923_v11 = vld [vmem:[%s9157_s14 + $0xc8] sm:$0xff] }
 0xb3c   : > { %6655 = vmatmul.mubr.msk.f32.vlgmr.msra.gmra.mxu0 %vm1786_vm3, %v4374_v13  ;;  %v6623_v14 = vpop.f32.mrf.mxu1  ;;  %5626 = vmatpush3.msra.mxu1 %v4913_v62  ;;  %v4907_v13 = vld [vmem:[%s9157_s14 + $0x48] sm:$0xff] }
 0xb3d   : > { %v6618_v15 = vpop.f32.mrf.mxu0  ;;  %4889 = vmatprep.mubr.f32.mxu0 %v6816_v5  ;;  %5627 = vmatprep.subr.mxu1 %v4928_v63  ;;  %v4922_v14 = vld [vmem:[%s9157_s14 + $0xc0] sm:$0xff] }
 0xb3e   : > { %5628 = vmatpush3.msra.mxu1 %v4912_v0  ;;  %v4906_v15 = vld [vmem:[%s9157_s14 + $0x40] sm:$0xff] }
 0xb3f   : > { %5629 = vmatprep.subr.mxu1 %v4927_v2 }
 0xb40   : > { %5630 = vmatpush3.msra.mxu1 %v4911_v3 }
 0xb41   : > { %5631 = vmatprep.subr.mxu1 %v4926_v4 }
 0xb42   : > { %5632 = vmatpush3.msra.mxu1 %v4910_v6 }
 0xb43   : > { %5633 = vmatprep.subr.mxu1 %v4925_v7 }
 0xb44   : > { %5634 = vmatpush3.msra.mxu1 %v4909_v8 }
 0xb45   : > { %5635 = vmatprep.subr.mxu1 %v4924_v9 }
 0xb46   : > { %5636 = vmatpush3.msra.mxu1 %v4908_v10 }
 0xb47   : > { %5637 = vmatprep.subr.mxu1 %v4923_v11 }
 0xb48   : > { %5638 = vmatpush3.msra.mxu1 %v4907_v13 }
 0xb49   : > { %5639 = vmatprep.subr.mxu1 %v4922_v14 }
 0xb4a   : > { %5640 = vmatpush3.msra.mxu1 %v4906_v15 }
 0xbd9   : > { %v4593_v16 = vpop.f32.mrf.mxu1 }
 0xbda   : > { %v4520_v17 = vpop.f32.mrf.mxu0 }
 0xbdb   : > { %v6645_v18 = vpop.f32.mrf.mxu1  ;;  %v4743_v20 = vadd.f32 %v4593_v16, %v4520_v17  ;;  %v4921_v16 = vld [vmem:[%s9157_s14 + $0xb8] sm:$0xff] }
 0xbdc   : > { %v6634_v19 = vpop.f32.mrf.mxu0  ;;  %v4905_v17 = vld [vmem:[%s9157_s14 + $0x38] sm:$0xff]  ;;  %v4920_v18 = vld [vmem:[%s9157_s14 + $0xb0] sm:$0xff]  ;;  %5641 = vmatprep.subr.mxu1 %v4921_v16 }
 0xbdd   : > { %v4904_v19 = vld [vmem:[%s9157_s14 + $0x30] sm:$0xff]  ;;  %5642 = vmatpush3.msra.mxu1 %v4905_v17 }
 0xbde   : > { %5643 = vmatprep.subr.mxu1 %v4920_v18 }
 0xbdf   : > { %5644 = vmatpush3.msra.mxu1 %v4904_v19 }
 0xbfb   : > { %v4739_v21 = vpop.f32.mrf.mxu1 }
 0xbfc   : > { %v4666_v22 = vpop.f32.mrf.mxu0 }
 0xbfd   : > { %v4744_v23 = vadd.f32 %v4743_v20, %v4666_v22  ;;  %v6667_v24 = vpop.f32.mrf.mxu1  ;;  %v4919_v20 = vld [vmem:[%s9157_s14 + $0xa8] sm:$0xff]  ;;  %v4918_v22 = vld [vmem:[%s9157_s14 + $0xa0] sm:$0xff] }
 0xbfe   : > { %v6656_v25 = vpop.f32.mrf.mxu0  ;;  %5645 = vmatprep.subr.mxu1 %v4919_v20 }
 0xbff   : > { %v4745_v26 = vadd.f32 %v4744_v23, %v4739_v21  ;;  %v4903_v21 = vld [vmem:[%s9157_s14 + $0x28] sm:$0xff]  ;;  %v4902_v23 = vld [vmem:[%s9157_s14 + $0x20] sm:$0xff] }
 0xc00   : > { %5646 = vmatpush3.msra.mxu1 %v4903_v21 }
 0xc01   : > { %v8895_v27 = vadd.f32 %v4745_v26, %v7945_v12  ;;  %v4811_v12 = vld [vmem:[%s9155_s12 + $0xf0] sm:$0xff]  ;;  %5647 = vmatprep.subr.mxu1 %v4918_v22 }
 0xc02   : > { %4826 = vmatpush1.msra.mxu0 %v4811_v12  ;;  %5648 = vmatpush3.msra.mxu1 %v4902_v23 }
 0xc03   : > { %4749 = vadd.xlane.f32.xlu0 %v8895_v27  ;;  %4827 = vmatprep.subr.mxu0 %v4810_v32  ;;  %v5138_v32 = vld [vmem:[%s9163_s20] ss:$0 sm:$0xff] }
 0xc04   : > { %4828 = vmatpush1.msra.mxu0 %v4809_v51 }
 0xc05   : > { %4829 = vmatprep.subr.mxu0 %v4808_v33 }
 0xc06   : > { %4830 = vmatpush1.msra.mxu0 %v4807_v34  ;;  %v5139_v34 = vld [vmem:[%s9164_s21] ss:$0 sm:$0xff] }
 0xc07   : > { %4831 = vmatprep.subr.mxu0 %v4806_v35 }
 0xc08   : > { %4832 = vmatpush1.msra.mxu0 %v4805_v36 }
 0xc09   : > { %4833 = vmatprep.subr.mxu0 %v4804_v37  ;;  %v4917_v37 = vld [vmem:[%s9157_s14 + $0x98] sm:$0xff] }
 0xc0a   : > { %4834 = vmatpush1.msra.mxu0 %v4803_v38  ;;  %5649 = vmatprep.subr.mxu1 %v4917_v37  ;;  %v4901_v38 = vld [vmem:[%s9157_s14 + $0x18] sm:$0xff] }
 0xc0b   : > { %4835 = vmatprep.subr.mxu0 %v4802_v39  ;;  %5650 = vmatpush3.msra.mxu1 %v4901_v38  ;;  %v4900_v39 = vld [vmem:[%s9157_s14 + $0x10] sm:$0xff] }
 0xc0c   : > { %4836 = vmatpush1.msra.mxu0 %v4801_v40  ;;  %v4915_v40 = vld [vmem:[%s9157_s14 + $0x88] sm:$0xff] }
 0xc0d   : > { %4837 = vmatprep.subr.mxu0 %v4800_v41  ;;  %v4899_v41 = vld [vmem:[%s9157_s14 + $0x8] sm:$0xff] }
 0xc0e   : > { %4838 = vmatpush1.msra.mxu0 %v4799_v42  ;;  %v4914_v42 = vld [vmem:[%s9157_s14 + $0x80] sm:$0xff] }
 0xc0f   : > { %4839 = vmatprep.subr.mxu0 %v4798_v43  ;;  %v4898_v43 = vld [vmem:[%s9157_s14] sm:$0xff] }
 0xc10   : > { %4840 = vmatpush1.msra.mxu0 %v4797_v44  ;;  %v4815_v44 = vlaneseq }
 0xc11   : > { %4841 = vmatprep.subr.mxu0 %v4796_v45 }
 0xc12   : > { %4842 = vmatpush1.msra.mxu0 %v4795_v46  ;;  %v4816_v45 = vshrl.u32 %v4815_v44, 7 }
 0xc13   : > { %4843 = vmatprep.subr.mxu0 %v4794_v1  ;;  %v4813_v1 = vld [vmem:[%s9156_s13] sm:$0x3] }
 0xc14   : > { %4844 = vmatpush1.msra.mxu0 %v4793_v47  ;;  %v4817_v46 = vsub.s32 0, %v4816_v45  ;;  %v4821_v47 = vsub.s32 1, %v4816_v45 }
 0xc15   : > { %4845 = vmatprep.subr.mxu0 %v4792_v48 }
 0xc16   : > { %4846 = vmatpush1.msra.mxu0 %v4791_v49  ;;  %v4818_v48 = vrot.slane %v4813_v1, %v4817_v46  ;;  %v4822_v49 = vrot.slane %v4813_v1, %v4821_v47 }
 0xc17   : > { %4847 = vmatprep.subr.mxu0 %v4790_v50 }
 0xc18   : > { %4848 = vmatpush1.msra.mxu0 %v4789_v52 }
 0xc19   : > { %4849 = vmatprep.subr.mxu0 %v4788_v53 }
 0xc1a   : > { %4850 = vmatpush1.msra.mxu0 %v4787_v54 }
 0xc1b   : > { %4851 = vmatprep.subr.mxu0 %v4786_v55 }
 0xc1c   : > { %4852 = vmatpush1.msra.mxu0 %v4785_v56 }
 0xc1d   : > { %4853 = vmatprep.subr.mxu0 %v4784_v57 }
 0xc1e   : > { %4854 = vmatpush1.msra.mxu0 %v4783_v58 }
 0xc1f   : > { %4855 = vmatprep.subr.mxu0 %v4782_v59 }
 0xc20   : > { %4856 = vmatpush1.msra.mxu0 %v4781_v60  ;;  %v5140_v60 = vld [vmem:[%s9158_s15] ss:$0 sm:$0xff] }
 0xc8c   : > { %v4750_v28 = vpop.xlane.xlu0 %4749 }
 0xc8d   : > { %v4751_v29 = vmul.f32 0.0078125, %v4750_v28 }
 0xc8f   : > { %v8899_v5 = vsub.f32 %v8895_v27, %v4751_v29 }
 0xc91   : > { %v4753_v30 = vmul.f32 %v8899_v5, %v8899_v5  ;;  %v4770_v51 = vmul.f32 %v5138_v32, %v8899_v5  ;;  %v4916_v5 = vld [vmem:[%s9157_s14 + $0x90] sm:$0xff] }
 0xc92   : > { %5651 = vmatprep.subr.mxu1 %v4916_v5 }
 0xc93   : > { %4754 = vadd.xlane.f32.xlu1 %v4753_v30  ;;  %5652 = vmatpush3.msra.mxu1 %v4900_v39 }
 0xc94   : > { %5653 = vmatprep.subr.mxu1 %v4915_v40 }
 0xc95   : > { %5654 = vmatpush3.msra.mxu1 %v4899_v41 }
 0xc96   : > { %5655 = vmatprep.subr.mxu1 %v4914_v42 }
 0xc97   : > { %5656 = vmatpush3.msra.mxu1 %v4898_v43 }
 0xd1c   : > { %v4755_v24 = vpop.xlane.xlu1 %4754 }
 0xd1d   : > { %v4756_v25 = vmul.f32 0.007874016, %v4755_v24 }
 0xd1f   : > { %6749 = vrsqrt.f32 %v4756_v25  ;;  %vm4759_vm7 = vcmp.eq.f32.partialorder %v4756_v25, inf  ;;  %v4762_v29 = vand.u32 2147483648, %v4756_v25  ;;  %vm4761_vm8 = vcmp.eq.f32.partialorder %v4756_v25, 0.0 }
 0xd2c   : > { %v6750_v26 = vpop.eup %6749 }
 0xd2d   : > { %v4758_v28 = vmul.f32 %v6750_v26, %v4756_v25 }
 0xd2f   : > { %v4760_v30 = vsel %vm4759_vm7, %v4756_v25, %v4758_v28 }
 0xd30   : > { %v4763_v31 = vsel %vm4761_vm8, %v4762_v29, %v4760_v30 }
 0xd31   : > { %v4771_v12 = vadd.f32 1e-06, %v4763_v31 }
 0xd33   : > { %6751 = vrcp.f32 %v4771_v12 }
 0xd40   : > { %v6752_v33 = vpop.eup %6751 }
 0xd41   : > { %v4773_v35 = vmul.f32 %v6752_v33, %v4770_v51 }
 0xd43   : > { %v4780_v36 = vadd.f32 %v5139_v34, %v4773_v35 }
 0xd45   : > { %4890 = vmatmul.mubr.f32.vlgmr.msra.gmra.mxu0 %v4780_v36 }
 0xe05   : > { %v4891_v50 = vpop.f32.mrf.mxu0 }
 0xe06   : > { %v4892_v52 = vadd.f32 %v4891_v50, %v4818_v48 }
 0xe07   : > { %v4893_v53 = vpop.f32.mrf.mxu0 }
 0xe08   : > { %v4894_v54 = vadd.f32 %v4893_v53, %v4822_v49  ;;  %v4896_v56 = vmax.f32 %v4892_v52, 0.0 }
 0xe0a   : > { %v4897_v55 = vmax.f32 %v4894_v54, 0.0 }
 0xe0c   : > { %4994 = vmatprep.mubr.f32.mxu1 %v4897_v55 }
 0xe0d   : > { %4995 = vmatmul.mubr.f32.vlgmr.msra.gmra.mxu1 %v4896_v56 }
 0xecd   : > { %v5657_v57 = vpop.f32.mrf.mxu1 }
 0xecf   : > { %v5658_v58 = vpop.f32.mrf.mxu1 }
 0xed0   : > { %v5659_v59 = vadd.f32 %v5658_v58, %v5657_v57 }
 0xed2   : > { %v5000_v61 = vadd.f32 %v5659_v59, %v8895_v27 }
 0xed4   : > { %v5008_v62 = vadd.f32 %v5140_v60, %v5000_v61 }
 0xed6   : > { %5009 = vst [vmem:[%s687_s5] sm:$0xff] %v5008_v62 }
 0xed7   : > { %6767 = shalt.err (!%p6764_p3)
}
 0xed8   : > { %s6768_s26 = scalar_lea.hbm %s5022_s24, 128  ;;  %s6772_s5 = scalar_lea.hbm %s9165_s22, 256 }
 0xed9   : > { %p6769_p4 = scmp.ne.s32.totalorder %s5022_s24, %s6768_s26  ;;  %p6773_p9 = scmp.lt.s32.totalorder %s5022_s24, %s9165_s22 }
 0xeda   : > { %p6774_p10 = scmp.lt.s32.totalorder %s6772_s5, %s6768_s26 }
 0xedb   : > { %p6770_p7 = pnand %p6769_p4, %p6972_p5 }
 0xedc   : > { %p6775_p11 = por %p6774_p10, %p6773_p9 }
 0xedd   : > { %p6771_p8 = pneg %p6770_p7 }
 0xedf   : > { %p6776_p12 = pnand %p6775_p11, %p6771_p8 }
 0xee1   : > { %6779 = shalt.err (!%p6776_p12)
}
 0xee2   : > { %6668 = dma.vmem_to_hbm [thread:$0]  (%p6972_p5), %s5025_s1, 128, %s5022_s24, %s5011_s0  }
 0xee3 PF: > { %s9204_s7 = sld [smem:[#allocation5_spill]]  ;;  %p6674_p13 = scmp.ge.s32.totalorder %s6814_s30, 2 }
 0xee5   : > { %p6671_p0 = pnand %p6674_p13, %p6976_p6 }
 0xee7   : > { %p6672_p1 = pneg %p6671_p0 }
 0xee9   : > { %s5036_s2 = sand.u32 1, %s9204_s7  }
 0xeea   : > { %s5037_s4 = scalar_lea.sflag [#allocation3], %s5036_s2 }
 0xeeb   : > { %6797 = dma.done.wait (%p6672_p1), %s5037_s4, 128  }
 0xeec   : > { %6799 = vsyncadd (%p6672_p1), %s5037_s4, 4294967168  ;;  %s9206_s30 = sld [smem:[#allocation7_spill]]  ;;  %s9209_s3 = smov %s6806_s28 }
 0xeed   : > { %s9207_s26 = sld [smem:[#allocation6_spill]] }
 0xeee   : > { %s9208_s29 = sld [smem:[#allocation8_spill]] }
 0xef2   : > { %p32_p2 = scmp.ge.s32.totalorder %s9206_s30, 4  }
 0xef3   : > { %s9210_s28 = smov %s9207_s26 }
 0xef4   :  { %34 = sbr.rel (!%p32_p2) target bundleno = 14 (0xe), region = 146 }
 0xef9   :  { %5042 = vsyncpa [#allocation3], 1 }
 0xefa   :  { %5044 = vsyncpa [#allocation3 + $0x1], 1 }

</bundles_post_ra>
